<compile_context>
chip_gen: v7x
topology: tpu7x:2x2x1
jax: 0.10.0
libtpu: 0.0.40
codegen_flags: <defaults>
</compile_context>

<pallas_src>
import jax
import jax.numpy as jnp
from jax.experimental import pallas as pl
from jax.experimental.pallas import tpu as pltpu


# (kh, start-offset-into-padded-y1) pairs contributing to each output-index parity of
# the k=4 / s=2 / p=1 transposed convolution (same table for rows and columns).
# Ordering must match the phase-weight packing in the wrapper below.
_PHASE_TAPS = (
    ((1, 1), (3, 0)),   # output index even
    ((0, 2), (2, 1)),   # output index odd
)


def _fused_kernel(x_ref, w1_ref, b1_ref, w2p_ref, g_ref, bt_ref,
                  out_ref, xpad, y1pad, y2_store, stats):
    p = pl.program_id(0)          # 0: compute + BN stats, 1: normalize + concat
    b = pl.program_id(1)          # batch element
    _, h, w, cin = x_ref.shape
    inner = w1_ref.shape[1]
    outer = w2p_ref.shape[2]
    ho, wo = h // 2, w // 2
    m1 = ho * wo

    # ---- one-time init: zero ONLY the 1-pixel halos + the BN accumulators ----------
    @pl.when(jnp.logical_and(p == 0, b == 0))
    def _init():
        xpad[:, 0:1, :, :] = jnp.zeros((1, 1, w + 2, cin), xpad.dtype)
        xpad[:, h + 1:h + 2, :, :] = jnp.zeros((1, 1, w + 2, cin), xpad.dtype)
        xpad[:, :, 0:1, :] = jnp.zeros((1, h + 2, 1, cin), xpad.dtype)
        xpad[:, :, w + 1:w + 2, :] = jnp.zeros((1, h + 2, 1, cin), xpad.dtype)
        y1pad[:, 0:1, :, :] = jnp.zeros((1, 1, wo + 2, inner), y1pad.dtype)
        y1pad[:, ho + 1:ho + 2, :, :] = jnp.zeros((1, 1, wo + 2, inner), y1pad.dtype)
        y1pad[:, :, 0:1, :] = jnp.zeros((1, ho + 2, 1, inner), y1pad.dtype)
        y1pad[:, :, wo + 1:wo + 2, :] = jnp.zeros((1, ho + 2, 1, inner), y1pad.dtype)
        stats[...] = jnp.zeros(stats.shape, stats.dtype)

    # -------------------------- pass 0: per-batch compute ---------------------------
    @pl.when(p == 0)
    def _compute():
        # downrelu: LeakyReLU(0.2) written into the padded interior (halo stays 0)
        xv = x_ref[...]
        xpad[:, 1:h + 1, 1:w + 1, :] = jnp.where(xv >= 0.0, xv, 0.2 * xv)

        # downconv: Conv2d(k=4, s=2, p=1) as a single GEMM.  Extract the 4 parity
        # planes with one strided read each; every (kh, kw) tap is then a
        # unit-stride slice of one plane (16 strided reads reduced to 4).
        planes = [[xpad[:, pl.ds(pr, ho + 1, 2), pl.ds(pc, wo + 1, 2), :]
                   for pc in range(2)] for pr in range(2)]
        cols = []
        for kh in range(4):
            for kw in range(4):
                tap = planes[kh % 2][kw % 2][:, kh // 2:kh // 2 + ho,
                                             kw // 2:kw // 2 + wo, :]
                cols.append(tap.reshape(m1, cin))
        a1 = jnp.concatenate(cols, axis=1).astype(jnp.bfloat16)      # (m1, 16*cin)
        y1 = jnp.dot(a1, w1_ref[...], preferred_element_type=jnp.float32)
        y1 = jnp.maximum(y1 + b1_ref[...], 0.0)                      # bias + uprelu

        # padded copy of y1 so transposed-conv boundary taps read zeros
        y1pad[:, 1:ho + 1, 1:wo + 1, :] = y1.reshape(1, ho, wo, inner)

        # upconv: ConvTranspose2d(k=4, s=2, p=1) as 4 output-parity GEMMs
        # (K = 4*inner, no zero-dilated tensor).  b2 is omitted: a per-channel
        # constant before training-mode BatchNorm is exactly cancelled.
        s = jnp.zeros((1, outer), jnp.float32)
        ss = jnp.zeros((1, outer), jnp.float32)
        for pi in range(2):
            for pj in range(2):
                taps = []
                for _, offh in _PHASE_TAPS[pi]:
                    for _, offw in _PHASE_TAPS[pj]:
                        taps.append(
                            y1pad[:, offh:offh + ho, offw:offw + wo, :]
                            .reshape(m1, inner))
                a2 = jnp.concatenate(taps, axis=1).astype(jnp.bfloat16)  # (m1, 4*inner)
                yp = jnp.dot(a2, w2p_ref[2 * pi + pj],
                             preferred_element_type=jnp.float32)          # (m1, outer)
                y2_store[pl.ds(b, 1), pl.ds(pi, ho, 2), pl.ds(pj, wo, 2), :] = (
                    yp.reshape(1, ho, wo, outer))
                s = s + yp.sum(axis=0, keepdims=True)
                ss = ss + (yp * yp).sum(axis=0, keepdims=True)
        stats[0:1, :] = stats[0:1, :] + s
        stats[1:2, :] = stats[1:2, :] + ss

    # ----------------------- pass 1: BatchNorm + channel concat ---------------------
    @pl.when(p == 1)
    def _normalize():
        # skip-connection half first: frees the x tile's live range and produces
        # that part of the output block as early as possible.
        out_ref[:, :, :, outer:outer + cin] = x_ref[...]

        n = y2_store.shape[0]
        inv_m = 1.0 / float(n * h * w)
        mean = stats[0:1, :] * inv_m
        var = stats[1:2, :] * inv_m - mean * mean
        scale = g_ref[...] * jax.lax.rsqrt(var + 1e-5)               # (1, outer)
        shift = bt_ref[...] - mean * scale                            # (1, outer)
        y2 = y2_store[pl.ds(b, 1), :, :, :]                           # (1, h, w, outer)
        out_ref[:, :, :, 0:outer] = (y2 * scale.reshape(1, 1, 1, outer)
                                     + shift.reshape(1, 1, 1, outer))


@jax.jit
def res_unet_innermost_forward(x, params):
    """x: (N, C_in, H, W) float32 NCHW -> (N, outer_nc + C_in, H, W)."""
    w1, b1, w2, gamma, beta = (params[k] for k in ("W1", "b1", "W2", "gamma", "beta"))
    # params["b2"] is intentionally not passed: a per-channel bias applied right
    # before training-mode BatchNorm is exactly cancelled by the batch statistics.
    n, cin, h, w = x.shape
    inner = w1.shape[0]
    outer = w2.shape[1]
    kk = 4
    assert h % 2 == 0 and w % 2 == 0
    ho, wo = h // 2, w // 2

    # NCHW -> NHWC (channels on lanes) at the external (PyTorch) boundary.
    # TODO(synk): at real UNet sizes keep the surrounding model NHWC (or fold the layout
    # change into the BlockSpec index_map) to avoid this HBM round trip on both sides.
    x_nhwc = jnp.transpose(x, (0, 2, 3, 1))

    # Conv2d weight (out,in,kh,kw) -> (kh*kw*in, out) in bf16; row order (kh, kw, ci)
    # matches the in-kernel im2col packing.
    w1m = jnp.transpose(w1, (2, 3, 1, 0)).reshape(kk * kk * cin, inner).astype(jnp.bfloat16)

    # ConvTranspose2d weight (in,out,kh,kw) -> one (4*inner, outer) bf16 matrix per
    # output parity phase; row ordering (tap, ci) matches the kernel's a2 packing.
    phase_w = []
    for pi in range(2):
        for pj in range(2):
            blocks = [w2[:, :, kh, kw]
                      for kh, _ in _PHASE_TAPS[pi] for kw, _ in _PHASE_TAPS[pj]]
            phase_w.append(jnp.stack(blocks, axis=0).reshape(4 * inner, outer))
    w2ph = jnp.stack(phase_w, axis=0).astype(jnp.bfloat16)       # (4, 4*inner, outer)

    grid = (2, n)   # (pass, batch): pass 0 = compute + BN stats, pass 1 = normalize

    out_nhwc = pl.pallas_call(
        _fused_kernel,
        out_shape=jax.ShapeDtypeStruct((n, h, w, outer + cin), jnp.float32),
        grid=grid,
        in_specs=[
            pl.BlockSpec((1, h, w, cin), lambda p, b: (b, 0, 0, 0)),      # x (NHWC)
            pl.BlockSpec((kk * kk * cin, inner), lambda p, b: (0, 0)),    # W1 (resident)
            pl.BlockSpec((1, inner), lambda p, b: (0, 0)),                # b1
            pl.BlockSpec((4, 4 * inner, outer), lambda p, b: (0, 0, 0)),  # W2 phase weights
            pl.BlockSpec((1, outer), lambda p, b: (0, 0)),                # BN gamma
            pl.BlockSpec((1, outer), lambda p, b: (0, 0)),                # BN beta
        ],
        # Pass 0 parks the (unwritten) output window on block 0; each output block is
        # fully written exactly once, during its pass-1 visit -> a single HBM writeback
        # per block, no revisits.
        out_specs=pl.BlockSpec((1, h, w, outer + cin), lambda p, b: (b * p, 0, 0, 0)),
        scratch_shapes=[
            pltpu.VMEM((1, h + 2, w + 2, cin), jnp.float32),     # padded leaky(x), per batch
            pltpu.VMEM((1, ho + 2, wo + 2, inner), jnp.float32), # padded y1, per batch
            # Unnormalized x_latter staged for the normalize pass.
            # TODO(synk): at real UNet sizes this staging buffer would be spilled to HBM
            # (pl.ANY + manual DMA) or BN would use running stats; it must not live in VMEM.
            pltpu.VMEM((n, h, w, outer), jnp.float32),
            pltpu.VMEM((2, outer), jnp.float32),                 # BN sum / sum-of-squares
        ],
        compiler_params=pltpu.CompilerParams(
            # Exact training-mode batch statistics make both grid axes reductions (stats
            # accumulate over the batch, the normalize pass depends on all of them), so
            # neither axis may be "parallel".  TODO(synk): with eval-mode BN (running
            # stats) the batch / row-tile axes become "parallel" for v7x megacore.
            dimension_semantics=("arbitrary", "arbitrary"),
            vmem_limit_bytes=32 * 1024 * 1024),
    )(x_nhwc, w1m, b1.reshape(1, inner), w2ph,
      gamma.reshape(1, outer), beta.reshape(1, outer))

    # NHWC -> NCHW for the external (PyTorch) contract.
    return jnp.transpose(out_nhwc, (0, 3, 1, 2))


# ------------------------------ pure-JAX reference ------------------------------- #

def _reference(x, p):
    xa = jnp.where(x >= 0, x, 0.2 * x)
    y1 = jax.lax.conv_general_dilated(
        xa, p["W1"], window_strides=(2, 2), padding=((1, 1), (1, 1)),
        dimension_numbers=("NCHW", "OIHW", "NCHW"),
        precision=jax.lax.Precision.HIGHEST) + p["b1"][None, :, None, None]
    y1 = jnp.maximum(y1, 0.0)
    w2c = jnp.transpose(jnp.flip(p["W2"], axis=(2, 3)), (1, 0, 2, 3))
    y2 = jax.lax.conv_general_dilated(
        y1, w2c, window_strides=(1, 1), padding=((2, 2), (2, 2)),
        lhs_dilation=(2, 2), dimension_numbers=("NCHW", "OIHW", "NCHW"),
        precision=jax.lax.Precision.HIGHEST) + p["b2"][None, :, None, None]
    mean = jnp.mean(y2, axis=(0, 2, 3), keepdims=True)
    var = jnp.mean((y2 - mean) ** 2, axis=(0, 2, 3), keepdims=True)
    y2n = ((y2 - mean) * jax.lax.rsqrt(var + 1e-5)
           * p["gamma"][None, :, None, None] + p["beta"][None, :, None, None])
    return jnp.concatenate([y2n, x], axis=1)


# ----------------------------------- main ----------------------------------------- #

if __name__ == "__main__":
    # innermost block: input_nc = outer_nc = 4, inner_nc = 8, x = (2, 4, 16, 16)
    outer_nc, inner_nc = 4, 8
    key = jax.random.PRNGKey(0)
    ks = jax.random.split(key, 7)
    params = {
        "W1": 0.1 * jax.random.normal(ks[0], (inner_nc, outer_nc, 4, 4), jnp.float32),
        "b1": 0.1 * jax.random.normal(ks[1], (inner_nc,), jnp.float32),
        "W2": 0.1 * jax.random.normal(ks[2], (inner_nc, outer_nc, 4, 4), jnp.float32),
        "b2": 0.1 * jax.random.normal(ks[3], (outer_nc,), jnp.float32),
        "gamma": 1.0 + 0.1 * jax.random.normal(ks[4], (outer_nc,), jnp.float32),
        "beta": 0.1 * jax.random.normal(ks[5], (outer_nc,), jnp.float32),
    }
    x = jax.random.normal(ks[6], (2, outer_nc, 16, 16), jnp.float32)

    out = jax.block_until_ready(res_unet_innermost_forward(x, params))
    assert out.shape == (2, 2 * outer_nc, 16, 16), out.shape

    ref = jax.block_until_ready(_reference(x, params))
    max_err = float(jnp.max(jnp.abs(out - ref)))
    # bf16 MXU operands (f32 accumulation) vs. the HIGHEST-precision f32 reference.
    assert max_err < 5e-2, f"mismatch vs reference: {max_err}"

    print("KERNEL_OK")
</pallas_src>

<mosaic_0001>
module attributes {stable_mosaic.version = 11 : i64} {
  func.func @_fused_kernel(%arg0: i32, %arg1: i32, %arg2: memref<1x16x16x4xf32, #tpu.memory_space<vmem>>, %arg3: memref<64x8xbf16, #tpu.memory_space<vmem>>, %arg4: memref<1x8xf32, #tpu.memory_space<vmem>>, %arg5: memref<4x32x4xbf16, #tpu.memory_space<vmem>>, %arg6: memref<1x4xf32, #tpu.memory_space<vmem>>, %arg7: memref<1x4xf32, #tpu.memory_space<vmem>>, %arg8: memref<1x16x16x8xf32, #tpu.memory_space<vmem>>, %arg9: memref<1x18x18x4xf32, #tpu.memory_space<vmem>>, %arg10: memref<1x10x10x8xf32, #tpu.memory_space<vmem>>, %arg11: memref<2x16x16x4xf32, #tpu.memory_space<vmem>>, %arg12: memref<2x4xf32, #tpu.memory_space<vmem>>) attributes {dimension_semantics = [#tpu.dimension_semantics<arbitrary>, #tpu.dimension_semantics<arbitrary>], iteration_bounds = array<i64: 2, 2>, scalar_prefetch = 0 : i64, scratch_operands = 4 : i64, tpu.core_type = #tpu.core_type<tc>, window_params = [{transform_indices = @transform_0, window_bounds = array<i64: 1, 16, 16, 4>}, {pipeline_mode = #tpu.pipeline_mode<synchronous>, transform_indices = @transform_1, window_bounds = array<i64: 64, 8>}, {pipeline_mode = #tpu.pipeline_mode<synchronous>, transform_indices = @transform_2, window_bounds = array<i64: 1, 8>}, {pipeline_mode = #tpu.pipeline_mode<synchronous>, transform_indices = @transform_3, window_bounds = array<i64: 4, 32, 4>}, {pipeline_mode = #tpu.pipeline_mode<synchronous>, transform_indices = @transform_4, window_bounds = array<i64: 1, 4>}, {pipeline_mode = #tpu.pipeline_mode<synchronous>, transform_indices = @transform_5, window_bounds = array<i64: 1, 4>}, {transform_indices = @transform_6, window_bounds = array<i64: 1, 16, 16, 8>}]} {
    %c0_i32 = arith.constant 0 : i32
    %0 = arith.cmpi eq, %arg0, %c0_i32 : i32
    %c0_i32_0 = arith.constant 0 : i32
    %1 = arith.cmpi eq, %arg1, %c0_i32_0 : i32
    %2 = arith.andi %0, %1 : i1
    %3 = arith.extui %2 : i1 to i32
    %c0_i32_1 = arith.constant 0 : i32
    %4 = arith.cmpi ne, %3, %c0_i32_1 : i32
    scf.if %4 {
      %cst = arith.constant 0.000000e+00 : f32
      %11 = vector.broadcast %cst : f32 to vector<1x1x18x4xf32>
      %c0 = arith.constant 0 : index
      %c0_5 = arith.constant 0 : index
      %c0_6 = arith.constant 0 : index
      %c0_7 = arith.constant 0 : index
      %12 = vector.load %arg9[%c0, %c0_5, %c0_6, %c0_7] : memref<1x18x18x4xf32, #tpu.memory_space<vmem>>, vector<1x1x18x4xf32>
      tpu.vector_store %arg9[%c0, %c0_5, %c0_6, %c0_7], %11 {strides = array<i32>} : memref<1x18x18x4xf32, #tpu.memory_space<vmem>>, vector<1x1x18x4xf32>,
      %cst_8 = arith.constant 0.000000e+00 : f32
      %13 = vector.broadcast %cst_8 : f32 to vector<1x1x18x4xf32>
      %c0_9 = arith.constant 0 : index
      %c17 = arith.constant 17 : index
      %c0_10 = arith.constant 0 : index
      %c0_11 = arith.constant 0 : index
      %14 = vector.load %arg9[%c0_9, %c17, %c0_10, %c0_11] : memref<1x18x18x4xf32, #tpu.memory_space<vmem>>, vector<1x1x18x4xf32>
      tpu.vector_store %arg9[%c0_9, %c17, %c0_10, %c0_11], %13 {strides = array<i32>} : memref<1x18x18x4xf32, #tpu.memory_space<vmem>>, vector<1x1x18x4xf32>,
      %cst_12 = arith.constant 0.000000e+00 : f32
      %15 = vector.broadcast %cst_12 : f32 to vector<1x18x1x4xf32>
      %c0_13 = arith.constant 0 : index
      %c0_14 = arith.constant 0 : index
      %c0_15 = arith.constant 0 : index
      %c0_16 = arith.constant 0 : index
      %16 = vector.load %arg9[%c0_13, %c0_14, %c0_15, %c0_16] : memref<1x18x18x4xf32, #tpu.memory_space<vmem>>, vector<1x18x1x4xf32>
      tpu.vector_store %arg9[%c0_13, %c0_14, %c0_15, %c0_16], %15 {strides = array<i32>} : memref<1x18x18x4xf32, #tpu.memory_space<vmem>>, vector<1x18x1x4xf32>,
      %cst_17 = arith.constant 0.000000e+00 : f32
      %17 = vector.broadcast %cst_17 : f32 to vector<1x18x1x4xf32>
      %c0_18 = arith.constant 0 : index
      %c0_19 = arith.constant 0 : index
      %c17_20 = arith.constant 17 : index
      %c0_21 = arith.constant 0 : index
      %18 = vector.load %arg9[%c0_18, %c0_19, %c17_20, %c0_21] : memref<1x18x18x4xf32, #tpu.memory_space<vmem>>, vector<1x18x1x4xf32>
      tpu.vector_store %arg9[%c0_18, %c0_19, %c17_20, %c0_21], %17 {strides = array<i32>} : memref<1x18x18x4xf32, #tpu.memory_space<vmem>>, vector<1x18x1x4xf32>,
      %cst_22 = arith.constant 0.000000e+00 : f32
      %19 = vector.broadcast %cst_22 : f32 to vector<1x1x10x8xf32>
      %c0_23 = arith.constant 0 : index
      %c0_24 = arith.constant 0 : index
      %c0_25 = arith.constant 0 : index
      %c0_26 = arith.constant 0 : index
      %20 = vector.load %arg10[%c0_23, %c0_24, %c0_25, %c0_26] : memref<1x10x10x8xf32, #tpu.memory_space<vmem>>, vector<1x1x10x8xf32>
      tpu.vector_store %arg10[%c0_23, %c0_24, %c0_25, %c0_26], %19 {strides = array<i32>} : memref<1x10x10x8xf32, #tpu.memory_space<vmem>>, vector<1x1x10x8xf32>,
      %cst_27 = arith.constant 0.000000e+00 : f32
      %21 = vector.broadcast %cst_27 : f32 to vector<1x1x10x8xf32>
      %c0_28 = arith.constant 0 : index
      %c9 = arith.constant 9 : index
      %c0_29 = arith.constant 0 : index
      %c0_30 = arith.constant 0 : index
      %22 = vector.load %arg10[%c0_28, %c9, %c0_29, %c0_30] : memref<1x10x10x8xf32, #tpu.memory_space<vmem>>, vector<1x1x10x8xf32>
      tpu.vector_store %arg10[%c0_28, %c9, %c0_29, %c0_30], %21 {strides = array<i32>} : memref<1x10x10x8xf32, #tpu.memory_space<vmem>>, vector<1x1x10x8xf32>,
      %cst_31 = arith.constant 0.000000e+00 : f32
      %23 = vector.broadcast %cst_31 : f32 to vector<1x10x1x8xf32>
      %c0_32 = arith.constant 0 : index
      %c0_33 = arith.constant 0 : index
      %c0_34 = arith.constant 0 : index
      %c0_35 = arith.constant 0 : index
      %24 = vector.load %arg10[%c0_32, %c0_33, %c0_34, %c0_35] : memref<1x10x10x8xf32, #tpu.memory_space<vmem>>, vector<1x10x1x8xf32>
      tpu.vector_store %arg10[%c0_32, %c0_33, %c0_34, %c0_35], %23 {strides = array<i32>} : memref<1x10x10x8xf32, #tpu.memory_space<vmem>>, vector<1x10x1x8xf32>,
      %cst_36 = arith.constant 0.000000e+00 : f32
      %25 = vector.broadcast %cst_36 : f32 to vector<1x10x1x8xf32>
      %c0_37 = arith.constant 0 : index
      %c0_38 = arith.constant 0 : index
      %c9_39 = arith.constant 9 : index
      %c0_40 = arith.constant 0 : index
      %26 = vector.load %arg10[%c0_37, %c0_38, %c9_39, %c0_40] : memref<1x10x10x8xf32, #tpu.memory_space<vmem>>, vector<1x10x1x8xf32>
      tpu.vector_store %arg10[%c0_37, %c0_38, %c9_39, %c0_40], %25 {strides = array<i32>} : memref<1x10x10x8xf32, #tpu.memory_space<vmem>>, vector<1x10x1x8xf32>,
      %cst_41 = arith.constant 0.000000e+00 : f32
      %27 = vector.broadcast %cst_41 : f32 to vector<2x4xf32>
      %c0_42 = arith.constant 0 : index
      %c0_43 = arith.constant 0 : index
      %28 = vector.load %arg12[%c0_42, %c0_43] : memref<2x4xf32, #tpu.memory_space<vmem>>, vector<2x4xf32>
      tpu.vector_store %arg12[%c0_42, %c0_43], %27 {strides = array<i32>} : memref<2x4xf32, #tpu.memory_space<vmem>>, vector<2x4xf32>,
    } else {
    }
    %c0_i32_2 = arith.constant 0 : i32
    %5 = arith.cmpi eq, %arg0, %c0_i32_2 : i32
    %6 = arith.extui %5 : i1 to i32
    %c0_i32_3 = arith.constant 0 : i32
    %7 = arith.cmpi ne, %6, %c0_i32_3 : i32
    scf.if %7 {
      %c0 = arith.constant 0 : index
      %c0_5 = arith.constant 0 : index
      %c0_6 = arith.constant 0 : index
      %c0_7 = arith.constant 0 : index
      %11 = vector.load %arg2[%c0, %c0_5, %c0_6, %c0_7] : memref<1x16x16x4xf32, #tpu.memory_space<vmem>>, vector<1x16x16x4xf32>
      %cst = arith.constant 0.000000e+00 : f32
      %12 = vector.broadcast %cst : f32 to vector<1x16x16x4xf32>
      %13 = arith.cmpf oge, %11, %12 : vector<1x16x16x4xf32>
      %cst_8 = arith.constant 2.000000e-01 : f32
      %14 = vector.broadcast %cst_8 : f32 to vector<1x16x16x4xf32>
      %15 = arith.mulf %14, %11 : vector<1x16x16x4xf32>
      %16 = arith.select %13, %11, %15 : vector<1x16x16x4xi1>, vector<1x16x16x4xf32>
      %c0_9 = arith.constant 0 : index
      %c1 = arith.constant 1 : index
      %c1_10 = arith.constant 1 : index
      %c0_11 = arith.constant 0 : index
      %17 = vector.load %arg9[%c0_9, %c1, %c1_10, %c0_11] : memref<1x18x18x4xf32, #tpu.memory_space<vmem>>, vector<1x16x16x4xf32>
      tpu.vector_store %arg9[%c0_9, %c1, %c1_10, %c0_11], %16 {strides = array<i32>} : memref<1x18x18x4xf32, #tpu.memory_space<vmem>>, vector<1x16x16x4xf32>,
      %c0_12 = arith.constant 0 : index
      %c0_13 = arith.constant 0 : index
      %c0_14 = arith.constant 0 : index
      %c0_15 = arith.constant 0 : index
      %18 = tpu.strided_load %arg9[%c0_12, %c0_13, %c0_14, %c0_15] {strides = array<i32: 1, 2, 2, 1>} : memref<1x18x18x4xf32, #tpu.memory_space<vmem>>, vector<1x9x9x4xf32>
      %c0_16 = arith.constant 0 : index
      %c0_17 = arith.constant 0 : index
      %c1_18 = arith.constant 1 : index
      %c0_19 = arith.constant 0 : index
      %19 = tpu.strided_load %arg9[%c0_16, %c0_17, %c1_18, %c0_19] {strides = array<i32: 1, 2, 2, 1>} : memref<1x18x18x4xf32, #tpu.memory_space<vmem>>, vector<1x9x9x4xf32>
      %c0_20 = arith.constant 0 : index
      %c1_21 = arith.constant 1 : index
      %c0_22 = arith.constant 0 : index
      %c0_23 = arith.constant 0 : index
      %20 = tpu.strided_load %arg9[%c0_20, %c1_21, %c0_22, %c0_23] {strides = array<i32: 1, 2, 2, 1>} : memref<1x18x18x4xf32, #tpu.memory_space<vmem>>, vector<1x9x9x4xf32>
      %c0_24 = arith.constant 0 : index
      %c1_25 = arith.constant 1 : index
      %c1_26 = arith.constant 1 : index
      %c0_27 = arith.constant 0 : index
      %21 = tpu.strided_load %arg9[%c0_24, %c1_25, %c1_26, %c0_27] {strides = array<i32: 1, 2, 2, 1>} : memref<1x18x18x4xf32, #tpu.memory_space<vmem>>, vector<1x9x9x4xf32>
      %22 = vector.extract_strided_slice %18 {offsets = [0, 0, 0, 0], sizes = [1, 8, 8, 4], strides = [1, 1, 1, 1]} : vector<1x9x9x4xf32> to vector<1x8x8x4xf32>
      %23 = vector.shape_cast %22 : vector<1x8x8x4xf32> to vector<64x4xf32>
      %24 = vector.extract_strided_slice %19 {offsets = [0, 0, 0, 0], sizes = [1, 8, 8, 4], strides = [1, 1, 1, 1]} : vector<1x9x9x4xf32> to vector<1x8x8x4xf32>
      %25 = vector.shape_cast %24 : vector<1x8x8x4xf32> to vector<64x4xf32>
      %26 = vector.extract_strided_slice %18 {offsets = [0, 0, 1, 0], sizes = [1, 8, 8, 4], strides = [1, 1, 1, 1]} : vector<1x9x9x4xf32> to vector<1x8x8x4xf32>
      %27 = vector.shape_cast %26 : vector<1x8x8x4xf32> to vector<64x4xf32>
      %28 = vector.extract_strided_slice %19 {offsets = [0, 0, 1, 0], sizes = [1, 8, 8, 4], strides = [1, 1, 1, 1]} : vector<1x9x9x4xf32> to vector<1x8x8x4xf32>
      %29 = vector.shape_cast %28 : vector<1x8x8x4xf32> to vector<64x4xf32>
      %30 = vector.extract_strided_slice %20 {offsets = [0, 0, 0, 0], sizes = [1, 8, 8, 4], strides = [1, 1, 1, 1]} : vector<1x9x9x4xf32> to vector<1x8x8x4xf32>
      %31 = vector.shape_cast %30 : vector<1x8x8x4xf32> to vector<64x4xf32>
      %32 = vector.extract_strided_slice %21 {offsets = [0, 0, 0, 0], sizes = [1, 8, 8, 4], strides = [1, 1, 1, 1]} : vector<1x9x9x4xf32> to vector<1x8x8x4xf32>
      %33 = vector.shape_cast %32 : vector<1x8x8x4xf32> to vector<64x4xf32>
      %34 = vector.extract_strided_slice %20 {offsets = [0, 0, 1, 0], sizes = [1, 8, 8, 4], strides = [1, 1, 1, 1]} : vector<1x9x9x4xf32> to vector<1x8x8x4xf32>
      %35 = vector.shape_cast %34 : vector<1x8x8x4xf32> to vector<64x4xf32>
      %36 = vector.extract_strided_slice %21 {offsets = [0, 0, 1, 0], sizes = [1, 8, 8, 4], strides = [1, 1, 1, 1]} : vector<1x9x9x4xf32> to vector<1x8x8x4xf32>
      %37 = vector.shape_cast %36 : vector<1x8x8x4xf32> to vector<64x4xf32>
      %38 = vector.extract_strided_slice %18 {offsets = [0, 1, 0, 0], sizes = [1, 8, 8, 4], strides = [1, 1, 1, 1]} : vector<1x9x9x4xf32> to vector<1x8x8x4xf32>
      %39 = vector.shape_cast %38 : vector<1x8x8x4xf32> to vector<64x4xf32>
      %40 = vector.extract_strided_slice %19 {offsets = [0, 1, 0, 0], sizes = [1, 8, 8, 4], strides = [1, 1, 1, 1]} : vector<1x9x9x4xf32> to vector<1x8x8x4xf32>
      %41 = vector.shape_cast %40 : vector<1x8x8x4xf32> to vector<64x4xf32>
      %42 = vector.extract_strided_slice %18 {offsets = [0, 1, 1, 0], sizes = [1, 8, 8, 4], strides = [1, 1, 1, 1]} : vector<1x9x9x4xf32> to vector<1x8x8x4xf32>
      %43 = vector.shape_cast %42 : vector<1x8x8x4xf32> to vector<64x4xf32>
      %44 = vector.extract_strided_slice %19 {offsets = [0, 1, 1, 0], sizes = [1, 8, 8, 4], strides = [1, 1, 1, 1]} : vector<1x9x9x4xf32> to vector<1x8x8x4xf32>
      %45 = vector.shape_cast %44 : vector<1x8x8x4xf32> to vector<64x4xf32>
      %46 = vector.extract_strided_slice %20 {offsets = [0, 1, 0, 0], sizes = [1, 8, 8, 4], strides = [1, 1, 1, 1]} : vector<1x9x9x4xf32> to vector<1x8x8x4xf32>
      %47 = vector.shape_cast %46 : vector<1x8x8x4xf32> to vector<64x4xf32>
      %48 = vector.extract_strided_slice %21 {offsets = [0, 1, 0, 0], sizes = [1, 8, 8, 4], strides = [1, 1, 1, 1]} : vector<1x9x9x4xf32> to vector<1x8x8x4xf32>
      %49 = vector.shape_cast %48 : vector<1x8x8x4xf32> to vector<64x4xf32>
      %50 = vector.extract_strided_slice %20 {offsets = [0, 1, 1, 0], sizes = [1, 8, 8, 4], strides = [1, 1, 1, 1]} : vector<1x9x9x4xf32> to vector<1x8x8x4xf32>
      %51 = vector.shape_cast %50 : vector<1x8x8x4xf32> to vector<64x4xf32>
      %52 = vector.extract_strided_slice %21 {offsets = [0, 1, 1, 0], sizes = [1, 8, 8, 4], strides = [1, 1, 1, 1]} : vector<1x9x9x4xf32> to vector<1x8x8x4xf32>
      %53 = vector.shape_cast %52 : vector<1x8x8x4xf32> to vector<64x4xf32>
      %54 = tpu.concatenate %23, %25, %27, %29, %31, %33, %35, %37, %39, %41, %43, %45, %47, %49, %51, %53 in 1 : vector<64x4xf32>, vector<64x4xf32>, vector<64x4xf32>, vector<64x4xf32>, vector<64x4xf32>, vector<64x4xf32>, vector<64x4xf32>, vector<64x4xf32>, vector<64x4xf32>, vector<64x4xf32>, vector<64x4xf32>, vector<64x4xf32>, vector<64x4xf32>, vector<64x4xf32>, vector<64x4xf32>, vector<64x4xf32> -> vector<64x64xf32>
      %55 = arith.truncf %54 : vector<64x64xf32> to vector<64x64xbf16>
      %c0_28 = arith.constant 0 : index
      %c0_29 = arith.constant 0 : index
      %56 = vector.load %arg3[%c0_28, %c0_29] : memref<64x8xbf16, #tpu.memory_space<vmem>>, vector<64x8xbf16>
      %cst_30 = arith.constant dense<0.000000e+00> : vector<64x8xf32>
      %57 = tpu.matmul %55, %56, %cst_30 {dimension_numbers = #tpu.dot_dimension_numbers<[1], [0], [0], [1], [0, 0, 1, 1], [], []>} : vector<64x64xbf16>, vector<64x8xbf16>, vector<64x8xf32> -> vector<64x8xf32>
      %c0_31 = arith.constant 0 : index
      %c0_32 = arith.constant 0 : index
      %58 = vector.load %arg4[%c0_31, %c0_32] : memref<1x8xf32, #tpu.memory_space<vmem>>, vector<1x8xf32>
      %59 = vector.broadcast %58 : vector<1x8xf32> to vector<64x8xf32>
      %60 = arith.addf %57, %59 : vector<64x8xf32>
      %cst_33 = arith.constant 0.000000e+00 : f32
      %61 = vector.broadcast %cst_33 : f32 to vector<64x8xf32>
      %62 = arith.maximumf %60, %61 : vector<64x8xf32>
      %63 = vector.shape_cast %62 : vector<64x8xf32> to vector<1x8x8x8xf32>
      %c0_34 = arith.constant 0 : index
      %c1_35 = arith.constant 1 : index
      %c1_36 = arith.constant 1 : index
      %c0_37 = arith.constant 0 : index
      %64 = vector.load %arg10[%c0_34, %c1_35, %c1_36, %c0_37] : memref<1x10x10x8xf32, #tpu.memory_space<vmem>>, vector<1x8x8x8xf32>
      tpu.vector_store %arg10[%c0_34, %c1_35, %c1_36, %c0_37], %63 {strides = array<i32>} : memref<1x10x10x8xf32, #tpu.memory_space<vmem>>, vector<1x8x8x8xf32>,
      %cst_38 = arith.constant 0.000000e+00 : f32
      %65 = vector.broadcast %cst_38 : f32 to vector<1x4xf32>
      %cst_39 = arith.constant 0.000000e+00 : f32
      %66 = vector.broadcast %cst_39 : f32 to vector<1x4xf32>
      %c0_40 = arith.constant 0 : index
      %c1_41 = arith.constant 1 : index
      %c1_42 = arith.constant 1 : index
      %c0_43 = arith.constant 0 : index
      %67 = vector.load %arg10[%c0_40, %c1_41, %c1_42, %c0_43] : memref<1x10x10x8xf32, #tpu.memory_space<vmem>>, vector<1x8x8x8xf32>
      %68 = vector.shape_cast %67 : vector<1x8x8x8xf32> to vector<64x8xf32>
      %c0_44 = arith.constant 0 : index
      %c1_45 = arith.constant 1 : index
      %c0_46 = arith.constant 0 : index
      %c0_47 = arith.constant 0 : index
      %69 = vector.load %arg10[%c0_44, %c1_45, %c0_46, %c0_47] : memref<1x10x10x8xf32, #tpu.memory_space<vmem>>, vector<1x8x8x8xf32>
      %70 = vector.shape_cast %69 : vector<1x8x8x8xf32> to vector<64x8xf32>
      %c0_48 = arith.constant 0 : index
      %c0_49 = arith.constant 0 : index
      %c1_50 = arith.constant 1 : index
      %c0_51 = arith.constant 0 : index
      %71 = vector.load %arg10[%c0_48, %c0_49, %c1_50, %c0_51] : memref<1x10x10x8xf32, #tpu.memory_space<vmem>>, vector<1x8x8x8xf32>
      %72 = vector.shape_cast %71 : vector<1x8x8x8xf32> to vector<64x8xf32>
      %c0_52 = arith.constant 0 : index
      %c0_53 = arith.constant 0 : index
      %c0_54 = arith.constant 0 : index
      %c0_55 = arith.constant 0 : index
      %73 = vector.load %arg10[%c0_52, %c0_53, %c0_54, %c0_55] : memref<1x10x10x8xf32, #tpu.memory_space<vmem>>, vector<1x8x8x8xf32>
      %74 = vector.shape_cast %73 : vector<1x8x8x8xf32> to vector<64x8xf32>
      %75 = tpu.concatenate %68, %70, %72, %74 in 1 : vector<64x8xf32>, vector<64x8xf32>, vector<64x8xf32>, vector<64x8xf32> -> vector<64x32xf32>
      %76 = arith.truncf %75 : vector<64x32xf32> to vector<64x32xbf16>
      %c0_56 = arith.constant 0 : index
      %c0_57 = arith.constant 0 : index
      %c0_58 = arith.constant 0 : index
      %77 = vector.load %arg5[%c0_56, %c0_57, %c0_58] : memref<4x32x4xbf16, #tpu.memory_space<vmem>>, vector<1x32x4xbf16>
      %78 = vector.shape_cast %77 : vector<1x32x4xbf16> to vector<32x4xbf16>
      %cst_59 = arith.constant dense<0.000000e+00> : vector<64x4xf32>
      %79 = tpu.matmul %76, %78, %cst_59 {dimension_numbers = #tpu.dot_dimension_numbers<[1], [0], [0], [1], [0, 0, 1, 1], [], []>} : vector<64x32xbf16>, vector<32x4xbf16>, vector<64x4xf32> -> vector<64x4xf32>
      %80 = vector.shape_cast %79 : vector<64x4xf32> to vector<1x8x8x4xf32>
      %81 = arith.index_cast %arg1 : i32 to index
      %c0_60 = arith.constant 0 : index
      %c0_61 = arith.constant 0 : index
      %c0_62 = arith.constant 0 : index
      %82 = tpu.strided_load %arg11[%81, %c0_60, %c0_61, %c0_62] {strides = array<i32: 1, 2, 2, 1>} : memref<2x16x16x4xf32, #tpu.memory_space<vmem>>, vector<1x8x8x4xf32>
      tpu.strided_store %arg11[%81, %c0_60, %c0_61, %c0_62], %80 {strides = array<i32: 1, 2, 2, 1>} : memref<2x16x16x4xf32, #tpu.memory_space<vmem>>, vector<1x8x8x4xf32>
      %cst_63 = arith.constant dense<0.000000e+00> : vector<4xf32>
      %83 = vector.multi_reduction <add>, %79, %cst_63 [0] : vector<64x4xf32> to vector<4xf32>
      %84 = vector.shape_cast %83 : vector<4xf32> to vector<1x4xf32>
      %85 = arith.addf %65, %84 : vector<1x4xf32>
      %86 = arith.mulf %79, %79 : vector<64x4xf32>
      %cst_64 = arith.constant dense<0.000000e+00> : vector<4xf32>
      %87 = vector.multi_reduction <add>, %86, %cst_64 [0] : vector<64x4xf32> to vector<4xf32>
      %88 = vector.shape_cast %87 : vector<4xf32> to vector<1x4xf32>
      %89 = arith.addf %66, %88 : vector<1x4xf32>
      %c0_65 = arith.constant 0 : index
      %c1_66 = arith.constant 1 : index
      %c2 = arith.constant 2 : index
      %c0_67 = arith.constant 0 : index
      %90 = vector.load %arg10[%c0_65, %c1_66, %c2, %c0_67] : memref<1x10x10x8xf32, #tpu.memory_space<vmem>>, vector<1x8x8x8xf32>
      %91 = vector.shape_cast %90 : vector<1x8x8x8xf32> to vector<64x8xf32>
      %c0_68 = arith.constant 0 : index
      %c1_69 = arith.constant 1 : index
      %c1_70 = arith.constant 1 : index
      %c0_71 = arith.constant 0 : index
      %92 = vector.load %arg10[%c0_68, %c1_69, %c1_70, %c0_71] : memref<1x10x10x8xf32, #tpu.memory_space<vmem>>, vector<1x8x8x8xf32>
      %93 = vector.shape_cast %92 : vector<1x8x8x8xf32> to vector<64x8xf32>
      %c0_72 = arith.constant 0 : index
      %c0_73 = arith.constant 0 : index
      %c2_74 = arith.constant 2 : index
      %c0_75 = arith.constant 0 : index
      %94 = vector.load %arg10[%c0_72, %c0_73, %c2_74, %c0_75] : memref<1x10x10x8xf32, #tpu.memory_space<vmem>>, vector<1x8x8x8xf32>
      %95 = vector.shape_cast %94 : vector<1x8x8x8xf32> to vector<64x8xf32>
      %c0_76 = arith.constant 0 : index
      %c0_77 = arith.constant 0 : index
      %c1_78 = arith.constant 1 : index
      %c0_79 = arith.constant 0 : index
      %96 = vector.load %arg10[%c0_76, %c0_77, %c1_78, %c0_79] : memref<1x10x10x8xf32, #tpu.memory_space<vmem>>, vector<1x8x8x8xf32>
      %97 = vector.shape_cast %96 : vector<1x8x8x8xf32> to vector<64x8xf32>
      %98 = tpu.concatenate %91, %93, %95, %97 in 1 : vector<64x8xf32>, vector<64x8xf32>, vector<64x8xf32>, vector<64x8xf32> -> vector<64x32xf32>
      %99 = arith.truncf %98 : vector<64x32xf32> to vector<64x32xbf16>
      %c1_80 = arith.constant 1 : index
      %c0_81 = arith.constant 0 : index
      %c0_82 = arith.constant 0 : index
      %100 = vector.load %arg5[%c1_80, %c0_81, %c0_82] : memref<4x32x4xbf16, #tpu.memory_space<vmem>>, vector<1x32x4xbf16>
      %101 = vector.shape_cast %100 : vector<1x32x4xbf16> to vector<32x4xbf16>
      %cst_83 = arith.constant dense<0.000000e+00> : vector<64x4xf32>
      %102 = tpu.matmul %99, %101, %cst_83 {dimension_numbers = #tpu.dot_dimension_numbers<[1], [0], [0], [1], [0, 0, 1, 1], [], []>} : vector<64x32xbf16>, vector<32x4xbf16>, vector<64x4xf32> -> vector<64x4xf32>
      %103 = vector.shape_cast %102 : vector<64x4xf32> to vector<1x8x8x4xf32>
      %104 = arith.index_cast %arg1 : i32 to index
      %c0_84 = arith.constant 0 : index
      %c1_85 = arith.constant 1 : index
      %c0_86 = arith.constant 0 : index
      %105 = tpu.strided_load %arg11[%104, %c0_84, %c1_85, %c0_86] {strides = array<i32: 1, 2, 2, 1>} : memref<2x16x16x4xf32, #tpu.memory_space<vmem>>, vector<1x8x8x4xf32>
      tpu.strided_store %arg11[%104, %c0_84, %c1_85, %c0_86], %103 {strides = array<i32: 1, 2, 2, 1>} : memref<2x16x16x4xf32, #tpu.memory_space<vmem>>, vector<1x8x8x4xf32>
      %cst_87 = arith.constant dense<0.000000e+00> : vector<4xf32>
      %106 = vector.multi_reduction <add>, %102, %cst_87 [0] : vector<64x4xf32> to vector<4xf32>
      %107 = vector.shape_cast %106 : vector<4xf32> to vector<1x4xf32>
      %108 = arith.addf %85, %107 : vector<1x4xf32>
      %109 = arith.mulf %102, %102 : vector<64x4xf32>
      %cst_88 = arith.constant dense<0.000000e+00> : vector<4xf32>
      %110 = vector.multi_reduction <add>, %109, %cst_88 [0] : vector<64x4xf32> to vector<4xf32>
      %111 = vector.shape_cast %110 : vector<4xf32> to vector<1x4xf32>
      %112 = arith.addf %89, %111 : vector<1x4xf32>
      %c0_89 = arith.constant 0 : index
      %c2_90 = arith.constant 2 : index
      %c1_91 = arith.constant 1 : index
      %c0_92 = arith.constant 0 : index
      %113 = vector.load %arg10[%c0_89, %c2_90, %c1_91, %c0_92] : memref<1x10x10x8xf32, #tpu.memory_space<vmem>>, vector<1x8x8x8xf32>
      %114 = vector.shape_cast %113 : vector<1x8x8x8xf32> to vector<64x8xf32>
      %c0_93 = arith.constant 0 : index
      %c2_94 = arith.constant 2 : index
      %c0_95 = arith.constant 0 : index
      %c0_96 = arith.constant 0 : index
      %115 = vector.load %arg10[%c0_93, %c2_94, %c0_95, %c0_96] : memref<1x10x10x8xf32, #tpu.memory_space<vmem>>, vector<1x8x8x8xf32>
      %116 = vector.shape_cast %115 : vector<1x8x8x8xf32> to vector<64x8xf32>
      %c0_97 = arith.constant 0 : index
      %c1_98 = arith.constant 1 : index
      %c1_99 = arith.constant 1 : index
      %c0_100 = arith.constant 0 : index
      %117 = vector.load %arg10[%c0_97, %c1_98, %c1_99, %c0_100] : memref<1x10x10x8xf32, #tpu.memory_space<vmem>>, vector<1x8x8x8xf32>
      %118 = vector.shape_cast %117 : vector<1x8x8x8xf32> to vector<64x8xf32>
      %c0_101 = arith.constant 0 : index
      %c1_102 = arith.constant 1 : index
      %c0_103 = arith.constant 0 : index
      %c0_104 = arith.constant 0 : index
      %119 = vector.load %arg10[%c0_101, %c1_102, %c0_103, %c0_104] : memref<1x10x10x8xf32, #tpu.memory_space<vmem>>, vector<1x8x8x8xf32>
      %120 = vector.shape_cast %119 : vector<1x8x8x8xf32> to vector<64x8xf32>
      %121 = tpu.concatenate %114, %116, %118, %120 in 1 : vector<64x8xf32>, vector<64x8xf32>, vector<64x8xf32>, vector<64x8xf32> -> vector<64x32xf32>
      %122 = arith.truncf %121 : vector<64x32xf32> to vector<64x32xbf16>
      %c2_105 = arith.constant 2 : index
      %c0_106 = arith.constant 0 : index
      %c0_107 = arith.constant 0 : index
      %123 = vector.load %arg5[%c2_105, %c0_106, %c0_107] : memref<4x32x4xbf16, #tpu.memory_space<vmem>>, vector<1x32x4xbf16>
      %124 = vector.shape_cast %123 : vector<1x32x4xbf16> to vector<32x4xbf16>
      %cst_108 = arith.constant dense<0.000000e+00> : vector<64x4xf32>
      %125 = tpu.matmul %122, %124, %cst_108 {dimension_numbers = #tpu.dot_dimension_numbers<[1], [0], [0], [1], [0, 0, 1, 1], [], []>} : vector<64x32xbf16>, vector<32x4xbf16>, vector<64x4xf32> -> vector<64x4xf32>
      %126 = vector.shape_cast %125 : vector<64x4xf32> to vector<1x8x8x4xf32>
      %127 = arith.index_cast %arg1 : i32 to index
      %c1_109 = arith.constant 1 : index
      %c0_110 = arith.constant 0 : index
      %c0_111 = arith.constant 0 : index
      %128 = tpu.strided_load %arg11[%127, %c1_109, %c0_110, %c0_111] {strides = array<i32: 1, 2, 2, 1>} : memref<2x16x16x4xf32, #tpu.memory_space<vmem>>, vector<1x8x8x4xf32>
      tpu.strided_store %arg11[%127, %c1_109, %c0_110, %c0_111], %126 {strides = array<i32: 1, 2, 2, 1>} : memref<2x16x16x4xf32, #tpu.memory_space<vmem>>, vector<1x8x8x4xf32>
      %cst_112 = arith.constant dense<0.000000e+00> : vector<4xf32>
      %129 = vector.multi_reduction <add>, %125, %cst_112 [0] : vector<64x4xf32> to vector<4xf32>
      %130 = vector.shape_cast %129 : vector<4xf32> to vector<1x4xf32>
      %131 = arith.addf %108, %130 : vector<1x4xf32>
      %132 = arith.mulf %125, %125 : vector<64x4xf32>
      %cst_113 = arith.constant dense<0.000000e+00> : vector<4xf32>
      %133 = vector.multi_reduction <add>, %132, %cst_113 [0] : vector<64x4xf32> to vector<4xf32>
      %134 = vector.shape_cast %133 : vector<4xf32> to vector<1x4xf32>
      %135 = arith.addf %112, %134 : vector<1x4xf32>
      %c0_114 = arith.constant 0 : index
      %c2_115 = arith.constant 2 : index
      %c2_116 = arith.constant 2 : index
      %c0_117 = arith.constant 0 : index
      %136 = vector.load %arg10[%c0_114, %c2_115, %c2_116, %c0_117] : memref<1x10x10x8xf32, #tpu.memory_space<vmem>>, vector<1x8x8x8xf32>
      %137 = vector.shape_cast %136 : vector<1x8x8x8xf32> to vector<64x8xf32>
      %c0_118 = arith.constant 0 : index
      %c2_119 = arith.constant 2 : index
      %c1_120 = arith.constant 1 : index
      %c0_121 = arith.constant 0 : index
      %138 = vector.load %arg10[%c0_118, %c2_119, %c1_120, %c0_121] : memref<1x10x10x8xf32, #tpu.memory_space<vmem>>, vector<1x8x8x8xf32>
      %139 = vector.shape_cast %138 : vector<1x8x8x8xf32> to vector<64x8xf32>
      %c0_122 = arith.constant 0 : index
      %c1_123 = arith.constant 1 : index
      %c2_124 = arith.constant 2 : index
      %c0_125 = arith.constant 0 : index
      %140 = vector.load %arg10[%c0_122, %c1_123, %c2_124, %c0_125] : memref<1x10x10x8xf32, #tpu.memory_space<vmem>>, vector<1x8x8x8xf32>
      %141 = vector.shape_cast %140 : vector<1x8x8x8xf32> to vector<64x8xf32>
      %c0_126 = arith.constant 0 : index
      %c1_127 = arith.constant 1 : index
      %c1_128 = arith.constant 1 : index
      %c0_129 = arith.constant 0 : index
      %142 = vector.load %arg10[%c0_126, %c1_127, %c1_128, %c0_129] : memref<1x10x10x8xf32, #tpu.memory_space<vmem>>, vector<1x8x8x8xf32>
      %143 = vector.shape_cast %142 : vector<1x8x8x8xf32> to vector<64x8xf32>
      %144 = tpu.concatenate %137, %139, %141, %143 in 1 : vector<64x8xf32>, vector<64x8xf32>, vector<64x8xf32>, vector<64x8xf32> -> vector<64x32xf32>
      %145 = arith.truncf %144 : vector<64x32xf32> to vector<64x32xbf16>
      %c3 = arith.constant 3 : index
      %c0_130 = arith.constant 0 : index
      %c0_131 = arith.constant 0 : index
      %146 = vector.load %arg5[%c3, %c0_130, %c0_131] : memref<4x32x4xbf16, #tpu.memory_space<vmem>>, vector<1x32x4xbf16>
      %147 = vector.shape_cast %146 : vector<1x32x4xbf16> to vector<32x4xbf16>
      %cst_132 = arith.constant dense<0.000000e+00> : vector<64x4xf32>
      %148 = tpu.matmul %145, %147, %cst_132 {dimension_numbers = #tpu.dot_dimension_numbers<[1], [0], [0], [1], [0, 0, 1, 1], [], []>} : vector<64x32xbf16>, vector<32x4xbf16>, vector<64x4xf32> -> vector<64x4xf32>
      %149 = vector.shape_cast %148 : vector<64x4xf32> to vector<1x8x8x4xf32>
      %150 = arith.index_cast %arg1 : i32 to index
      %c1_133 = arith.constant 1 : index
      %c1_134 = arith.constant 1 : index
      %c0_135 = arith.constant 0 : index
      %151 = tpu.strided_load %arg11[%150, %c1_133, %c1_134, %c0_135] {strides = array<i32: 1, 2, 2, 1>} : memref<2x16x16x4xf32, #tpu.memory_space<vmem>>, vector<1x8x8x4xf32>
      tpu.strided_store %arg11[%150, %c1_133, %c1_134, %c0_135], %149 {strides = array<i32: 1, 2, 2, 1>} : memref<2x16x16x4xf32, #tpu.memory_space<vmem>>, vector<1x8x8x4xf32>
      %cst_136 = arith.constant dense<0.000000e+00> : vector<4xf32>
      %152 = vector.multi_reduction <add>, %148, %cst_136 [0] : vector<64x4xf32> to vector<4xf32>
      %153 = vector.shape_cast %152 : vector<4xf32> to vector<1x4xf32>
      %154 = arith.addf %131, %153 : vector<1x4xf32>
      %155 = arith.mulf %148, %148 : vector<64x4xf32>
      %cst_137 = arith.constant dense<0.000000e+00> : vector<4xf32>
      %156 = vector.multi_reduction <add>, %155, %cst_137 [0] : vector<64x4xf32> to vector<4xf32>
      %157 = vector.shape_cast %156 : vector<4xf32> to vector<1x4xf32>
      %158 = arith.addf %135, %157 : vector<1x4xf32>
      %c0_138 = arith.constant 0 : index
      %c0_139 = arith.constant 0 : index
      %159 = vector.load %arg12[%c0_138, %c0_139] : memref<2x4xf32, #tpu.memory_space<vmem>>, vector<1x4xf32>
      %160 = arith.addf %159, %154 : vector<1x4xf32>
      %c0_140 = arith.constant 0 : index
      %c0_141 = arith.constant 0 : index
      %161 = vector.load %arg12[%c0_140, %c0_141] : memref<2x4xf32, #tpu.memory_space<vmem>>, vector<1x4xf32>
      tpu.vector_store %arg12[%c0_140, %c0_141], %160 {strides = array<i32>} : memref<2x4xf32, #tpu.memory_space<vmem>>, vector<1x4xf32>,
      %c1_142 = arith.constant 1 : index
      %c0_143 = arith.constant 0 : index
      %162 = vector.load %arg12[%c1_142, %c0_143] : memref<2x4xf32, #tpu.memory_space<vmem>>, vector<1x4xf32>
      %163 = arith.addf %162, %158 : vector<1x4xf32>
      %c1_144 = arith.constant 1 : index
      %c0_145 = arith.constant 0 : index
      %164 = vector.load %arg12[%c1_144, %c0_145] : memref<2x4xf32, #tpu.memory_space<vmem>>, vector<1x4xf32>
      tpu.vector_store %arg12[%c1_144, %c0_145], %163 {strides = array<i32>} : memref<2x4xf32, #tpu.memory_space<vmem>>, vector<1x4xf32>,
    } else {
    }
    %c1_i32 = arith.constant 1 : i32
    %8 = arith.cmpi eq, %arg0, %c1_i32 : i32
    %9 = arith.extui %8 : i1 to i32
    %c0_i32_4 = arith.constant 0 : i32
    %10 = arith.cmpi ne, %9, %c0_i32_4 : i32
    scf.if %10 {
      %c0 = arith.constant 0 : index
      %c0_5 = arith.constant 0 : index
      %c0_6 = arith.constant 0 : index
      %c0_7 = arith.constant 0 : index
      %11 = vector.load %arg2[%c0, %c0_5, %c0_6, %c0_7] : memref<1x16x16x4xf32, #tpu.memory_space<vmem>>, vector<1x16x16x4xf32>
      %c0_8 = arith.constant 0 : index
      %c0_9 = arith.constant 0 : index
      %c0_10 = arith.constant 0 : index
      %c4 = arith.constant 4 : index
      %12 = vector.load %arg8[%c0_8, %c0_9, %c0_10, %c4] : memref<1x16x16x8xf32, #tpu.memory_space<vmem>>, vector<1x16x16x4xf32>
      tpu.vector_store %arg8[%c0_8, %c0_9, %c0_10, %c4], %11 {strides = array<i32>} : memref<1x16x16x8xf32, #tpu.memory_space<vmem>>, vector<1x16x16x4xf32>,
      %c0_11 = arith.constant 0 : index
      %c0_12 = arith.constant 0 : index
      %13 = vector.load %arg12[%c0_11, %c0_12] : memref<2x4xf32, #tpu.memory_space<vmem>>, vector<1x4xf32>
      %cst = arith.constant 0.001953125 : f32
      %14 = vector.broadcast %cst : f32 to vector<1x4xf32>
      %15 = arith.mulf %13, %14 : vector<1x4xf32>
      %c1 = arith.constant 1 : index
      %c0_13 = arith.constant 0 : index
      %16 = vector.load %arg12[%c1, %c0_13] : memref<2x4xf32, #tpu.memory_space<vmem>>, vector<1x4xf32>
      %cst_14 = arith.constant 0.001953125 : f32
      %17 = vector.broadcast %cst_14 : f32 to vector<1x4xf32>
      %18 = arith.mulf %16, %17 : vector<1x4xf32>
      %19 = arith.mulf %15, %15 : vector<1x4xf32>
      %20 = arith.subf %18, %19 : vector<1x4xf32>
      %c0_15 = arith.constant 0 : index
      %c0_16 = arith.constant 0 : index
      %21 = vector.load %arg6[%c0_15, %c0_16] : memref<1x4xf32, #tpu.memory_space<vmem>>, vector<1x4xf32>
      %cst_17 = arith.constant 9.99999974E-6 : f32
      %22 = vector.broadcast %cst_17 : f32 to vector<1x4xf32>
      %23 = arith.addf %20, %22 : vector<1x4xf32>
      %24 = math.rsqrt %23 : vector<1x4xf32>
      %25 = arith.mulf %21, %24 : vector<1x4xf32>
      %c0_18 = arith.constant 0 : index
      %c0_19 = arith.constant 0 : index
      %26 = vector.load %arg7[%c0_18, %c0_19] : memref<1x4xf32, #tpu.memory_space<vmem>>, vector<1x4xf32>
      %27 = arith.mulf %15, %25 : vector<1x4xf32>
      %28 = arith.subf %26, %27 : vector<1x4xf32>
      %29 = arith.index_cast %arg1 : i32 to index
      %c0_20 = arith.constant 0 : index
      %c0_21 = arith.constant 0 : index
      %c0_22 = arith.constant 0 : index
      %30 = vector.load %arg11[%29, %c0_20, %c0_21, %c0_22] : memref<2x16x16x4xf32, #tpu.memory_space<vmem>>, vector<1x16x16x4xf32>
      %31 = vector.shape_cast %25 : vector<1x4xf32> to vector<1x1x1x4xf32>
      %32 = vector.broadcast %31 : vector<1x1x1x4xf32> to vector<1x16x16x4xf32>
      %33 = arith.mulf %30, %32 : vector<1x16x16x4xf32>
      %34 = vector.shape_cast %28 : vector<1x4xf32> to vector<1x1x1x4xf32>
      %35 = vector.broadcast %34 : vector<1x1x1x4xf32> to vector<1x16x16x4xf32>
      %36 = arith.addf %33, %35 : vector<1x16x16x4xf32>
      %c0_23 = arith.constant 0 : index
      %c0_24 = arith.constant 0 : index
      %c0_25 = arith.constant 0 : index
      %c0_26 = arith.constant 0 : index
      %37 = vector.load %arg8[%c0_23, %c0_24, %c0_25, %c0_26] : memref<1x16x16x8xf32, #tpu.memory_space<vmem>>, vector<1x16x16x4xf32>
      tpu.vector_store %arg8[%c0_23, %c0_24, %c0_25, %c0_26], %36 {strides = array<i32>} : memref<1x16x16x8xf32, #tpu.memory_space<vmem>>, vector<1x16x16x4xf32>,
    } else {
    }
    return
  }
  func.func @transform_0(%arg0: i32, %arg1: i32) -> (i32, i32, i32, i32) {
    %c0_i32 = arith.constant 0 : i32
    %c0_i32_0 = arith.constant 0 : i32
    %c0_i32_1 = arith.constant 0 : i32
    %c0_i32_2 = arith.constant 0 : i32
    return %arg1, %c0_i32, %c0_i32_0, %c0_i32_1 : i32, i32, i32, i32
  }
  func.func @transform_1(%arg0: i32, %arg1: i32) -> (i32, i32) {
    %c0_i32 = arith.constant 0 : i32
    %c0_i32_0 = arith.constant 0 : i32
    %c0_i32_1 = arith.constant 0 : i32
    return %c0_i32, %c0_i32_0 : i32, i32
  }
  func.func @transform_2(%arg0: i32, %arg1: i32) -> (i32, i32) {
    %c0_i32 = arith.constant 0 : i32
    %c0_i32_0 = arith.constant 0 : i32
    %c0_i32_1 = arith.constant 0 : i32
    return %c0_i32, %c0_i32_0 : i32, i32
  }
  func.func @transform_3(%arg0: i32, %arg1: i32) -> (i32, i32, i32) {
    %c0_i32 = arith.constant 0 : i32
    %c0_i32_0 = arith.constant 0 : i32
    %c0_i32_1 = arith.constant 0 : i32
    %c0_i32_2 = arith.constant 0 : i32
    return %c0_i32, %c0_i32_0, %c0_i32_1 : i32, i32, i32
  }
  func.func @transform_4(%arg0: i32, %arg1: i32) -> (i32, i32) {
    %c0_i32 = arith.constant 0 : i32
    %c0_i32_0 = arith.constant 0 : i32
    %c0_i32_1 = arith.constant 0 : i32
    return %c0_i32, %c0_i32_0 : i32, i32
  }
  func.func @transform_5(%arg0: i32, %arg1: i32) -> (i32, i32) {
    %c0_i32 = arith.constant 0 : i32
    %c0_i32_0 = arith.constant 0 : i32
    %c0_i32_1 = arith.constant 0 : i32
    return %c0_i32, %c0_i32_0 : i32, i32
  }
  func.func @transform_6(%arg0: i32, %arg1: i32) -> (i32, i32, i32, i32) {
    %0 = arith.muli %arg1, %arg0 : i32
    %c0_i32 = arith.constant 0 : i32
    %c0_i32_0 = arith.constant 0 : i32
    %c0_i32_1 = arith.constant 0 : i32
    %c0_i32_2 = arith.constant 0 : i32
    return %0, %c0_i32, %c0_i32_0, %c0_i32_1 : i32, i32, i32, i32
  }
}

</mosaic_0001>

<bundles_post_ra>
// kernel: res_unet_innermost_forward.1
= control target key start
LH: loop header
LB: loop body
LE: loop exit
PB: predicated region body
PF: predicated region fallthrough
CT: control target
= control target key end

     0   :  { %s4126_s21 = smov 0   ;;  %s4128_s22 = smov 0   ;;  %s5862_s0 = inlined_call_operand.vmem [shape: f32[2,16,16,4], index: 0, kind: input, shape index: {}]   ;;  %s5863_s1 = inlined_call_operand.vmem [shape: bf16[64,8], index: 1, kind: input, shape index: {}]   ;;  %s5864_s2 = inlined_call_operand.vmem [shape: f32[1,8], index: 2, kind: input, shape index: {}]   ;;  %s5865_s3 = inlined_call_operand.vmem [shape: bf16[4,32,4], index: 3, kind: input, shape index: {}]   ;;  %s5866_s4 = inlined_call_operand.vmem [shape: f32[1,4], index: 4, kind: input, shape index: {}]   ;;  %s5867_s5 = inlined_call_operand.vmem [shape: f32[1,4], index: 5, kind: input, shape index: {}]   ;;  %s5868_s6 = inlined_call_operand.vmem [shape: f32[2,16,16,8], index: 6, kind: output, shape index: {}]  }
   0x1   :  { %s4130_s23 = smov 0   ;;  %s4132_s24 = smov 0  }
   0x2   :  { %s4134_s25 = smov 0  }
   0x3 LB: > { %s25_s26 = sadd.s32 1, %s4064_s23  ;;  %s28_s27 = sadd.s32 1, %s4068_s24  ;;  %s4072_s25 = sphi %s4134_s25, %s16_s25   ;;  %s4068_s24 = sphi %s4132_s24, %s5872_s24   ;;  %s4064_s23 = sphi %s4130_s23, %s5871_s23   ;;  %s4060_s22 = sphi %s4128_s22, %s5870_s22   ;;  %s4056_s21 = sphi %s4126_s21, %s5869_s21  }
   0x4   : > { %p26_p0 = scmp.ge.s32.totalorder %s25_s26, 2  ;;  %p3236_p1 = scmp.ge.s32.totalorder %s4072_s25, 1 }
   0x5   : > { %p226_p2 = scmp.lt.s32.totalorder %s4072_s25, 5 }
   0x6   : > { %s5874_s26 = smov (%p26_p0, %s25_s26), 0  ;;  %s5876_s27 = smov (!%p26_p0, %s28_s27), %s4068_s24 }
   0x7   : > { %p227_p3 = pnand %p3236_p1, %p226_p2  ;;  %p30_p4 = scmp.ge.s32.totalorder %s5876_s27, 2 }
   0x8   : > { %p257_p5 = scmp.lt.s32.totalorder (!%p227_p3), %s4056_s21, 1  ;;  %s262_s28 = smul.u32 (!%p227_p3), %s4056_s21, %s4060_s22 }
   0x9   : > { %s5878_s27 = smov (%p30_p4, %s5876_s27), 0  ;;  %230 = sbr.rel (%p227_p3) target bundleno = 1147 (0x47b), region = 44 }
   0xa   : > { %p270_p6 = scmp.eq.s32.totalorder (!%p227_p3), %s4060_s22, 0  ;;  %p271_p7 = scmp.eq.s32.totalorder (!%p227_p3), %s4056_s21, 0 }
   0xb   : > { %p263_p8 = scmp.lt.s32.totalorder (!%p227_p3), %s262_s28, 1 }
   0xc   : > { %p272_p9 = pnand (!%p227_p3), %p271_p7, %p270_p6 }
  0x10   : > { %s258_s29 = scalar_select %p257_p5, %s4056_s21, 1 }
  0x11   : > { %s5880_s28 = smov (!%p263_p8, %s262_s28), 1  ;;  %275 = sbr.rel (%p272_p9) target bundleno = 53 (0x35), region = 48 }
  0x12   : > { %s3324_s30 = sshll.u32 %s258_s29, 8  ;;  %s3325_s10 = sshll.u32 %s5880_s28, 8  ;;  %vm276_vm0 = vcmask (!%p272_p9), 31744   ;;  %vm279_vm1 = vcmask (!%p272_p9), 25600   ;;  %vm322_vm2 = vcmask (!%p272_p9), 64512   ;;  %v4074_v0 = vmov (!%p272_p9), 0.0  }
  0x13   : > { %s4169_s9 = scalar_lea.vmem %s5862_s0, %s3324_s30  ;;  %s4174_s13 = scalar_lea.vmem %s5868_s6, %s3325_s10  ;;  %277 = vst.msk [vmem:[#allocation2] sm:$0xff] (!%p272_p9), %vm276_vm0, %v4074_v0  ;;  %278 = vst.msk [vmem:[#allocation2 + $0x8] sm:$0xff] (!%p272_p9), %vm276_vm0, %v4074_v0  ;;  %vm324_vm3 = vcmask (!%p272_p9), 58368   ;;  %vm285_vm4 = vcmask (!%p272_p9), 24576   ;;  %vm329_vm5 = vcmask (!%p272_p9), 57344  }
  0x14   : > { %282 = vst.msk [vmem:[#allocation2 + $0x198] sm:$0xff] (!%p272_p9), %vm276_vm0, %v4074_v0  ;;  %283 = vst.msk [vmem:[#allocation2 + $0x1a0] sm:$0xff] (!%p272_p9), %vm276_vm0, %v4074_v0 }
  0x15   : > { %280 = vst.msk [vmem:[#allocation2 + $0x10] sm:$0x3] (!%p272_p9), %vm279_vm1, %v4074_v0  ;;  %284 = vst.msk [vmem:[#allocation2 + $0x1a8] sm:$0x3] (!%p272_p9), %vm279_vm1, %v4074_v0 }
  0x16   : > { %350 = vst.msk [vmem:[#allocation5] sm:$0x3] (!%p272_p9), %vm279_vm1, %v4074_v0 }
  0x17   : > { %323 = vst.msk [vmem:[#allocation3] sm:$0xff] (!%p272_p9), %vm322_vm2, %v4074_v0  ;;  %327 = vst.msk [vmem:[#allocation3 + $0x90] sm:$0xff] (!%p272_p9), %vm322_vm2, %v4074_v0 }
  0x18   : > { %325 = vst.msk [vmem:[#allocation3 + $0x8] sm:$0x3] %vm324_vm3, %v4074_v0  ;;  %328 = vst.msk [vmem:[#allocation3 + $0x98] sm:$0x3] %vm324_vm3, %v4074_v0 }
  0x19   : > { %286 = vst.msk [vmem:[#allocation2] sm:$0x1] %vm285_vm4, %v4074_v0  ;;  %287 = vst.msk [vmem:[#allocation2 + $0x18] sm:$0x1] %vm285_vm4, %v4074_v0 }
  0x1a   : > { %288 = vst.msk [vmem:[#allocation2 + $0x30] sm:$0x1] %vm285_vm4, %v4074_v0  ;;  %289 = vst.msk [vmem:[#allocation2 + $0x48] sm:$0x1] %vm285_vm4, %v4074_v0 }
  0x1b   : > { %290 = vst.msk [vmem:[#allocation2 + $0x60] sm:$0x1] %vm285_vm4, %v4074_v0  ;;  %291 = vst.msk [vmem:[#allocation2 + $0x78] sm:$0x1] %vm285_vm4, %v4074_v0 }
  0x1c   : > { %292 = vst.msk [vmem:[#allocation2 + $0x90] sm:$0x1] %vm285_vm4, %v4074_v0  ;;  %293 = vst.msk [vmem:[#allocation2 + $0xa8] sm:$0x1] %vm285_vm4, %v4074_v0 }
  0x1d   : > { %294 = vst.msk [vmem:[#allocation2 + $0xc0] sm:$0x1] %vm285_vm4, %v4074_v0  ;;  %295 = vst.msk [vmem:[#allocation2 + $0xd8] sm:$0x1] %vm285_vm4, %v4074_v0 }
  0x1e   : > { %296 = vst.msk [vmem:[#allocation2 + $0xf0] sm:$0x1] %vm285_vm4, %v4074_v0  ;;  %297 = vst.msk [vmem:[#allocation2 + $0x108] sm:$0x1] %vm285_vm4, %v4074_v0 }
  0x1f   : > { %298 = vst.msk [vmem:[#allocation2 + $0x120] sm:$0x1] %vm285_vm4, %v4074_v0  ;;  %299 = vst.msk [vmem:[#allocation2 + $0x138] sm:$0x1] %vm285_vm4, %v4074_v0 }
  0x20   : > { %300 = vst.msk [vmem:[#allocation2 + $0x150] sm:$0x1] %vm285_vm4, %v4074_v0  ;;  %301 = vst.msk [vmem:[#allocation2 + $0x168] sm:$0x1] %vm285_vm4, %v4074_v0 }
  0x21   : > { %302 = vst.msk [vmem:[#allocation2 + $0x180] sm:$0x1] %vm285_vm4, %v4074_v0  ;;  %303 = vst.msk [vmem:[#allocation2 + $0x198] sm:$0x1] %vm285_vm4, %v4074_v0 }
  0x22   : > { %304 = vst.msk [vmem:[#allocation2 + $0x11] sm:$0x1] %vm285_vm4, %v4074_v0  ;;  %305 = vst.msk [vmem:[#allocation2 + $0x29] sm:$0x1] %vm285_vm4, %v4074_v0 }
  0x23   : > { %306 = vst.msk [vmem:[#allocation2 + $0x41] sm:$0x1] %vm285_vm4, %v4074_v0  ;;  %307 = vst.msk [vmem:[#allocation2 + $0x59] sm:$0x1] %vm285_vm4, %v4074_v0 }
  0x24   : > { %308 = vst.msk [vmem:[#allocation2 + $0x71] sm:$0x1] %vm285_vm4, %v4074_v0  ;;  %309 = vst.msk [vmem:[#allocation2 + $0x89] sm:$0x1] %vm285_vm4, %v4074_v0 }
  0x25   : > { %310 = vst.msk [vmem:[#allocation2 + $0xa1] sm:$0x1] %vm285_vm4, %v4074_v0  ;;  %311 = vst.msk [vmem:[#allocation2 + $0xb9] sm:$0x1] %vm285_vm4, %v4074_v0 }
  0x26   : > { %312 = vst.msk [vmem:[#allocation2 + $0xd1] sm:$0x1] %vm285_vm4, %v4074_v0  ;;  %313 = vst.msk [vmem:[#allocation2 + $0xe9] sm:$0x1] %vm285_vm4, %v4074_v0 }
  0x27   : > { %314 = vst.msk [vmem:[#allocation2 + $0x101] sm:$0x1] %vm285_vm4, %v4074_v0  ;;  %315 = vst.msk [vmem:[#allocation2 + $0x119] sm:$0x1] %vm285_vm4, %v4074_v0 }
  0x28   : > { %316 = vst.msk [vmem:[#allocation2 + $0x131] sm:$0x1] %vm285_vm4, %v4074_v0  ;;  %317 = vst.msk [vmem:[#allocation2 + $0x149] sm:$0x1] %vm285_vm4, %v4074_v0 }
  0x29   : > { %318 = vst.msk [vmem:[#allocation2 + $0x161] sm:$0x1] %vm285_vm4, %v4074_v0  ;;  %319 = vst.msk [vmem:[#allocation2 + $0x179] sm:$0x1] %vm285_vm4, %v4074_v0 }
  0x2a   : > { %320 = vst.msk [vmem:[#allocation2 + $0x191] sm:$0x1] %vm285_vm4, %v4074_v0  ;;  %321 = vst.msk [vmem:[#allocation2 + $0x1a9] sm:$0x1] %vm285_vm4, %v4074_v0 }
  0x2b   : > { %330 = vst.msk [vmem:[#allocation3] sm:$0x1] %vm329_vm5, %v4074_v0  ;;  %331 = vst.msk [vmem:[#allocation3 + $0x10] sm:$0x1] %vm329_vm5, %v4074_v0 }
  0x2c   : > { %332 = vst.msk [vmem:[#allocation3 + $0x20] sm:$0x1] %vm329_vm5, %v4074_v0  ;;  %333 = vst.msk [vmem:[#allocation3 + $0x30] sm:$0x1] %vm329_vm5, %v4074_v0 }
  0x2d   : > { %334 = vst.msk [vmem:[#allocation3 + $0x40] sm:$0x1] %vm329_vm5, %v4074_v0  ;;  %335 = vst.msk [vmem:[#allocation3 + $0x50] sm:$0x1] %vm329_vm5, %v4074_v0 }
  0x2e   : > { %336 = vst.msk [vmem:[#allocation3 + $0x60] sm:$0x1] %vm329_vm5, %v4074_v0  ;;  %337 = vst.msk [vmem:[#allocation3 + $0x70] sm:$0x1] %vm329_vm5, %v4074_v0 }
  0x2f   : > { %338 = vst.msk [vmem:[#allocation3 + $0x80] sm:$0x1] %vm329_vm5, %v4074_v0  ;;  %339 = vst.msk [vmem:[#allocation3 + $0x90] sm:$0x1] %vm329_vm5, %v4074_v0 }
  0x30   : > { %341 = vst.msk [vmem:[#allocation3 + $0x19] sm:$0x1] %vm329_vm5, %v4074_v0  ;;  %342 = vst.msk [vmem:[#allocation3 + $0x29] sm:$0x1] %vm329_vm5, %v4074_v0 }
  0x31   : > { %343 = vst.msk [vmem:[#allocation3 + $0x39] sm:$0x1] %vm329_vm5, %v4074_v0  ;;  %344 = vst.msk [vmem:[#allocation3 + $0x49] sm:$0x1] %vm329_vm5, %v4074_v0 }
  0x32   : > { %345 = vst.msk [vmem:[#allocation3 + $0x59] sm:$0x1] %vm329_vm5, %v4074_v0  ;;  %346 = vst.msk [vmem:[#allocation3 + $0x69] sm:$0x1] %vm329_vm5, %v4074_v0 }
  0x33   : > { %347 = vst.msk [vmem:[#allocation3 + $0x79] sm:$0x1] %vm329_vm5, %v4074_v0  ;;  %348 = vst.msk [vmem:[#allocation3 + $0x89] sm:$0x1] %vm329_vm5, %v4074_v0 }
  0x34   : > { %340 = vst.msk [vmem:[#allocation3 + $0x9] sm:$0x1] %vm329_vm5, %v4074_v0  ;;  %349 = vst.msk [vmem:[#allocation3 + $0x99] sm:$0x1] %vm329_vm5, %v4074_v0 }
  0x35 PF: > { %p3241_p10 = scmp.ne.s32.totalorder %s4060_s22, 0 }
  0x36   : > { %v362_v1 = vld [vmem:[%s4169_s9 + $0x40] sm:$0xff] (!%p3241_p10)  ;;  %v363_v2 = vld [vmem:[%s4169_s9 + $0x48] sm:$0xff] (!%p3241_p10)  ;;  %vm483_vm6 = vcmask (!%p3241_p10), 31744   ;;  %v356_v8 = vld [vmem:[%s4169_s9 + $0x10] sm:$0xff] (!%p3241_p10)  ;;  %vm674_vm5 = vcmask (!%p3241_p10), 1046528   ;;  %s4075_s14 = smov (!%p3241_p10), 16  }
  0x37   : > { %353 = sbr.rel (%p3241_p10) target bundleno = 968 (0x3c8), region = 52  ;;  %v366_v3 = vld [vmem:[%s4169_s9 + $0x60] sm:$0xff] (!%p3241_p10)  ;;  %v367_v4 = vld [vmem:[%s4169_s9 + $0x68] sm:$0xff] (!%p3241_p10)  ;;  %vm394_vm7 = vcmp.ge.f32.partialorder (!%p3241_p10), %v362_v1, 0.0  ;;  %vm395_vm8 = vcmp.ge.f32.partialorder (!%p3241_p10), %v363_v2, 0.0  ;;  %v357_v11 = vld [vmem:[%s4169_s9 + $0x18] sm:$0xff] (!%p3241_p10) }
  0x38   : > { %vm398_vm9 = vcmp.ge.f32.partialorder (!%p3241_p10), %v366_v3, 0.0  ;;  %v426_v5 = vmul.f32 (!%p3241_p10), 0.2, %v362_v1  ;;  %vm399_vm10 = vcmp.ge.f32.partialorder (!%p3241_p10), %v367_v4, 0.0  ;;  %v427_v6 = vmul.f32 (!%p3241_p10), 0.2, %v363_v2 }
  0x39   : > { %v430_v7 = vmul.f32 (!%p3241_p10), 0.2, %v366_v3  ;;  %v431_v9 = vmul.f32 (!%p3241_p10), 0.2, %v367_v4  ;;  %vm388_vm11 = vcmp.ge.f32.partialorder (!%p3241_p10), %v356_v8, 0.0  ;;  %vm389_vm12 = vcmp.ge.f32.partialorder (!%p3241_p10), %v357_v11, 0.0 }
  0x3a   : > { %v458_v10 = vsel (!%p3241_p10), %vm394_vm7, %v362_v1, %v426_v5  ;;  %v420_v12 = vmul.f32 (!%p3241_p10), 0.2, %v356_v8  ;;  %v459_v13 = vsel (!%p3241_p10), %vm395_vm8, %v363_v2, %v427_v6  ;;  %v421_v15 = vmul.f32 (!%p3241_p10), 0.2, %v357_v11  ;;  %v360_v16 = vld [vmem:[%s4169_s9 + $0x30] sm:$0xff] (!%p3241_p10)  ;;  %v361_v20 = vld [vmem:[%s4169_s9 + $0x38] sm:$0xff] (!%p3241_p10) }
  0x3b   : > { %v462_v14 = vsel (!%p3241_p10), %vm398_vm9, %v366_v3, %v430_v7  ;;  %492 = vst.msk [vmem:[#allocation2 + $0x79] sm:$0xff] (!%p3241_p10), %vm483_vm6, %v458_v10  ;;  %v463_v17 = vsel (!%p3241_p10), %vm399_vm10, %v367_v4, %v431_v9  ;;  %493 = vst.msk [vmem:[#allocation2 + $0x81] sm:$0xff] (!%p3241_p10), %vm483_vm6, %v459_v13  ;;  %v4310_v19 = vld [vmem:[#allocation2 + $0x1] ss:$2 sm:$0xff] (!%p3241_p10)  ;;  %v364_v21 = vld [vmem:[%s4169_s9 + $0x50] sm:$0xff] (!%p3241_p10)  ;;  %vm392_vm13 = vcmp.ge.f32.partialorder (!%p3241_p10), %v360_v16, 0.0 }
  0x3c   : > { %496 = vst.msk [vmem:[#allocation2 + $0xa9] sm:$0xff] (!%p3241_p10), %vm483_vm6, %v462_v14  ;;  %v452_v18 = vsel (!%p3241_p10), %vm388_vm11, %v356_v8, %v420_v12  ;;  %v365_v22 = vld [vmem:[%s4169_s9 + $0x58] sm:$0xff] (!%p3241_p10)  ;;  %497 = vst.msk [vmem:[#allocation2 + $0xb1] sm:$0xff] (!%p3241_p10), %vm483_vm6, %v463_v17  ;;  %v453_v23 = vsel (!%p3241_p10), %vm389_vm12, %v357_v11, %v421_v15  ;;  %vm393_vm14 = vcmp.ge.f32.partialorder (!%p3241_p10), %v361_v20, 0.0  ;;  %vm396_vm15 = vcmp.ge.f32.partialorder (!%p3241_p10), %v364_v21, 0.0  ;;  %v354_v25 = vld [vmem:[%s4169_s9] sm:$0xff] (!%p3241_p10) }
  0x3d   : > { %486 = vst.msk [vmem:[#allocation2 + $0x31] sm:$0xff] (!%p3241_p10), %vm483_vm6, %v452_v18  ;;  %vm397_vm0 = vcmp.ge.f32.partialorder (!%p3241_p10), %v365_v22, 0.0  ;;  %v516_v24 = vld [vmem:[#allocation2] ss:$2 sm:$0xff] (!%p3241_p10)  ;;  %487 = vst.msk [vmem:[#allocation2 + $0x39] sm:$0xff] (!%p3241_p10), %vm483_vm6, %v453_v23  ;;  %v715_v29 = vrot.slane (!%p3241_p10), %v4310_v19, 1 }
  0x3e   : > { %v424_v26 = vmul.f32 0.2, %v360_v16  ;;  %v425_v27 = vmul.f32 0.2, %v361_v20  ;;  %v428_v28 = vmul.f32 0.2, %v364_v21 }
  0x3f   : > { %v429_v30 = vmul.f32 0.2, %v365_v22  ;;  %v518_v31 = vld [vmem:[#allocation2 + $0x10] ss:$2 sm:$0x1]  ;;  %v675_v35 = vrot.slane %v516_v24, 1 }
  0x40   : > { %v456_v32 = vsel %vm392_vm13, %v360_v16, %v424_v26  ;;  %v457_v33 = vsel %vm393_vm14, %v361_v20, %v425_v27  ;;  %v460_v34 = vsel %vm396_vm15, %v364_v21, %v428_v28  ;;  %v355_v36 = vld [vmem:[%s4169_s9 + $0x8] sm:$0xff]  ;;  %v358_v37 = vld [vmem:[%s4169_s9 + $0x20] sm:$0xff]  ;;  %v676_v40 = vrot.slane %v518_v31, 1  ;;  %v562_v43 = vld [vmem:[#allocation2 + $0x71] ss:$2 sm:$0x1] }
  0x41   : > { %v359_v38 = vld [vmem:[%s4169_s9 + $0x28] sm:$0xff]  ;;  %v461_v39 = vsel %vm397_vm0, %v365_v22, %v429_v30  ;;  %490 = vst.msk [vmem:[#allocation2 + $0x61] sm:$0xff] %vm483_vm6, %v456_v32  ;;  %491 = vst.msk [vmem:[#allocation2 + $0x69] sm:$0xff] %vm483_vm6, %v457_v33  ;;  %vm386_vm1 = vcmp.ge.f32.partialorder %v354_v25, 0.0  ;;  %vm387_vm2 = vcmp.ge.f32.partialorder %v355_v36, 0.0  ;;  %vm390_vm3 = vcmp.ge.f32.partialorder %v358_v37, 0.0 }
  0x42   : > { %494 = vst.msk [vmem:[#allocation2 + $0x91] sm:$0xff] %vm483_vm6, %v460_v34  ;;  %495 = vst.msk [vmem:[#allocation2 + $0x99] sm:$0xff] %vm483_vm6, %v461_v39  ;;  %vm391_vm4 = vcmp.ge.f32.partialorder %v359_v38, 0.0  ;;  %v418_v41 = vmul.f32 0.2, %v354_v25  ;;  %v677_v62 = vsel %vm674_vm5, %v675_v35, %v676_v40  ;;  %v722_v0 = vrot.slane %v562_v43, 1 }
  0x43   : > { %v419_v42 = vmul.f32 0.2, %v355_v36  ;;  %v4329_v44 = vld [vmem:[#allocation2 + $0x78] ss:$2 sm:$0xff]  ;;  %v422_v45 = vmul.f32 0.2, %v358_v37 }
  0x44   : > { %v423_v46 = vmul.f32 0.2, %v359_v38  ;;  %v4331_v47 = vld [vmem:[#allocation2 + $0xa8] ss:$2 sm:$0xff]  ;;  %v450_v48 = vsel %vm386_vm1, %v354_v25, %v418_v41  ;;  %v4335_v52 = vld [vmem:[#allocation2 + $0x31] ss:$2 sm:$0xff] }
  0x45   : > { %v451_v49 = vsel %vm387_vm2, %v355_v36, %v419_v42  ;;  %v566_v50 = vld [vmem:[#allocation2 + $0xa1] ss:$2 sm:$0x1]  ;;  %v3494_v51 = vpack.i.bf16 %v4331_v47, %v4329_v44  ;;  %v4337_v53 = vld [vmem:[#allocation2 + $0x30] ss:$2 sm:$0xff]  ;;  %v454_v54 = vsel %vm390_vm3, %v358_v37, %v422_v45  ;;  %484 = vst.msk [vmem:[#allocation2 + $0x19] sm:$0xff] %vm483_vm6, %v450_v48  ;;  %v3479_v58 = vpack.i.bf16 %v4335_v52, %v4310_v19 }
  0x46   : > { %v455_v55 = vsel %vm391_vm4, %v359_v38, %v423_v46  ;;  %485 = vst.msk [vmem:[#allocation2 + $0x21] sm:$0xff] %vm483_vm6, %v451_v49  ;;  %v764_v56 = vrot.slane %v4331_v47, 1  ;;  %v761_v57 = vrot.slane %v4329_v44, 1  ;;  %v522_v59 = vld [vmem:[#allocation2 + $0x40] ss:$2 sm:$0x1] }
  0x47   : > { %v678_v60 = vrot.slane %v4337_v53, 1  ;;  %488 = vst.msk [vmem:[#allocation2 + $0x49] sm:$0xff] %vm483_vm6, %v454_v54  ;;  %489 = vst.msk [vmem:[#allocation2 + $0x51] sm:$0xff] %vm483_vm6, %v455_v55  ;;  %3495 = vrot.lane.b32.xlu1 %v3494_v51, %s4075_s14  ;;  %v718_v61 = vrot.slane %v4335_v52, 1  ;;  %v679_v63 = vrot.slane %v522_v59, 1  ;;  %s4076_s15 = smov 4  }
  0x48   : > { %v554_v1 = vld [vmem:[#allocation2 + $0x11] ss:$2 sm:$0x1]  ;;  %3480 = vrot.lane.b32.xlu0 %v3479_v58, %s4076_s15  ;;  %v4354_v2 = vld [vmem:[#allocation2 + $0x61] ss:$2 sm:$0xff]  ;;  %v725_v4 = vrot.slane %v566_v50, 1 }
  0x49   : > { %v4356_v3 = vld [vmem:[#allocation2 + $0x60] ss:$2 sm:$0xff]  ;;  %v716_v5 = vrot.slane %v554_v1, 1  ;;  %v4358_v6 = vld [vmem:[#allocation2 + $0x91] ss:$2 sm:$0xff]  ;;  %v721_v7 = vrot.slane %v4354_v2, 1  ;;  %v4362_v8 = vsel %vm674_vm5, %v678_v60, %v679_v63 }
  0x4a   : > { %v526_v9 = vld [vmem:[#allocation2 + $0x70] ss:$2 sm:$0x1]  ;;  %v724_v10 = vrot.slane %v4358_v6, 1  ;;  %v3484_v11 = vpack.i.bf16 %v4358_v6, %v4354_v2  ;;  %v3499_v12 = vpack.i.bf16 %v4362_v8, %v677_v62  ;;  %v681_v15 = vrot.slane %v4356_v3, 1  ;;  %s4077_s16 = smov 8  }
  0x4b   : > { %v4368_v13 = vld [vmem:[#allocation2 + $0x90] ss:$2 sm:$0xff]  ;;  %v530_v14 = vld [vmem:[#allocation2 + $0xa0] ss:$2 sm:$0x1]  ;;  %v682_v16 = vrot.slane %v526_v9, 1  ;;  %v4377_v22 = vsel %vm674_vm5, %v721_v7, %v722_v0  ;;  %v717_v24 = vsel %vm674_vm5, %v715_v29, %v716_v5 }
  0x4c   : > { %v684_v17 = vrot.slane %v4368_v13, 1  ;;  %v685_v18 = vrot.slane %v530_v14, 1  ;;  %v4372_v20 = vld [vmem:[#allocation2 + $0x79] ss:$2 sm:$0xff]  ;;  %3485 = vrot.lane.b32.xlu0 %v3484_v11, %s4076_s15  ;;  %3500 = vrot.lane.b32.xlu1 %v3499_v12, %s4077_s16  ;;  %v368_v26 = vld [vmem:[%s4169_s9 + $0x70] sm:$0xff]  ;;  %v4393_v32 = vsel %vm674_vm5, %v724_v10, %v725_v4  ;;  %s4078_s17 = smov 12  }
  0x4d   : > { %v587_v21 = vld [vmem:[#allocation2 + $0x18] ss:$2 sm:$0xff]  ;;  %v558_v23 = vld [vmem:[#allocation2 + $0x41] ss:$2 sm:$0x1]  ;;  %v801_v25 = vrot.slane %v4372_v20, 1  ;;  %v4385_v27 = vsel %vm674_vm5, %v681_v15, %v682_v16  ;;  %v3519_v43 = vpack.i.bf16 %v4393_v32, %v4377_v22 }
  0x4e   : > { %v4388_v28 = vsel %vm674_vm5, %v684_v17, %v685_v18  ;;  %v4390_v30 = vld [vmem:[#allocation2 + $0x48] ss:$2 sm:$0xff]  ;;  %v755_v31 = vrot.slane %v587_v21, 1  ;;  %v4395_v33 = vld [vmem:[#allocation2 + $0xa9] ss:$2 sm:$0xff]  ;;  %v369_v19 = vld [vmem:[%s4169_s9 + $0x78] sm:$0xff] }
  0x4f   : > { %v3504_v29 = vpack.i.bf16 %v4388_v28, %v4385_v27  ;;  %v758_v34 = vrot.slane %v4390_v30, 1  ;;  %v3489_v35 = vpack.i.bf16 %v4390_v30, %v587_v21  ;;  %v719_v36 = vrot.slane %v558_v23, 1  ;;  %v623_v37 = vld [vmem:[#allocation2 + $0x19] ss:$2 sm:$0xff]  ;;  %v4402_v38 = vld [vmem:[#allocation2 + $0x49] ss:$2 sm:$0xff] }
  0x50   : > { %v804_v39 = vrot.slane %v4395_v33, 1  ;;  %v798_v40 = vrot.slane %v4402_v38, 1  ;;  %v597_v41 = vld [vmem:[#allocation2 + $0x88] ss:$2 sm:$0x1]  ;;  %v372_v42 = vld [vmem:[%s4169_s9 + $0x90] sm:$0xff]  ;;  %v3524_v58 = vpack.i.bf16 %v4395_v33, %v4372_v20  ;;  %v3514_v4 = vpack.i.bf16 %v4402_v38, %v623_v37 }
  0x51   : > { %3505 = vrot.lane.b32.xlu1 %v3504_v29, %s4077_s16  ;;  %3490 = vrot.lane.b32.xlu0 %v3489_v35, %s4075_s14  ;;  %v4412_v45 = vsel %vm674_vm5, %v718_v61, %v719_v36  ;;  %v795_v46 = vrot.slane %v623_v37, 1  ;;  %v601_v48 = vld [vmem:[#allocation2 + $0xb8] ss:$2 sm:$0x1]  ;;  %v762_v49 = vrot.slane %v597_v41, 1  ;;  %vm400_vm7 = vcmp.ge.f32.partialorder %v368_v26, 0.0 }
  0x52   : > { %v373_v50 = vld [vmem:[%s4169_s9 + $0x98] sm:$0xff]  ;;  %v3509_v51 = vpack.i.bf16 %v4412_v45, %v717_v24  ;;  %v765_v54 = vrot.slane %v601_v48, 1  ;;  %v589_v55 = vld [vmem:[#allocation2 + $0x28] ss:$2 sm:$0x1]  ;;  %vm401_vm8 = vcmp.ge.f32.partialorder %v369_v19, 0.0 }
  0x53   : > { %v593_v59 = vld [vmem:[#allocation2 + $0x58] ss:$2 sm:$0x1]  ;;  %v756_v60 = vrot.slane %v589_v55, 1  ;;  %vm404_vm9 = vcmp.ge.f32.partialorder %v372_v42, 0.0  ;;  %vm405_vm10 = vcmp.ge.f32.partialorder %v373_v50, 0.0  ;;  %v4421_v61 = vsel %vm674_vm5, %v761_v57, %v762_v49 }
  0x54   : > { %v4426_v62 = vsel %vm674_vm5, %v764_v56, %v765_v54  ;;  %v759_v63 = vrot.slane %v593_v59, 1  ;;  %v633_v0 = vld [vmem:[#allocation2 + $0x89] ss:$2 sm:$0x1]  ;;  %v432_v1 = vmul.f32 0.2, %v368_v26 }
  0x55   : > { %3520 = vrot.lane.b32.xlu1 %v3519_v43, %s4078_s17  ;;  %3510 = vrot.lane.b32.xlu0 %v3509_v51, %s4078_s17  ;;  %v757_v5 = vsel %vm674_vm5, %v755_v31, %v756_v60  ;;  %v637_v7 = vld [vmem:[#allocation2 + $0xb9] ss:$2 sm:$0x1]  ;;  %v802_v57 = vrot.slane %v633_v0, 1  ;;  %v433_v9 = vmul.f32 0.2, %v369_v19  ;;  %v3534_v15 = vpack.i.bf16 %v4426_v62, %v4421_v61 }
  0x56   : > { %v4433_v10 = vsel %vm674_vm5, %v758_v34, %v759_v63  ;;  %v805_v56 = vrot.slane %v637_v7, 1  ;;  %v625_v11 = vld [vmem:[#allocation2 + $0x29] ss:$2 sm:$0x1]  ;;  %v436_v12 = vmul.f32 0.2, %v372_v42  ;;  %v464_v14 = vsel %vm400_vm7, %v368_v26, %v432_v1 }
  0x57   : > { %v3529_v16 = vpack.i.bf16 %v4433_v10, %v757_v5  ;;  %v629_v17 = vld [vmem:[#allocation2 + $0x59] ss:$2 sm:$0x1]  ;;  %v796_v18 = vrot.slane %v625_v11, 1  ;;  %v437_v21 = vmul.f32 0.2, %v373_v50  ;;  %v4441_v23 = vsel %vm674_vm5, %v801_v25, %v802_v57 }
  0x58   : > { %498 = vst.msk [vmem:[#allocation2 + $0xc1] sm:$0xff] %vm483_vm6, %v464_v14  ;;  %v799_v24 = vrot.slane %v629_v17, 1  ;;  %v465_v31 = vsel %vm401_vm8, %v369_v19, %v433_v9  ;;  %v468_v29 = vsel %vm404_vm9, %v372_v42, %v436_v12  ;;  %v376_v26 = vld [vmem:[%s4169_s9 + $0xb0] sm:$0xff]  ;;  %v377_v34 = vld [vmem:[%s4169_s9 + $0xb8] sm:$0xff]  ;;  %s4079_s18 = smov 20   ;;  %v4451_v36 = vsel %vm674_vm5, %v804_v39, %v805_v56  ;;  %s4080_s19 = smov 24  }
  0x59   : > { %v380_v35 = vld [vmem:[%s4169_s9 + $0xd0] sm:$0xff]  ;;  %3525 = vrot.lane.b32.xlu1 %v3524_v58, %s4079_s18  ;;  %3515 = vrot.lane.b32.xlu0 %v3514_v4, %s4079_s18  ;;  %v797_v37 = vsel %vm674_vm5, %v795_v46, %v796_v18  ;;  %v469_v25 = vsel %vm405_vm10, %v373_v50, %v437_v21  ;;  %499 = vst.msk [vmem:[#allocation2 + $0xc9] sm:$0xff] %vm483_vm6, %v465_v31  ;;  %502 = vst.msk [vmem:[#allocation2 + $0xf1] sm:$0xff] %vm483_vm6, %v468_v29  ;;  %v381_v19 = vld [vmem:[%s4169_s9 + $0xd8] sm:$0xff]  ;;  %vm408_vm11 = vcmp.ge.f32.partialorder %v376_v26, 0.0  ;;  %s4081_s20 = smov 28  }
  0x5a   : > { %v4461_v41 = vsel %vm674_vm5, %v798_v40, %v799_v24  ;;  %503 = vst.msk [vmem:[#allocation2 + $0xf9] sm:$0xff] %vm483_vm6, %v469_v25  ;;  %vm409_vm12 = vcmp.ge.f32.partialorder %v377_v34, 0.0  ;;  %vm412_vm13 = vcmp.ge.f32.partialorder %v380_v35, 0.0  ;;  %vm413_vm14 = vcmp.ge.f32.partialorder %v381_v19, 0.0  ;;  %v370_v50 = vld [vmem:[%s4169_s9 + $0x80] sm:$0xff]  ;;  %v371_v55 = vld [vmem:[%s4169_s9 + $0x88] sm:$0xff] }
  0x5b   : > { %v440_v39 = vmul.f32 0.2, %v376_v26  ;;  %v441_v42 = vmul.f32 0.2, %v377_v34  ;;  %v444_v43 = vmul.f32 0.2, %v380_v35  ;;  %v3544_v46 = vpack.i.bf16 %v4451_v36, %v4441_v23 }
  0x5c   : > { %v3539_v48 = vpack.i.bf16 %v4461_v41, %v797_v37  ;;  %v445_v49 = vmul.f32 0.2, %v381_v19  ;;  %v374_v58 = vld [vmem:[%s4169_s9 + $0xa0] sm:$0xff]  ;;  %vm402_vm15 = vcmp.ge.f32.partialorder %v370_v50, 0.0  ;;  %v375_v60 = vld [vmem:[%s4169_s9 + $0xa8] sm:$0xff]  ;;  %vm403_vm0 = vcmp.ge.f32.partialorder %v371_v55, 0.0 }
  0x5d   : > { %3535 = vrot.lane.b32.xlu1 %v3534_v15, %s4080_s19  ;;  %3530 = vrot.lane.b32.xlu0 %v3529_v16, %s4080_s19  ;;  %v472_v40 = vsel %vm408_vm11, %v376_v26, %v440_v39  ;;  %v473_v51 = vsel %vm409_vm12, %v377_v34, %v441_v42  ;;  %v476_v54 = vsel %vm412_vm13, %v380_v35, %v444_v43  ;;  %v434_v63 = vmul.f32 0.2, %v370_v50  ;;  %v570_v7 = vld [vmem:[#allocation2 + $0xd1] ss:$2 sm:$0x1]  ;;  %s4082_s28 = smov 32  }
  0x5e   : > { %v477_v59 = vsel %vm413_vm14, %v381_v19, %v445_v49  ;;  %506 = vst.msk [vmem:[#allocation2 + $0x121] sm:$0xff] %vm483_vm6, %v472_v40  ;;  %507 = vst.msk [vmem:[#allocation2 + $0x129] sm:$0xff] %vm483_vm6, %v473_v51  ;;  %vm406_vm1 = vcmp.ge.f32.partialorder %v374_v58, 0.0  ;;  %vm407_vm2 = vcmp.ge.f32.partialorder %v375_v60, 0.0  ;;  %v435_v0 = vmul.f32 0.2, %v371_v55 }
  0x5f   : > { %510 = vst.msk [vmem:[#allocation2 + $0x151] sm:$0xff] %vm483_vm6, %v476_v54  ;;  %511 = vst.msk [vmem:[#allocation2 + $0x159] sm:$0xff] %vm483_vm6, %v477_v59  ;;  %v438_v1 = vmul.f32 0.2, %v374_v58  ;;  %v439_v57 = vmul.f32 0.2, %v375_v60  ;;  %v466_v9 = vsel %vm402_vm15, %v370_v50, %v434_v63  ;;  %v3549_v11 = vpack.i.bf16 %v4356_v3, %v4337_v53 }
  0x60   : > { %v4479_v4 = vld [vmem:[#allocation2 + $0xc1] ss:$2 sm:$0xff]  ;;  %v4481_v5 = vld [vmem:[#allocation2 + $0xc0] ss:$2 sm:$0xff]  ;;  %500 = vst.msk [vmem:[#allocation2 + $0xd9] sm:$0xff] %vm483_vm6, %v466_v9  ;;  %v467_v18 = vsel %vm403_vm0, %v371_v55, %v435_v0  ;;  %v3564_v35 = vpack.i.bf16 %v4354_v2, %v4335_v52  ;;  %v728_v19 = vrot.slane %v570_v7, 1  ;;  %v3584_v9 = vpack.i.bf16 %v4385_v27, %v4362_v8 }
  0x61   : > { %3545 = vrot.lane.b32.xlu1 %v3544_v46, %s4081_s20  ;;  %3540 = vrot.lane.b32.xlu0 %v3539_v48, %s4081_s20  ;;  %v4486_v56 = vld [vmem:[#allocation2 + $0xf1] ss:$2 sm:$0xff]  ;;  %v4490_v12 = vld [vmem:[#allocation2 + $0xf0] ss:$2 sm:$0xff]  ;;  %v687_v15 = vrot.slane %v4481_v5, 1  ;;  %v470_v31 = vsel %vm406_vm1, %v374_v58, %v438_v1  ;;  %v471_v29 = vsel %vm407_vm2, %v375_v60, %v439_v57  ;;  %501 = vst.msk [vmem:[#allocation2 + $0xe1] sm:$0xff] %vm483_vm6, %v467_v18 }
  0x62   : > { %v3554_v14 = vpack.i.bf16 %v4486_v56, %v4479_v4  ;;  %v534_v16 = vld [vmem:[#allocation2 + $0xd0] ss:$2 sm:$0x1]  ;;  %v690_v17 = vrot.slane %v4490_v12, 1  ;;  %504 = vst.msk [vmem:[#allocation2 + $0x109] sm:$0xff] %vm483_vm6, %v470_v31  ;;  %505 = vst.msk [vmem:[#allocation2 + $0x111] sm:$0xff] %vm483_vm6, %v471_v29  ;;  %v3559_v37 = vpack.i.bf16 %v4481_v5, %v4368_v13 }
  0x63   : > { %v538_v21 = vld [vmem:[#allocation2 + $0x100] ss:$2 sm:$0x1]  ;;  %v688_v24 = vrot.slane %v534_v16, 1  ;;  %v727_v2 = vrot.slane %v4479_v4, 1  ;;  %v730_v40 = vrot.slane %v4486_v56, 1 }
  0x64   : > { %v691_v26 = vrot.slane %v538_v21, 1  ;;  %v574_v34 = vld [vmem:[#allocation2 + $0x101] ss:$2 sm:$0x1]  ;;  %v379_v54 = vld [vmem:[%s4169_s9 + $0xc8] sm:$0xff]  ;;  %s4083_s29 = smov 36  }
  0x65   : > { %3555 = vrot.lane.b32.xlu1 %v3554_v14, %s4076_s15  ;;  %3550 = vrot.lane.b32.xlu0 %v3549_v11, %s4082_s28  ;;  %v4509_v25 = vld [vmem:[#allocation2 + $0x121] ss:$2 sm:$0xff]  ;;  %v4511_v39 = vld [vmem:[#allocation2 + $0x120] ss:$2 sm:$0xff]  ;;  %v4514_v42 = vsel %vm674_vm5, %v687_v15, %v688_v24  ;;  %v731_v51 = vrot.slane %v574_v34, 1  ;;  %v3579_v11 = vpack.i.bf16 %v4479_v4, %v4358_v6  ;;  %v4542_v14 = vsel %vm674_vm5, %v727_v2, %v728_v19  ;;  %v384_v34 = vld [vmem:[%s4169_s9 + $0xf0] sm:$0xff] }
  0x66   : > { %v4517_v43 = vsel %vm674_vm5, %v690_v17, %v691_v26  ;;  %v4519_v46 = vld [vmem:[#allocation2 + $0x151] ss:$2 sm:$0xff]  ;;  %v542_v48 = vld [vmem:[#allocation2 + $0x130] ss:$2 sm:$0x1]  ;;  %v378_v52 = vld [vmem:[%s4169_s9 + $0xc0] sm:$0xff] }
  0x67   : > { %v4523_v49 = vld [vmem:[#allocation2 + $0x150] ss:$2 sm:$0xff]  ;;  %v546_v50 = vld [vmem:[#allocation2 + $0x160] ss:$2 sm:$0x1]  ;;  %v3574_v55 = vpack.i.bf16 %v4517_v43, %v4514_v42  ;;  %v3569_v58 = vpack.i.bf16 %v4519_v46, %v4509_v25  ;;  %v693_v59 = vrot.slane %v4511_v39, 1  ;;  %v4545_v17 = vsel %vm674_vm5, %v730_v40, %v731_v51 }
  0x68   : > { %v382_v60 = vld [vmem:[%s4169_s9 + $0xe0] sm:$0xff]  ;;  %v383_v63 = vld [vmem:[%s4169_s9 + $0xe8] sm:$0xff]  ;;  %vm410_vm3 = vcmp.ge.f32.partialorder %v378_v52, 0.0  ;;  %v694_v0 = vrot.slane %v542_v48, 1  ;;  %v696_v1 = vrot.slane %v4523_v49, 1  ;;  %v697_v7 = vrot.slane %v546_v50, 1 }
  0x69   : > { %3565 = vrot.lane.b32.xlu1 %v3564_v35, %s4083_s29  ;;  %3560 = vrot.lane.b32.xlu0 %v3559_v37, %s4082_s28  ;;  %v442_v57 = vmul.f32 0.2, %v378_v52  ;;  %v578_v15 = vld [vmem:[#allocation2 + $0x131] ss:$2 sm:$0x1]  ;;  %vm411_vm4 = vcmp.ge.f32.partialorder %v379_v54, 0.0 }
  0x6a   : > { %v641_v16 = vld [vmem:[#allocation2 + $0xe9] ss:$2 sm:$0x1]  ;;  %v4547_v18 = vld [vmem:[#allocation2 + $0xd9] ss:$2 sm:$0xff]  ;;  %vm414_vm7 = vcmp.ge.f32.partialorder %v382_v60, 0.0  ;;  %v4553_v21 = vsel %vm674_vm5, %v693_v59, %v694_v0  ;;  %v4556_v24 = vsel %vm674_vm5, %v696_v1, %v697_v7  ;;  %v3604_v0 = vpack.i.bf16 %v4377_v22, %v4412_v45 }
  0x6b   : > { %vm415_vm8 = vcmp.ge.f32.partialorder %v383_v63, 0.0  ;;  %v443_v6 = vmul.f32 0.2, %v379_v54  ;;  %v446_v8 = vmul.f32 0.2, %v382_v60  ;;  %v474_v4 = vsel %vm410_vm3, %v378_v52, %v442_v57  ;;  %v385_v48 = vld [vmem:[%s4169_s9 + $0xf8] sm:$0xff] }
  0x6c   : > { %v447_v27 = vmul.f32 0.2, %v383_v63  ;;  %v582_v31 = vld [vmem:[#allocation2 + $0x161] ss:$2 sm:$0x1]  ;;  %v807_v29 = vrot.slane %v4547_v18, 1  ;;  %v3594_v52 = vpack.i.bf16 %v4545_v17, %v4542_v14  ;;  %v3589_v40 = vpack.i.bf16 %v4556_v24, %v4553_v21 }
  0x6d   : > { %3575 = vrot.lane.b32.xlu1 %v3574_v55, %s4077_s16  ;;  %3570 = vrot.lane.b32.xlu0 %v3569_v58, %s4076_s15  ;;  %508 = vst.msk [vmem:[#allocation2 + $0x139] sm:$0xff] %vm483_vm6, %v474_v4  ;;  %v808_v26 = vrot.slane %v641_v16, 1  ;;  %v475_v35 = vsel %vm411_vm4, %v379_v54, %v443_v6  ;;  %v478_v37 = vsel %vm414_vm7, %v382_v60, %v446_v8  ;;  %v734_v2 = vrot.slane %v578_v15, 1  ;;  %s4084_s30 = smov 40   ;;  %v603_v57 = vld [vmem:[#allocation2 + $0xd8] ss:$2 sm:$0xff] }
  0x6e   : > { %v479_v19 = vsel %vm415_vm8, %v383_v63, %v447_v27  ;;  %509 = vst.msk [vmem:[#allocation2 + $0x141] sm:$0xff] %vm483_vm6, %v475_v35  ;;  %512 = vst.msk [vmem:[#allocation2 + $0x169] sm:$0xff] %vm483_vm6, %v478_v37  ;;  %v733_v50 = vrot.slane %v4509_v25, 1  ;;  %v737_v51 = vrot.slane %v582_v31, 1  ;;  %vm416_vm9 = vcmp.ge.f32.partialorder %v384_v34, 0.0  ;;  %s4085_s7 = smov 44  }
  0x6f   : > { %513 = vst.msk [vmem:[#allocation2 + $0x171] sm:$0xff] %vm483_vm6, %v479_v19  ;;  %v736_v54 = vrot.slane %v4519_v46, 1  ;;  %v4577_v55 = vsel %vm674_vm5, %v807_v29, %v808_v26  ;;  %vm417_vm10 = vcmp.ge.f32.partialorder %v385_v48, 0.0  ;;  %v448_v58 = vmul.f32 0.2, %v384_v34  ;;  %s4086_s8 = smov 48  }
  0x70   : > { %v449_v59 = vmul.f32 0.2, %v385_v48  ;;  %v3699_v60 = vpack.i.bf16 %v4577_v55, %v4451_v36  ;;  %v3599_v1 = vpack.i.bf16 %v4514_v42, %v4388_v28  ;;  %v3624_v45 = vpack.i.bf16 %v4329_v44, %v4390_v30  ;;  %v605_v16 = vld [vmem:[#allocation2 + $0xe8] ss:$2 sm:$0x1]  ;;  %s4087_s12 = smov 52  }
  0x71   : > { %3585 = vrot.lane.b32.xlu1 %v3584_v9, %s4084_s30  ;;  %3580 = vrot.lane.b32.xlu0 %v3579_v11, %s4083_s29  ;;  %v480_v63 = vsel %vm416_vm9, %v384_v34, %v448_v58  ;;  %v4588_v9 = vld [vmem:[#allocation2 + $0x108] ss:$2 sm:$0xff]  ;;  %v4591_v11 = vsel %vm674_vm5, %v733_v50, %v734_v2  ;;  %v4594_v15 = vsel %vm674_vm5, %v736_v54, %v737_v51  ;;  %v609_v6 = vld [vmem:[#allocation2 + $0x118] ss:$2 sm:$0x1]  ;;  %v767_v29 = vrot.slane %v603_v57, 1 }
  0x72   : > { %v481_v7 = vsel %vm417_vm10, %v385_v48, %v449_v59  ;;  %514 = vst.msk [vmem:[#allocation2 + $0x181] sm:$0xff] %vm483_vm6, %v480_v63  ;;  %v3614_v22 = vpack.i.bf16 %v4588_v9, %v603_v57  ;;  %v3609_v28 = vpack.i.bf16 %v4594_v15, %v4591_v11  ;;  %v3619_v42 = vpack.i.bf16 %v4542_v14, %v4393_v32  ;;  %v4608_v8 = vld [vmem:[#allocation2 + $0x109] ss:$2 sm:$0xff]  ;;  %v645_v26 = vld [vmem:[#allocation2 + $0x119] ss:$2 sm:$0x1] }
  0x73   : > { %515 = vst.msk [vmem:[#allocation2 + $0x189] sm:$0xff] %vm483_vm6, %v481_v7  ;;  %v770_v31 = vrot.slane %v4588_v9, 1  ;;  %v3634_v44 = vpack.i.bf16 %v4608_v8, %v4547_v18  ;;  %v768_v32 = vrot.slane %v605_v16, 1  ;;  %v771_v14 = vrot.slane %v609_v6, 1  ;;  %s4088_s11 = smov 56  }
  0x74   : > { %v3644_v34 = vpack.i.bf16 %v4372_v20, %v4402_v38  ;;  %v3639_v35 = vpack.i.bf16 %v603_v57, %v4331_v47  ;;  %v810_v51 = vrot.slane %v4608_v8, 1  ;;  %v811_v38 = vrot.slane %v645_v26, 1 }
  0x75   : > { %3595 = vrot.lane.b32.xlu1 %v3594_v52, %s4078_s17  ;;  %3590 = vrot.lane.b32.xlu0 %v3589_v40, %s4077_s16  ;;  %v4610_v27 = vld [vmem:[#allocation2 + $0x138] ss:$2 sm:$0xff]  ;;  %v4626_v37 = vld [vmem:[#allocation2 + $0x139] ss:$2 sm:$0xff]  ;;  %v769_v19 = vsel %vm674_vm5, %v767_v29, %v768_v32  ;;  %v4630_v48 = vsel %vm674_vm5, %v770_v31, %v771_v14  ;;  %v3659_v7 = vpack.i.bf16 %v4547_v18, %v4395_v33  ;;  %vm1216_vm11 = vcmask 97280  }
  0x76   : > { %v4612_v4 = vld [vmem:[#allocation2 + $0x168] ss:$2 sm:$0xff]  ;;  %v4632_v52 = vld [vmem:[#allocation2 + $0x169] ss:$2 sm:$0xff]  ;;  %v4019_v40 = vld [vmem:[%s5863_s1] sm:$0xff]   ;;  %v3654_v47 = vpack.i.bf16 %v4630_v48, %v769_v19  ;;  %v773_v58 = vrot.slane %v4610_v27, 1  ;;  %v4655_v57 = vsel %vm674_vm5, %v810_v51, %v811_v38  ;;  %v3694_v26 = vpack.i.bf16 %v4511_v39, %v4490_v12 }
  0x77   : > { %v3629_v30 = vpack.i.bf16 %v4612_v4, %v4610_v27  ;;  %v613_v2 = vld [vmem:[#allocation2 + $0x148] ss:$2 sm:$0x1]  ;;  %v617_v50 = vld [vmem:[#allocation2 + $0x178] ss:$2 sm:$0x1]  ;;  %v3649_v20 = vpack.i.bf16 %v4632_v52, %v4626_v37  ;;  %3358 = vmatprep.subr.bf16.mxu0 %v4019_v40  ;;  %v3674_v33 = vpack.i.bf16 %v4655_v57, %v4577_v55  ;;  %v3709_v51 = vpack.i.bf16 %v4509_v25, %v4486_v56 }
  0x78   : > { %v776_v54 = vrot.slane %v4612_v4, 1  ;;  %v774_v59 = vrot.slane %v613_v2, 1  ;;  %v777_v63 = vrot.slane %v617_v50, 1  ;;  %3359 = vmatpush3.bf16.msra.mxu0 %v4019_v40  ;;  %v816_v18 = vrot.slane %v4632_v52, 1  ;;  %v4022_v29 = vld [vmem:[%s5863_s1 + $0x18] sm:$0xff]  }
  0x79   : > { %3605 = vrot.lane.b32.xlu1 %v3604_v0, %s4085_s7  ;;  %3600 = vrot.lane.b32.xlu0 %v3599_v1, %s4084_s30  ;;  %v4020_v0 = vld [vmem:[%s5863_s1 + $0x8] sm:$0xff]   ;;  %v3664_v1 = vpack.i.bf16 %v4421_v61, %v4433_v10  ;;  %v4021_v61 = vld [vmem:[%s5863_s1 + $0x10] sm:$0xff]   ;;  %v813_v16 = vrot.slane %v4626_v37, 1  ;;  %v3729_v25 = vpack.i.bf16 %v4591_v11, %v4545_v17  ;;  %v3749_v11 = vpack.i.bf16 %v4626_v37, %v4608_v8 }
  0x7a   : > { %3360 = vmatprep.subr.bf16.mxu0 %v4020_v0  ;;  %v586_v50 = vld [vmem:[#allocation2 + $0x191] ss:$2 sm:$0x1]  ;;  %v621_v55 = vld [vmem:[#allocation2 + $0x1a8] ss:$2 sm:$0x1] }
  0x7b   : > { %v827_v38 = vrot.slane %v586_v50, 1  ;;  %vm1225_vm12 = vcmask 130048   ;;  %vm1234_vm13 = vcmask 162816   ;;  %vm1243_vm14 = vcmask 195584  }
  0x7c   : > { %3361 = vmatpush3.bf16.msra.mxu0 %v4020_v0  ;;  %vm1252_vm15 = vcmask 228352   ;;  %vm1261_vm0 = vcmask 261120   ;;  %vm1270_vm1 = vcmask 293888   ;;  %vm1279_vm2 = vcmask 326656  }
  0x7d   : > { %3615 = vrot.lane.b32.xlu1 %v3614_v22, %s4075_s14  ;;  %3610 = vrot.lane.b32.xlu0 %v3609_v28, %s4078_s17  ;;  %v4658_v22 = vsel %vm674_vm5, %v773_v58, %v774_v59  ;;  %v4661_v28 = vsel %vm674_vm5, %v776_v54, %v777_v63  ;;  %v3719_v58 = vpack.i.bf16 %v4553_v21, %v4517_v43  ;;  %v832_v59 = vrot.slane %v621_v55, 1  ;;  %v657_v63 = vld [vmem:[#allocation2 + $0x1a9] ss:$2 sm:$0x1] }
  0x7e   : > { %v3669_v10 = vpack.i.bf16 %v4661_v28, %v4658_v22  ;;  %3362 = vmatprep.subr.bf16.mxu0 %v4021_v61  ;;  %v3739_v43 = vpack.i.bf16 %v4610_v27, %v4588_v9  ;;  %v3759_v27 = vpack.i.bf16 %v4658_v22, %v4630_v48  ;;  %vm1288_vm3 = vcmask 359424  }
  0x7f   : > { %vm1297_vm4 = vcmask 392192   ;;  %vm1306_vm7 = vcmask 424960   ;;  %vm1315_vm8 = vcmask 457728   ;;  %vm1324_vm9 = vcmask 490496  }
  0x80   : > { %3363 = vmatpush3.bf16.msra.mxu0 %v4021_v61  ;;  %vm1376_vm10 = vcmask 523264  }
  0x81   : > { %3625 = vrot.lane.b32.xlu1 %v3624_v45, %s4086_s8  ;;  %3620 = vrot.lane.b32.xlu0 %v3619_v42, %s4085_s7  ;;  %v649_v45 = vld [vmem:[#allocation2 + $0x149] ss:$2 sm:$0x1]  ;;  %v653_v42 = vld [vmem:[#allocation2 + $0x179] ss:$2 sm:$0x1] }
  0x82   : > { %v814_v6 = vrot.slane %v649_v45, 1  ;;  %v817_v31 = vrot.slane %v653_v42, 1  ;;  %3364 = vmatprep.subr.bf16.mxu0 %v4022_v29 }
  0x84   : > { %v4683_v32 = vsel %vm674_vm5, %v813_v16, %v814_v6  ;;  %v818_v14 = vsel %vm674_vm5, %v816_v18, %v817_v31  ;;  %3365 = vmatpush3.bf16.msra.mxu0 %v4022_v29 }
  0x85   : > { %3635 = vrot.lane.b32.xlu1 %v3634_v44, %s4079_s18  ;;  %3630 = vrot.lane.b32.xlu0 %v3629_v30, %s4075_s14  ;;  %v3684_v44 = vpack.i.bf16 %v4441_v23, %v4461_v41  ;;  %v3679_v30 = vpack.i.bf16 %v769_v19, %v4426_v62  ;;  %v548_v23 = vld [vmem:[#allocation2 + $0x180] ss:$2 sm:$0xff]  ;;  %v550_v41 = vld [vmem:[#allocation2 + $0x190] ss:$2 sm:$0x1]  ;;  %v3769_v37 = vpack.i.bf16 %v4683_v32, %v4655_v57 }
  0x86   : > { %v3704_v62 = vpack.i.bf16 %v548_v23, %v4523_v49  ;;  %v584_v19 = vld [vmem:[#allocation2 + $0x181] ss:$2 sm:$0xff]  ;;  %v822_v2 = vrot.slane %v550_v41, 1 }
  0x87   : > { %v3714_v40 = vpack.i.bf16 %v584_v19, %v4519_v46  ;;  %v619_v46 = vld [vmem:[#allocation2 + $0x198] ss:$2 sm:$0xff] }
  0x88   : > { %v831_v21 = vrot.slane %v619_v46, 1 }
  0x89   : > { %3645 = vrot.lane.b32.xlu1 %v3644_v34, %s4087_s12  ;;  %3640 = vrot.lane.b32.xlu0 %v3639_v35, %s4086_s8  ;;  %v3689_v34 = vpack.i.bf16 %v818_v14, %v4683_v32  ;;  %v821_v35 = vrot.slane %v548_v23, 1 }
  0x8a   : > { %v833_v0 = vsel %vm674_vm5, %v831_v21, %v832_v59 }
  0x8b   : > { %v3764_v9 = vpack.i.bf16 %v833_v0, %v4661_v28 }
  0x8d   : > { %3655 = vrot.lane.b32.xlu1 %v3654_v47, %s4080_s19  ;;  %3650 = vrot.lane.b32.xlu0 %v3649_v20, %s4079_s18  ;;  %s4089_s18 = smov 60   ;;  %v826_v47 = vrot.slane %v584_v19, 1  ;;  %v823_v20 = vsel %vm674_vm5, %v821_v35, %v822_v2 }
  0x8e   : > { %v3724_v54 = vpack.i.bf16 %v823_v20, %v4556_v24  ;;  %v3744_v24 = vpack.i.bf16 %v619_v46, %v4612_v4  ;;  %v837_v4 = vrot.slane %v657_v63, 1 }
  0x8f   : > { %v828_v36 = vsel %vm674_vm5, %v826_v47, %v827_v38 }
  0x90   : > { %v3734_v56 = vpack.i.bf16 %v828_v36, %v4594_v15 }
  0x91   : > { %3665 = vrot.lane.b32.xlu1 %v3664_v1, %s4088_s11  ;;  %3660 = vrot.lane.b32.xlu0 %v3659_v7, %s4087_s12 }
  0x95   : > { %3675 = vrot.lane.b32.xlu1 %v3674_v33, %s4081_s20  ;;  %3670 = vrot.lane.b32.xlu0 %v3669_v10, %s4080_s19 }
  0x99   : > { %3685 = vrot.lane.b32.xlu1 %v3684_v44, %s4089_s18  ;;  %3680 = vrot.lane.b32.xlu0 %v3679_v30, %s4088_s11 }
  0x9d   : > { %3695 = vrot.lane.b32.xlu1 %v3694_v26, %s4082_s28  ;;  %3690 = vrot.lane.b32.xlu0 %v3689_v34, %s4081_s20 }
  0xa1   : > { %3705 = vrot.lane.b32.xlu1 %v3704_v62, %s4082_s28  ;;  %3700 = vrot.lane.b32.xlu0 %v3699_v60, %s4089_s18  ;;  %v655_v60 = vld [vmem:[#allocation2 + $0x199] ss:$2 sm:$0xff] }
  0xa2   : > { %v3754_v17 = vpack.i.bf16 %v655_v60, %v4632_v52  ;;  %v836_v15 = vrot.slane %v655_v60, 1 }
  0xa4   : > { %v838_v1 = vsel %vm674_vm5, %v836_v15, %v837_v4  ;;  %vm1207_vm5 = vcmask 64512  }
  0xa5   : > { %3715 = vrot.lane.b32.xlu1 %v3714_v40, %s4083_s29  ;;  %3710 = vrot.lane.b32.xlu0 %v3709_v51, %s4083_s29  ;;  %v3774_v8 = vpack.i.bf16 %v838_v1, %v818_v14 }
  0xa9   : > { %3725 = vrot.lane.b32.xlu1 %v3724_v54, %s4084_s30  ;;  %3720 = vrot.lane.b32.xlu0 %v3719_v58, %s4084_s30  ;;  %s3257_s30 = sshll.u32 %s4056_s21, 8 }
  0xad   : > { %3735 = vrot.lane.b32.xlu1 %v3734_v56, %s4085_s7  ;;  %3730 = vrot.lane.b32.xlu0 %v3729_v25, %s4085_s7  ;;  %s5432_s7 = scalar_lea.vmem [#allocation4], %s3257_s30 }
  0xb1   : > { %3745 = vrot.lane.b32.xlu1 %v3744_v24, %s4086_s8  ;;  %3740 = vrot.lane.b32.xlu0 %v3739_v43, %s4086_s8 }
  0xb5   : > { %3755 = vrot.lane.b32.xlu1 %v3754_v17, %s4087_s12  ;;  %3750 = vrot.lane.b32.xlu0 %v3749_v11, %s4087_s12 }
  0xb9   : > { %3765 = vrot.lane.b32.xlu1 %v3764_v9, %s4088_s11  ;;  %3760 = vrot.lane.b32.xlu0 %v3759_v27, %s4088_s11  ;;  %v4735_v52 = vpop.permute.xlu1 %3495 }
  0xba   : > { %v4737_v7 = vpop.permute.xlu0 %3480  ;;  %v3498_v11 = vunpack.i.h.bf16 %v4735_v52  ;;  %v3497_v4 = vunpack.i.l.bf16 %v4735_v52 }
  0xbb   : > { %v3483_v36 = vunpack.i.h.bf16 %v4737_v7  ;;  %v3482_v46 = vunpack.i.l.bf16 %v4737_v7 }
  0xbd   : > { %3775 = vrot.lane.b32.xlu1 %v3774_v8, %s4089_s18  ;;  %3770 = vrot.lane.b32.xlu0 %v3769_v37, %s4089_s18  ;;  %v1200_v9 = vsel %vm483_vm6, %v4337_v53, %v3483_v36  ;;  %v4031_v8 = vld [vmem:[#allocation2] ss:$2 sm:$0xff] }
  0xbe   : > { %v3486_v28 = vpop.permute.xlu0 %3485  ;;  %v4741_v48 = vpop.permute.xlu1 %3500  ;;  %v1199_v37 = vsel %vm483_vm6, %v4031_v8, %v3482_v46 }
  0xbf   : > { %v3488_v56 = vunpack.i.h.bf16 %v3486_v28  ;;  %v3487_v25 = vunpack.i.l.bf16 %v3486_v28  ;;  %v3503_v55 = vunpack.i.h.bf16 %v4741_v48  ;;  %v3502_v59 = vunpack.i.l.bf16 %v4741_v48 }
  0xc1   : > { %v1202_v27 = vsel %vm483_vm6, %v4368_v13, %v3488_v56  ;;  %v1201_v1 = vsel %vm483_vm6, %v4356_v3, %v3487_v25  ;;  %v1209_v7 = vsel %vm1207_vm5, %v1200_v9, %v3503_v55  ;;  %v1208_v53 = vsel %vm1207_vm5, %v1199_v37, %v3502_v59 }
  0xc3   : > { %v4743_v22 = vpop.permute.xlu1 %3505  ;;  %v4745_v45 = vpop.permute.xlu0 %3490 }
  0xc4   : > { %v3508_v24 = vunpack.i.h.bf16 %v4743_v22  ;;  %v3507_v43 = vunpack.i.l.bf16 %v4743_v22  ;;  %v3493_v13 = vunpack.i.h.bf16 %v4745_v45 }
  0xc6   : > { %v1211_v28 = vsel %vm1207_vm5, %v1202_v27, %v3508_v24  ;;  %v1210_v48 = vsel %vm1207_vm5, %v1201_v1, %v3507_v43 }
  0xc7   : > { %v4747_v42 = vpop.permute.xlu1 %3520  ;;  %v4749_v61 = vpop.permute.xlu0 %3510 }
  0xc8   : > { %v3523_v63 = vunpack.i.h.bf16 %v4747_v42  ;;  %v3522_v17 = vunpack.i.l.bf16 %v4747_v42  ;;  %v3513_v15 = vunpack.i.h.bf16 %v4749_v61  ;;  %v3512_v0 = vunpack.i.l.bf16 %v4749_v61 }
  0xca   : > { %v1219_v42 = vsel %vm1216_vm11, %v1210_v48, %v3522_v17  ;;  %v1220_v3 = vsel %vm1216_vm11, %v1211_v28, %v3523_v63  ;;  %v1218_v61 = vsel %vm1216_vm11, %v1209_v7, %v3513_v15 }
  0xcb   : > { %v4751_v57 = vpop.permute.xlu1 %3525  ;;  %v4753_v33 = vpop.permute.xlu0 %3515  ;;  %v1229_v36 = vsel %vm1225_vm12, %v1220_v3, %v3498_v11 }
  0xcf   : > { %v4755_v10 = vpop.permute.xlu1 %3535  ;;  %v4757_v18 = vpop.permute.xlu0 %3530 }
  0xd0   : > { %v3538_v56 = vunpack.i.h.bf16 %v4755_v10  ;;  %v3533_v25 = vunpack.i.h.bf16 %v4757_v18  ;;  %v3532_v55 = vunpack.i.l.bf16 %v4757_v18 }
  0xd3   : > { %v4759_v16 = vpop.permute.xlu1 %3545  ;;  %v4761_v6 = vpop.permute.xlu0 %3540 }
  0xd4   : > { %v3547_v24 = vunpack.i.l.bf16 %v4759_v16  ;;  %v3548_v59 = vunpack.i.h.bf16 %v4759_v16  ;;  %v3542_v63 = vunpack.i.l.bf16 %v4761_v6  ;;  %v3543_v18 = vunpack.i.h.bf16 %v4761_v6 }
  0xd7   : > { %v3556_v31 = vpop.permute.xlu1 %3555  ;;  %v4763_v29 = vpop.permute.xlu0 %3550 }
  0xd8   : > { %v3558_v32 = vunpack.i.h.bf16 %v3556_v31  ;;  %v3557_v14 = vunpack.i.l.bf16 %v3556_v31  ;;  %v1217_v31 = vsel %vm1216_vm11, %v1208_v53, %v3512_v0  ;;  %v3553_v9 = vunpack.i.h.bf16 %v4763_v29 }
  0xd9   : > { %v3552_v16 = vunpack.i.l.bf16 %v4763_v29 }
  0xda   : > { %v1204_v62 = vsel %vm483_vm6, %v4490_v12, %v3558_v32  ;;  %v1203_v35 = vsel %vm483_vm6, %v4481_v5, %v3557_v14  ;;  %v3528_v32 = vunpack.i.h.bf16 %v4751_v57  ;;  %v3527_v14 = vunpack.i.l.bf16 %v4751_v57 }
  0xdb   : > { %v4765_v44 = vpop.permute.xlu1 %3565  ;;  %v4767_v30 = vpop.permute.xlu0 %3560 }
  0xdc   : > { %v3568_v7 = vunpack.i.h.bf16 %v4765_v44  ;;  %v3567_v6 = vunpack.i.l.bf16 %v4765_v44 }
  0xdf   : > { %v3576_v26 = vpop.permute.xlu1 %3575  ;;  %v4769_v34 = vpop.permute.xlu0 %3570 }
  0xe0   : > { %v3578_v23 = vunpack.i.h.bf16 %v3576_v26  ;;  %v3577_v41 = vunpack.i.l.bf16 %v3576_v26  ;;  %v3492_v26 = vunpack.i.l.bf16 %v4745_v45 }
  0xe2   : > { %v4776_v19 = vsel %vm1207_vm5, %v1203_v35, %v3577_v41  ;;  %v4779_v2 = vsel %vm1207_vm5, %v1204_v62, %v3578_v23  ;;  %v3518_v23 = vunpack.i.h.bf16 %v4753_v33  ;;  %v3517_v41 = vunpack.i.l.bf16 %v4753_v33 }
  0xe3   : > { %v4781_v50 = vpop.permute.xlu1 %3585  ;;  %v4783_v40 = vpop.permute.xlu0 %3580  ;;  %v3537_v62 = vunpack.i.l.bf16 %v4755_v10  ;;  %v1228_v35 = vsel %vm1225_vm12, %v1219_v42, %v3497_v4  ;;  %v1226_v45 = vsel %vm1225_vm12, %v1217_v31, %v3492_v26  ;;  %v1227_v33 = vsel %vm1225_vm12, %v1218_v61, %v3493_v13 }
  0xe4   : > { %v1237_v43 = vsel %vm1234_vm13, %v1228_v35, %v3527_v14  ;;  %v1238_v10 = vsel %vm1234_vm13, %v1229_v36, %v3528_v32  ;;  %v1235_v17 = vsel %vm1234_vm13, %v1226_v45, %v3517_v41  ;;  %v1236_v11 = vsel %vm1234_vm13, %v1227_v33, %v3518_v23 }
  0xe5   : > { %v1246_v15 = vsel %vm1243_vm14, %v1237_v43, %v3537_v62  ;;  %v1247_v0 = vsel %vm1243_vm14, %v1238_v10, %v3538_v56  ;;  %v1245_v4 = vsel %vm1243_vm14, %v1236_v11, %v3533_v25  ;;  %v1244_v8 = vsel %vm1243_vm14, %v1235_v17, %v3532_v55 }
  0xe6   : > { %v1255_v37 = vsel %vm1252_vm15, %v1246_v15, %v3547_v24  ;;  %v1256_v28 = vsel %vm1252_vm15, %v1247_v0, %v3548_v59  ;;  %v1253_v48 = vsel %vm1252_vm15, %v1244_v8, %v3542_v63  ;;  %v3588_v53 = vunpack.i.h.bf16 %v4781_v50 }
  0xe7   : > { %v4785_v51 = vpop.permute.xlu1 %3595  ;;  %v4787_v47 = vpop.permute.xlu0 %3590  ;;  %v3587_v29 = vunpack.i.l.bf16 %v4781_v50  ;;  %v1254_v13 = vsel %vm1252_vm15, %v1245_v4, %v3543_v18  ;;  %v3563_v42 = vunpack.i.h.bf16 %v4767_v30  ;;  %v1262_v31 = vsel %vm1261_vm0, %v1253_v48, %v3552_v16 }
  0xe8   : > { %v1263_v44 = vsel %vm1261_vm0, %v1254_v13, %v3553_v9  ;;  %v1271_v23 = vsel %vm1270_vm1, %v1262_v31, %v3567_v6  ;;  %v3562_v45 = vunpack.i.l.bf16 %v4767_v30  ;;  %v3583_v24 = vunpack.i.h.bf16 %v4783_v40 }
  0xe9   : > { %v1272_v41 = vsel %vm1270_vm1, %v1263_v44, %v3568_v7  ;;  %v1280_v35 = vsel %vm1279_vm2, %v1271_v23, %v3587_v29  ;;  %v3582_v43 = vunpack.i.l.bf16 %v4783_v40 }
  0xea   : > { %v1281_v36 = vsel %vm1279_vm2, %v1272_v41, %v3588_v53  ;;  %v1264_v7 = vsel %vm1261_vm0, %v1255_v37, %v3562_v45 }
  0xeb   : > { %v4789_v20 = vpop.permute.xlu1 %3605  ;;  %v4791_v12 = vpop.permute.xlu0 %3600  ;;  %v1273_v29 = vsel %vm1270_vm1, %v1264_v7, %v3582_v43 }
  0xec   : > { %v3608_v3 = vunpack.i.h.bf16 %v4789_v20  ;;  %v3607_v61 = vunpack.i.l.bf16 %v4789_v20  ;;  %v3603_v18 = vunpack.i.h.bf16 %v4791_v12  ;;  %v3602_v0 = vunpack.i.l.bf16 %v4791_v12 }
  0xee   : > { %v1289_v33 = vsel %vm1288_vm3, %v1280_v35, %v3607_v61  ;;  %v1290_v55 = vsel %vm1288_vm3, %v1281_v36, %v3608_v3  ;;  %v1282_v3 = vsel %vm1279_vm2, %v1273_v29, %v3602_v0 }
  0xef   : > { %v4793_v38 = vpop.permute.xlu1 %3615  ;;  %v4795_v5 = vpop.permute.xlu0 %3610 }
  0xf3   : > { %v4797_v54 = vpop.permute.xlu1 %3625  ;;  %v4799_v58 = vpop.permute.xlu0 %3620 }
  0xf4   : > { %v3628_v32 = vunpack.i.h.bf16 %v4797_v54  ;;  %v3627_v14 = vunpack.i.l.bf16 %v4797_v54  ;;  %v1265_v54 = vsel %vm1261_vm0, %v1256_v28, %v3563_v42  ;;  %v3623_v9 = vunpack.i.h.bf16 %v4799_v58 }
  0xf5   : > { %v3622_v16 = vunpack.i.l.bf16 %v4799_v58  ;;  %v1274_v13 = vsel %vm1270_vm1, %v1265_v54, %v3583_v24  ;;  %v3592_v54 = vunpack.i.l.bf16 %v4787_v47 }
  0xf6   : > { %v1299_v10 = vsel %vm1297_vm4, %v1290_v55, %v3628_v32  ;;  %v1283_v37 = vsel %vm1279_vm2, %v1274_v13, %v3603_v18  ;;  %v3573_v32 = vunpack.i.h.bf16 %v4769_v34 }
  0xf7   : > { %v4806_v21 = vpop.permute.xlu1 %3635  ;;  %v4808_v60 = vpop.permute.xlu0 %3630  ;;  %v1292_v44 = vsel %vm1288_vm3, %v1283_v37, %v3623_v9 }
  0xf8   : > { %v1206_v24 = vsel %vm483_vm6, %v4523_v49, %v3573_v32  ;;  %v3633_v18 = vunpack.i.h.bf16 %v4808_v60  ;;  %v3632_v0 = vunpack.i.l.bf16 %v4808_v60 }
  0xfb   : > { %v4827_v22 = vpop.permute.xlu1 %3645  ;;  %v4829_v52 = vpop.permute.xlu0 %3640 }
  0xfc   : > { %v3648_v62 = vunpack.i.h.bf16 %v4827_v22  ;;  %v3647_v20 = vunpack.i.l.bf16 %v4827_v22  ;;  %v1298_v22 = vsel %vm1297_vm4, %v1289_v33, %v3627_v14  ;;  %v3643_v6 = vunpack.i.h.bf16 %v4829_v52 }
  0xfd   : > { %v3642_v28 = vunpack.i.l.bf16 %v4829_v52  ;;  %v1291_v52 = vsel %vm1288_vm3, %v1282_v3, %v3622_v16  ;;  %v3572_v14 = vunpack.i.l.bf16 %v4769_v34 }
  0xfe   : > { %v1307_v17 = vsel %vm1306_vm7, %v1298_v22, %v3647_v20  ;;  %v1308_v11 = vsel %vm1306_vm7, %v1299_v10, %v3648_v62 }
  0xff   : > { %v4847_v57 = vpop.permute.xlu1 %3655  ;;  %v4849_v46 = vpop.permute.xlu0 %3650  ;;  %v1300_v23 = vsel %vm1297_vm4, %v1291_v52, %v3642_v28  ;;  %v1205_v43 = vsel %vm483_vm6, %v4511_v39, %v3572_v14  ;;  %v3618_v39 = vunpack.i.h.bf16 %v4793_v38 }
 0x100   : > { %v3657_v7 = vunpack.i.l.bf16 %v4847_v57 }
 0x103   : > { %v3666_v27 = vpop.permute.xlu1 %3665  ;;  %v4867_v1 = vpop.permute.xlu0 %3660 }
 0x104   : > { %v3668_v56 = vunpack.i.h.bf16 %v3666_v27  ;;  %v3667_v25 = vunpack.i.l.bf16 %v3666_v27  ;;  %v3663_v58 = vunpack.i.h.bf16 %v4867_v1  ;;  %v3662_v42 = vunpack.i.l.bf16 %v4867_v1 }
 0x105   : > { %v1301_v1 = vsel %vm1297_vm4, %v1292_v44, %v3643_v6 }
 0x106   : > { %v1316_v4 = vsel %vm1315_vm8, %v1307_v17, %v3667_v25  ;;  %v1317_v40 = vsel %vm1315_vm8, %v1308_v11, %v3668_v56  ;;  %v1309_v20 = vsel %vm1306_vm7, %v1300_v23, %v3662_v42  ;;  %v1310_v35 = vsel %vm1306_vm7, %v1301_v1, %v3663_v58 }
 0x107   : > { %v4885_v26 = vpop.permute.xlu1 %3675  ;;  %v4887_v50 = vpop.permute.xlu0 %3670  ;;  %v3593_v25 = vunpack.i.h.bf16 %v4787_v47  ;;  %v3598_v47 = vunpack.i.h.bf16 %v4785_v51  ;;  %v3613_v17 = vunpack.i.h.bf16 %v4795_v5  ;;  %v3612_v11 = vunpack.i.l.bf16 %v4795_v5 }
 0x108   : > { %v3653_v5 = vunpack.i.h.bf16 %v4849_v46  ;;  %v3672_v6 = vunpack.i.l.bf16 %v4887_v50  ;;  %v3677_v37 = vunpack.i.l.bf16 %v4885_v26 }
 0x109   : > { %v1215_v49 = vsel %vm1207_vm5, %v1206_v24, %v3593_v25 }
 0x10b   : > { %v3686_v59 = vpop.permute.xlu1 %3685  ;;  %v3681_v63 = vpop.permute.xlu0 %3680 }
 0x10c   : > { %v3688_v15 = vunpack.i.h.bf16 %v3686_v59  ;;  %v3687_v30 = vunpack.i.l.bf16 %v3686_v59  ;;  %v3683_v61 = vunpack.i.h.bf16 %v3681_v63  ;;  %v3682_v31 = vunpack.i.l.bf16 %v3681_v63 }
 0x10d   : > { %v3597_v63 = vunpack.i.l.bf16 %v4785_v51  ;;  %v3638_v51 = vunpack.i.h.bf16 %v4806_v21 }
 0x10e   : > { %v1325_v27 = vsel %vm1324_vm9, %v1316_v4, %v3687_v30  ;;  %v1326_v8 = vsel %vm1324_vm9, %v1317_v40, %v3688_v15  ;;  %v1318_v45 = vsel %vm1315_vm8, %v1309_v20, %v3682_v31  ;;  %v1319_v34 = vsel %vm1315_vm8, %v1310_v35, %v3683_v61 }
 0x10f   : > { %v4916_v48 = vpop.permute.xlu1 %3695  ;;  %v4918_v12 = vpop.permute.xlu0 %3690  ;;  %v1333_v53 = vpack.c.bf16 %v1326_v8, %v1325_v27  ;;  %v1214_v15 = vsel %vm1207_vm5, %v1205_v43, %v3592_v54  ;;  %v3617_v30 = vunpack.i.l.bf16 %v4793_v38  ;;  %v3637_v4 = vunpack.i.l.bf16 %v4806_v21 }
 0x110   : > { %v3652_v40 = vunpack.i.l.bf16 %v4849_v46  ;;  %v1221_v27 = vsel %vm1216_vm11, %v4776_v19, %v3597_v63  ;;  %v1222_v38 = vsel %vm1216_vm11, %v4779_v2, %v3598_v47  ;;  %v1223_v60 = vsel %vm1216_vm11, %v1214_v15, %v3612_v11 }
 0x111   : > { %3366 = vmatprep.mubr.msk.bf16.mxu0 %vm1376_vm10, %v1333_v53  ;;  %v1224_v8 = vsel %vm1216_vm11, %v1215_v49, %v3613_v17  ;;  %v3658_v21 = vunpack.i.h.bf16 %v4847_v57  ;;  %v3673_v46 = vunpack.i.h.bf16 %v4887_v50  ;;  %v1230_v28 = vsel %vm1225_vm12, %v1221_v27, %v3617_v30 }
 0x112   : > { %v1231_v53 = vsel %vm1225_vm12, %v1222_v38, %v3618_v39  ;;  %v1232_v19 = vsel %vm1225_vm12, %v1223_v60, %v3632_v0  ;;  %v1233_v2 = vsel %vm1225_vm12, %v1224_v8, %v3633_v18  ;;  %v1239_v29 = vsel %vm1234_vm13, %v1230_v28, %v3637_v4 }
 0x113   : > { %v4933_v41 = vpop.permute.xlu1 %3705  ;;  %v3701_v62 = vpop.permute.xlu0 %3700  ;;  %v1240_v13 = vsel %vm1234_vm13, %v1231_v53, %v3638_v51  ;;  %v1241_v58 = vsel %vm1234_vm13, %v1232_v19, %v3652_v40  ;;  %v1242_v57 = vsel %vm1234_vm13, %v1233_v2, %v3653_v5  ;;  %v3678_v50 = vunpack.i.h.bf16 %v4885_v26 }
 0x114   : > { %v3703_v36 = vunpack.i.h.bf16 %v3701_v62  ;;  %v3702_v56 = vunpack.i.l.bf16 %v3701_v62  ;;  %v3693_v61 = vunpack.i.h.bf16 %v4918_v12  ;;  %v3692_v31 = vunpack.i.l.bf16 %v4918_v12 }
 0x115   : > { %v1248_v52 = vsel %vm1243_vm14, %v1239_v29, %v3657_v7  ;;  %v1249_v44 = vsel %vm1243_vm14, %v1240_v13, %v3658_v21  ;;  %v1250_v32 = vsel %vm1243_vm14, %v1241_v58, %v3672_v6  ;;  %v1251_v14 = vsel %vm1243_vm14, %v1242_v57, %v3673_v46 }
 0x116   : > { %v1327_v33 = vsel %vm1324_vm9, %v1318_v45, %v3702_v56  ;;  %v1328_v55 = vsel %vm1324_vm9, %v1319_v34, %v3703_v36  ;;  %v3698_v23 = vunpack.i.h.bf16 %v4916_v48  ;;  %v3697_v1 = vunpack.i.l.bf16 %v4916_v48 }
 0x117   : > { %v1334_v22 = vpack.c.bf16 %v1328_v55, %v1327_v33  ;;  %v4947_v10 = vpop.permute.xlu1 %3715  ;;  %v4949_v59 = vpop.permute.xlu0 %3710  ;;  %v3708_v62 = vunpack.i.h.bf16 %v4933_v41  ;;  %v3707_v26 = vunpack.i.l.bf16 %v4933_v41  ;;  %v1257_v54 = vsel %vm1252_vm15, %v1248_v52, %v3677_v37 }
 0x118   : > { %v3718_v20 = vunpack.i.h.bf16 %v4947_v10  ;;  %v3717_v12 = vunpack.i.l.bf16 %v4947_v10  ;;  %v3713_v35 = vunpack.i.h.bf16 %v4949_v59  ;;  %v3712_v36 = vunpack.i.l.bf16 %v4949_v59 }
 0x119   : > { %3367 = vmatmul.mubr.msk.bf16.vlgmr.msra.gmra.mrb[0].mxu0 %vm1376_vm10, %v1334_v22  ;;  %v1258_v45 = vsel %vm1252_vm15, %v1249_v44, %v3678_v50  ;;  %v1259_v48 = vsel %vm1252_vm15, %v1250_v32, %v3692_v31  ;;  %v1260_v34 = vsel %vm1252_vm15, %v1251_v14, %v3693_v61  ;;  %v1266_v43 = vsel %vm1261_vm0, %v1257_v54, %v3697_v1 }
 0x11a   : > { %v1267_v22 = vsel %vm1261_vm0, %v1258_v45, %v3698_v23  ;;  %v1268_v10 = vsel %vm1261_vm0, %v1259_v48, %v3707_v26  ;;  %v1269_v59 = vsel %vm1261_vm0, %v1260_v34, %v3708_v62  ;;  %v1275_v11 = vsel %vm1270_vm1, %v1266_v43, %v3712_v36 }
 0x11b   : > { %v4966_v9 = vpop.permute.xlu1 %3725  ;;  %v4968_v16 = vpop.permute.xlu0 %3720  ;;  %v1277_v47 = vsel %vm1270_vm1, %v1268_v10, %v3717_v12  ;;  %v1278_v63 = vsel %vm1270_vm1, %v1269_v59, %v3718_v20  ;;  %v1276_v17 = vsel %vm1270_vm1, %v1267_v22, %v3713_v35 }
 0x11c   : > { %v3728_v41 = vunpack.i.h.bf16 %v4966_v9  ;;  %v3727_v33 = vunpack.i.l.bf16 %v4966_v9  ;;  %v3723_v55 = vunpack.i.h.bf16 %v4968_v16  ;;  %v3722_v24 = vunpack.i.l.bf16 %v4968_v16 }
 0x11e   : > { %v1286_v51 = vsel %vm1279_vm2, %v1277_v47, %v3727_v33  ;;  %v1287_v4 = vsel %vm1279_vm2, %v1278_v63, %v3728_v41  ;;  %v1284_v5 = vsel %vm1279_vm2, %v1275_v11, %v3722_v24  ;;  %v1285_v40 = vsel %vm1279_vm2, %v1276_v17, %v3723_v55  ;;  %v3242_v41 = vld [vmem:[%s5864_s2] ss:$0 sm:$0xff] }
 0x11f   : > { %v3736_v42 = vpop.permute.xlu1 %3735  ;;  %v3731_v3 = vpop.permute.xlu0 %3730 }
 0x120   : > { %v3738_v39 = vunpack.i.h.bf16 %v3736_v42  ;;  %v3737_v30 = vunpack.i.l.bf16 %v3736_v42  ;;  %v3733_v18 = vunpack.i.h.bf16 %v3731_v3  ;;  %v3732_v0 = vunpack.i.l.bf16 %v3731_v3 }
 0x122   : > { %v1295_v28 = vsel %vm1288_vm3, %v1286_v51, %v3737_v30  ;;  %v1296_v53 = vsel %vm1288_vm3, %v1287_v4, %v3738_v39  ;;  %v1293_v19 = vsel %vm1288_vm3, %v1284_v5, %v3732_v0  ;;  %v1294_v2 = vsel %vm1288_vm3, %v1285_v40, %v3733_v18  ;;  %v1495_v4 = vld [vmem:[#allocation3] sm:$0xff] }
 0x123   : > { %v3746_v56 = vpop.permute.xlu1 %3745  ;;  %v3741_v25 = vpop.permute.xlu0 %3740 }
 0x124   : > { %v3748_v9 = vunpack.i.h.bf16 %v3746_v56  ;;  %v3747_v16 = vunpack.i.l.bf16 %v3746_v56  ;;  %v3743_v27 = vunpack.i.h.bf16 %v3741_v25  ;;  %v3742_v38 = vunpack.i.l.bf16 %v3741_v25 }
 0x126   : > { %v1304_v42 = vsel %vm1297_vm4, %v1295_v28, %v3747_v16  ;;  %v1305_v3 = vsel %vm1297_vm4, %v1296_v53, %v3748_v9  ;;  %v1302_v50 = vsel %vm1297_vm4, %v1293_v19, %v3742_v38  ;;  %v1303_v37 = vsel %vm1297_vm4, %v1294_v2, %v3743_v27  ;;  %v1805_v38 = vld [vmem:[#allocation3 + $0x2] sm:$0xff] }
 0x127   : > { %v3756_v15 = vpop.permute.xlu1 %3755  ;;  %v3751_v49 = vpop.permute.xlu0 %3750 }
 0x128   : > { %v3758_v60 = vunpack.i.h.bf16 %v3756_v15  ;;  %v3757_v8 = vunpack.i.l.bf16 %v3756_v15  ;;  %v3753_v21 = vunpack.i.h.bf16 %v3751_v49  ;;  %v3752_v7 = vunpack.i.l.bf16 %v3751_v49  ;;  %v1487_v49 = vld [vmem:[#allocation3 + $0x1] sm:$0xff] }
 0x12a   : > { %v1313_v61 = vsel %vm1306_vm7, %v1304_v42, %v3757_v8  ;;  %v1314_v31 = vsel %vm1306_vm7, %v1305_v3, %v3758_v60  ;;  %v1311_v52 = vsel %vm1306_vm7, %v1302_v50, %v3752_v7  ;;  %v1312_v44 = vsel %vm1306_vm7, %v1303_v37, %v3753_v21  ;;  %v4023_v21 = vld [vmem:[%s5865_s3] sm:$0xff]  }
 0x12b   : > { %v3766_v46 = vpop.permute.xlu1 %3765  ;;  %v3761_v6 = vpop.permute.xlu0 %3760  ;;  %3374 = vmatprep.subr.bf16.mxu1 %v4023_v21 }
 0x12c   : > { %v3768_v29 = vunpack.i.h.bf16 %v3766_v46  ;;  %v3767_v13 = vunpack.i.l.bf16 %v3766_v46  ;;  %v3763_v58 = vunpack.i.h.bf16 %v3761_v6  ;;  %v3762_v57 = vunpack.i.l.bf16 %v3761_v6  ;;  %3375 = vmatpush3.bf16.msra.mxu1 %v4023_v21  ;;  %v4024_v6 = vld [vmem:[%s5865_s3 + $0x8] sm:$0xff]  }
 0x12d   : > { %3376 = vmatprep.subr.bf16.mxu1 %v4024_v6 }
 0x12e   : > { %v1322_v20 = vsel %vm1315_vm8, %v1313_v61, %v3767_v13  ;;  %v1323_v12 = vsel %vm1315_vm8, %v1314_v31, %v3768_v29  ;;  %v1320_v35 = vsel %vm1315_vm8, %v1311_v52, %v3762_v57  ;;  %v1321_v36 = vsel %vm1315_vm8, %v1312_v44, %v3763_v58 }
 0x12f   : > { %v3776_v32 = vpop.permute.xlu1 %3775  ;;  %v3771_v14 = vpop.permute.xlu0 %3770 }
 0x130   : > { %v3778_v23 = vunpack.i.h.bf16 %v3776_v32  ;;  %v3777_v1 = vunpack.i.l.bf16 %v3776_v32  ;;  %v3773_v62 = vunpack.i.h.bf16 %v3771_v14  ;;  %v3772_v26 = vunpack.i.l.bf16 %v3771_v14  ;;  %3377 = vmatpush3.bf16.msra.mxu1 %v4024_v6 }
 0x132   : > { %v1331_v56 = vsel %vm1324_vm9, %v1322_v20, %v3777_v1  ;;  %v1332_v25 = vsel %vm1324_vm9, %v1323_v12, %v3778_v23  ;;  %v1329_v54 = vsel %vm1324_vm9, %v1320_v35, %v3772_v26  ;;  %v1330_v45 = vsel %vm1324_vm9, %v1321_v36, %v3773_v62  ;;  %v4025_v23 = vld [vmem:[%s5865_s3 + $0x20] sm:$0xff]   ;;  %v4026_v26 = vld [vmem:[%s5865_s3 + $0x28] sm:$0xff]  }
 0x133   : > { %v1336_v48 = vpack.c.bf16 %v1332_v25, %v1331_v56  ;;  %v1335_v34 = vpack.c.bf16 %v1330_v45, %v1329_v54  ;;  %3398 = vmatprep.subr.bf16.mxu0 %v4025_v23 }
 0x134   : > { %3399 = vmatpush3.bf16.msra.mxu0 %v4025_v23 }
 0x135   : > { %3370 = vmatprep.mubr.msk.bf16.mxu0 %vm1376_vm10, %v1335_v34  ;;  %3400 = vmatprep.subr.bf16.mxu0 %v4026_v26 }
 0x136   : > { %3371 = vmatmul.mubr.msk.bf16.gmra.mrb[4].mxu0 %vm1376_vm10, %v1336_v48 }
 0x138   : > { %3401 = vmatpush3.bf16.msra.mxu0 %v4026_v26 }
 0x1ec   : > { %v3368_v33 = vpop.f32.mrb[0].mxu0 }
 0x1ed   : > { %v1432_v55 = vadd.f32 %v3368_v33, %v3242_v41  ;;  %v1423_v24 = vpop.f32.mrb[1].mxu0 }
 0x1ee   : > { %v1424_v43 = vadd.f32 %v3242_v41, %v1423_v24  ;;  %v3369_v22 = vpop.f32.mrb[2].mxu0 }
 0x1ef   : > { %v1456_v10 = vmax.f32 %v1432_v55, 0.0  ;;  %v1435_v59 = vadd.f32 %v3369_v22, %v3242_v41  ;;  %v1426_v47 = vpop.f32.mrb[3].mxu0  ;;  %v5144_v55 = vld [vmem:[%s5865_s3 + $0x10] sm:$0xff]  }
 0x1f0   : > { %v1454_v63 = vmax.f32 %v1424_v43, 0.0  ;;  %v1427_v17 = vadd.f32 %v3242_v41, %v1426_v47  ;;  %3386 = vmatprep.subr.bf16.mxu1 %v5144_v55 }
 0x1f1   : > { %1465 = vst.msk [vmem:[#allocation3 + $0x31] sm:$0xff] %vm1207_vm5, %v1456_v10  ;;  %v1457_v11 = vmax.f32 %v1435_v59, 0.0 }
 0x1f2   : > { %1463 = vst.msk [vmem:[#allocation3 + $0x11] sm:$0xff] %vm1207_vm5, %v1454_v63  ;;  %v1455_v15 = vmax.f32 %v1427_v17, 0.0  ;;  %v2123_v17 = vld [vmem:[#allocation3 + $0x90] sm:$0xff] }
 0x1f3   : > { %1466 = vst.msk [vmem:[#allocation3 + $0x41] sm:$0xff] %vm1207_vm5, %v1457_v11 }
 0x1f4   : > { %1464 = vst.msk [vmem:[#allocation3 + $0x21] sm:$0xff] %vm1207_vm5, %v1455_v15 }
 0x1f8   : > { %v1481_v18 = vld [vmem:[#allocation3 + $0x30] sm:$0xff] }
 0x1f9   : > { %v5053_v39 = vld [vmem:[#allocation3 + $0x11] sm:$0xff] }
 0x1fa   : > { %v3779_v30 = vpack.i.bf16 %v5053_v39, %v1487_v49  ;;  %v5056_v0 = vld [vmem:[#allocation3 + $0x40] sm:$0xff]  ;;  %v1496_v5 = vld [vmem:[#allocation3 + $0x10] sm:$0xff] }
 0x1fb   : > { %v3799_v51 = vpack.i.bf16 %v5056_v0, %v1481_v18  ;;  %v5060_v40 = vld [vmem:[#allocation3 + $0x41] sm:$0xff]  ;;  %v3784_v9 = vpack.i.bf16 %v1496_v5, %v1495_v4  ;;  %v5063_v16 = vld [vmem:[#allocation3 + $0x31] sm:$0xff] }
 0x1fc   : > { %3780 = vrot.lane.b32.xlu0 %v3779_v30, %s4075_s14  ;;  %v5067_v27 = vpack.i.bf16 %v5060_v40, %v5063_v16  ;;  %v5069_v60 = vld [vmem:[#allocation3 + $0x12] sm:$0xff]  ;;  %v5079_v7 = vld [vmem:[#allocation3 + $0x21] sm:$0xff] }
 0x1fd   : > { %3800 = vrot.lane.b32.xlu1 %v3799_v51, %s4077_s16  ;;  %v3789_v8 = vpack.i.bf16 %v5069_v60, %v1805_v38  ;;  %v3824_v46 = vpack.i.bf16 %v5063_v16, %v5079_v7  ;;  %v1497_v28 = vld [vmem:[#allocation3 + $0x20] sm:$0xff]  ;;  %v5095_v44 = vld [vmem:[#allocation3 + $0x32] sm:$0xff]  ;;  %v3834_v1 = vpack.i.bf16 %v5079_v7, %v5053_v39 }
 0x1fe   : > { %v3829_v58 = vpack.i.bf16 %v1481_v18, %v1497_v28  ;;  %v5091_v50 = vld [vmem:[#allocation3 + $0x22] sm:$0xff]  ;;  %v3819_v52 = vpack.i.bf16 %v1497_v28, %v1496_v5 }
 0x1ff   : > { %v3839_v14 = vpack.i.bf16 %v5095_v44, %v5091_v50  ;;  %v3914_v47 = vpack.i.bf16 %v5091_v50, %v5069_v60 }
 0x200   : > { %3785 = vrot.lane.b32.xlu0 %v3784_v9, %s4080_s19 }
 0x201   : > { %3805 = vrot.lane.b32.xlu1 %v5067_v27, %s4077_s16 }
 0x204   : > { %3790 = vrot.lane.b32.xlu0 %v3789_v8, %s4075_s14 }
 0x205   : > { %3810 = vrot.lane.b32.xlu1 %v5067_v27, %s4075_s14 }
 0x208   : > { %3795 = vrot.lane.b32.xlu0 %v3779_v30, %s4080_s19 }
 0x209   : > { %v3372_v53 = vpop.f32.mrb[4].mxu0  ;;  %3825 = vrot.lane.b32.xlu1 %v3824_v46, %s4075_s14 }
 0x20a   : > { %v1448_v19 = vadd.f32 %v3372_v53, %v3242_v41  ;;  %v1439_v2 = vpop.f32.mrb[5].mxu0 }
 0x20b   : > { %v1440_v29 = vadd.f32 %v3242_v41, %v1439_v2  ;;  %v3373_v13 = vpop.f32.mrb[6].mxu0 }
 0x20c   : > { %v1460_v57 = vmax.f32 %v1448_v19, 0.0  ;;  %v1451_v42 = vadd.f32 %v3373_v13, %v3242_v41  ;;  %v1442_v3 = vpop.f32.mrb[7].mxu0  ;;  %3815 = vrot.lane.b32.xlu0 %v3799_v51, %s4080_s19 }
 0x20d   : > { %v1458_v37 = vmax.f32 %v1440_v29, 0.0  ;;  %v1443_v61 = vadd.f32 %v3242_v41, %v1442_v3  ;;  %3830 = vrot.lane.b32.xlu1 %v3829_v58, %s4080_s19  ;;  %v5136_v41 = vld [vmem:[#allocation3 + $0x42] sm:$0xff] }
 0x20e   : > { %1469 = vst.msk [vmem:[#allocation3 + $0x71] sm:$0xff] %vm1207_vm5, %v1460_v57  ;;  %v1461_v31 = vmax.f32 %v1451_v42, 0.0  ;;  %v3919_v24 = vpack.i.bf16 %v5136_v41, %v5095_v44 }
 0x20f   : > { %1467 = vst.msk [vmem:[#allocation3 + $0x51] sm:$0xff] %vm1207_vm5, %v1458_v37  ;;  %v1459_v32 = vmax.f32 %v1443_v61, 0.0 }
 0x210   : > { %1470 = vst.msk [vmem:[#allocation3 + $0x81] sm:$0xff] %vm1207_vm5, %v1461_v31  ;;  %3820 = vrot.lane.b32.xlu0 %v3819_v52, %s4077_s16 }
 0x211   : > { %1468 = vst.msk [vmem:[#allocation3 + $0x61] sm:$0xff] %vm1207_vm5, %v1459_v32  ;;  %3840 = vrot.lane.b32.xlu1 %v3839_v14, %s4075_s14 }
 0x214   : > { %3835 = vrot.lane.b32.xlu0 %v3834_v1, %s4077_s16 }
 0x215   : > { %3845 = vrot.lane.b32.xlu1 %v3824_v46, %s4080_s19  ;;  %v1485_v56 = vld [vmem:[#allocation3 + $0x70] sm:$0xff] }
 0x216   : > { %v2119_v62 = vld [vmem:[#allocation3 + $0x50] sm:$0xff] }
 0x217   : > { %v3889_v20 = vpack.i.bf16 %v2119_v62, %v5056_v0  ;;  %v5118_v12 = vld [vmem:[#allocation3 + $0x51] sm:$0xff]  ;;  %v1486_v36 = vld [vmem:[#allocation3 + $0x80] sm:$0xff] }
 0x218   : > { %3850 = vrot.lane.b32.xlu0 %v3829_v58, %s4077_s16  ;;  %v3894_v35 = vpack.i.bf16 %v5118_v12, %v5060_v40  ;;  %v3899_v25 = vpack.i.bf16 %v1486_v36, %v1485_v56  ;;  %v5126_v54 = vld [vmem:[#allocation3 + $0x81] sm:$0xff]  ;;  %v5129_v45 = vld [vmem:[#allocation3 + $0x71] sm:$0xff]  ;;  %v3944_v11 = vpack.i.bf16 %v2123_v17, %v1486_v36 }
 0x219   : > { %3865 = vrot.lane.b32.xlu1 %v3824_v46, %s4077_s16  ;;  %v3904_v48 = vpack.i.bf16 %v5126_v54, %v5129_v45  ;;  %v5133_v34 = vld [vmem:[#allocation3 + $0x52] sm:$0xff]  ;;  %v1484_v43 = vld [vmem:[#allocation3 + $0x60] sm:$0xff] }
 0x21a   : > { %v3879_v33 = vpack.i.bf16 %v5133_v34, %v5136_v41  ;;  %v5152_v22 = vld [vmem:[#allocation3 + $0x61] sm:$0xff]  ;;  %v3909_v10 = vpack.i.bf16 %v1484_v43, %v2119_v62  ;;  %v3939_v63 = vpack.i.bf16 %v1485_v56, %v1484_v43  ;;  %v5172_v30 = vld [vmem:[#allocation3 + $0x72] sm:$0xff] }
 0x21b   : > { %v3934_v59 = vpack.i.bf16 %v5129_v45, %v5152_v22  ;;  %v5167_v15 = vld [vmem:[#allocation3 + $0x62] sm:$0xff]  ;;  %v3959_v49 = vpack.i.bf16 %v5152_v22, %v5118_v12  ;;  %v5179_v0 = vld [vmem:[#allocation3 + $0x91] sm:$0xff] }
 0x21c   : > { %3855 = vrot.lane.b32.xlu0 %v3834_v1, %s4075_s14  ;;  %v3964_v18 = vpack.i.bf16 %v5172_v30, %v5167_v15  ;;  %v3974_v51 = vpack.i.bf16 %v5179_v0, %v5126_v54  ;;  %v5185_v4 = vld [vmem:[#allocation3 + $0x82] sm:$0xff]  ;;  %v4004_v9 = vpack.i.bf16 %v5167_v15, %v5133_v34 }
 0x21d   : > { %3890 = vrot.lane.b32.xlu1 %v3889_v20, %s4077_s16  ;;  %v3979_v5 = vpack.i.bf16 %v5185_v4, %v5172_v30 }
 0x220   : > { %3860 = vrot.lane.b32.xlu0 %v3819_v52, %s4080_s19 }
 0x221   : > { %3895 = vrot.lane.b32.xlu1 %v3894_v35, %s4077_s16 }
 0x224   : > { %3870 = vrot.lane.b32.xlu0 %v3894_v35, %s4075_s14 }
 0x225   : > { %3900 = vrot.lane.b32.xlu1 %v3899_v25, %s4077_s16 }
 0x228   : > { %3875 = vrot.lane.b32.xlu0 %v3889_v20, %s4080_s19 }
 0x229   : > { %3905 = vrot.lane.b32.xlu1 %v3904_v48, %s4077_s16 }
 0x22c   : > { %3880 = vrot.lane.b32.xlu0 %v3879_v33, %s4075_s14 }
 0x22d   : > { %3920 = vrot.lane.b32.xlu1 %v3919_v24, %s4075_s14 }
 0x230   : > { %3885 = vrot.lane.b32.xlu0 %v3894_v35, %s4080_s19 }
 0x231   : > { %3930 = vrot.lane.b32.xlu1 %v5067_v27, %s4080_s19 }
 0x234   : > { %3910 = vrot.lane.b32.xlu0 %v3909_v10, %s4077_s16 }
 0x235   : > { %3935 = vrot.lane.b32.xlu1 %v3934_v59, %s4075_s14 }
 0x238   : > { %3915 = vrot.lane.b32.xlu0 %v3914_v47, %s4075_s14 }
 0x239   : > { %3940 = vrot.lane.b32.xlu1 %v3939_v63, %s4080_s19 }
 0x23c   : > { %3925 = vrot.lane.b32.xlu0 %v3834_v1, %s4080_s19 }
 0x23d   : > { %3945 = vrot.lane.b32.xlu1 %v3944_v11, %s4077_s16 }
 0x240   : > { %3955 = vrot.lane.b32.xlu0 %v3899_v25, %s4080_s19 }
 0x241   : > { %3950 = vrot.lane.b32.xlu1 %v3904_v48, %s4075_s14 }
 0x244   : > { %3960 = vrot.lane.b32.xlu0 %v3959_v49, %s4077_s16 }
 0x245   : > { %3965 = vrot.lane.b32.xlu1 %v3964_v18, %s4075_s14  ;;  %v5241_v18 = vld [vmem:[%s5865_s3 + $0x30] sm:$0xff]  }
 0x248   : > { %3985 = vrot.lane.b32.xlu0 %v3939_v63, %s4077_s16 }
 0x249   : > { %3970 = vrot.lane.b32.xlu1 %v3934_v59, %s4080_s19 }
 0x24c   : > { %3990 = vrot.lane.b32.xlu0 %v3959_v49, %s4075_s14 }
 0x24d   : > { %3975 = vrot.lane.b32.xlu1 %v3974_v51, %s4077_s16 }
 0x250   : > { %3995 = vrot.lane.b32.xlu0 %v3909_v10, %s4080_s19 }
 0x251   : > { %3980 = vrot.lane.b32.xlu1 %v3979_v5, %s4075_s14 }
 0x254   : > { %4005 = vrot.lane.b32.xlu0 %v4004_v9, %s4075_s14 }
 0x255   : > { %4000 = vrot.lane.b32.xlu1 %v3934_v59, %s4077_s16 }
 0x258   : > { %4010 = vrot.lane.b32.xlu0 %v3959_v49, %s4080_s19 }
 0x259   : > { %4015 = vrot.lane.b32.xlu1 %v3904_v48, %s4080_s19 }
 0x26e   : > { %v3781_v27 = vpop.permute.xlu0 %3780 }
 0x26f   : > { %v3801_v38 = vpop.permute.xlu1 %3800  ;;  %v3783_v61 = vunpack.i.h.bf16 %v3781_v27  ;;  %v3782_v31 = vunpack.i.l.bf16 %v3781_v27 }
 0x270   : > { %v3803_v29 = vunpack.i.h.bf16 %v3801_v38  ;;  %v3802_v13 = vunpack.i.l.bf16 %v3801_v38 }
 0x272   : > { %v3786_v8 = vpop.permute.xlu0 %3785  ;;  %v1601_v23 = vsel %vm1207_vm5, %v5063_v16, %v3802_v13  ;;  %v1602_v1 = vsel %vm1207_vm5, %v5060_v40, %v3803_v29 }
 0x273   : > { %v5198_v21 = vpop.permute.xlu1 %3805  ;;  %v3788_v62 = vunpack.i.h.bf16 %v3786_v8  ;;  %v3787_v26 = vunpack.i.l.bf16 %v3786_v8 }
 0x276   : > { %v5200_v46 = vpop.permute.xlu0 %3790 }
 0x277   : > { %v5202_v6 = vpop.permute.xlu1 %3810 }
 0x278   : > { %v3813_v29 = vunpack.i.h.bf16 %v5202_v6  ;;  %v3812_v13 = vunpack.i.l.bf16 %v5202_v6 }
 0x27a   : > { %v5204_v28 = vpop.permute.xlu0 %3795 }
 0x27b   : > { %v3826_v53 = vpop.permute.xlu1 %3825 }
 0x27c   : > { %v3828_v58 = vunpack.i.h.bf16 %v3826_v53  ;;  %v3827_v57 = vunpack.i.l.bf16 %v3826_v53 }
 0x27e   : > { %v5206_v19 = vpop.permute.xlu0 %3815  ;;  %v1610_v20 = vsel %vm1225_vm12, %v1602_v1, %v3828_v58  ;;  %v1609_v35 = vsel %vm1225_vm12, %v1601_v23, %v3827_v57 }
 0x27f   : > { %v3831_v2 = vpop.permute.xlu1 %3830  ;;  %v3817_v58 = vunpack.i.l.bf16 %v5206_v19 }
 0x280   : > { %v3833_v42 = vunpack.i.h.bf16 %v3831_v2  ;;  %v3832_v3 = vunpack.i.l.bf16 %v3831_v2 }
 0x282   : > { %v3821_v37 = vpop.permute.xlu0 %3820  ;;  %v1617_v25 = vsel %vm1243_vm14, %v1609_v35, %v3832_v3  ;;  %v1618_v48 = vsel %vm1243_vm14, %v1610_v20, %v3833_v42 }
 0x283   : > { %v3823_v52 = vunpack.i.h.bf16 %v3821_v37  ;;  %v3822_v32 = vunpack.i.l.bf16 %v3821_v37  ;;  %v5208_v14 = vpop.permute.xlu1 %3840  ;;  %v1624_v17 = vpack.c.bf16 %v1618_v48, %v1617_v25 }
 0x285   : > { %v1600_v36 = vsel %vm1207_vm5, %v5079_v7, %v3823_v52  ;;  %v1599_v56 = vsel %vm1207_vm5, %v5053_v39, %v3822_v32  ;;  %v4028_v39 = vld [vmem:[%s5865_s3 + $0x18] sm:$0xff]  }
 0x286   : > { %v5222_v33 = vpop.permute.xlu0 %3835  ;;  %v1607_v24 = vsel %vm1225_vm12, %v1599_v56, %v3782_v31  ;;  %v1608_v43 = vsel %vm1225_vm12, %v1600_v36, %v3783_v61 }
 0x287   : > { %v5226_v10 = vpop.permute.xlu1 %3845  ;;  %v1615_v59 = vsel %vm1243_vm14, %v1607_v24, %v3787_v26  ;;  %v1616_v47 = vsel %vm1243_vm14, %v1608_v43, %v3788_v62  ;;  %v3807_v43 = vunpack.i.l.bf16 %v5198_v21 }
 0x288   : > { %v1623_v63 = vpack.c.bf16 %v1616_v47, %v1615_v59  ;;  %v3838_v59 = vunpack.i.h.bf16 %v5222_v33  ;;  %v3837_v47 = vunpack.i.l.bf16 %v5222_v33  ;;  %v3842_v33 = vunpack.i.l.bf16 %v5208_v14 }
 0x28a   : > { %v3851_v11 = vpop.permute.xlu0 %3850  ;;  %3378 = vmatprep.mubr.msk.bf16.mxu1 %vm1261_vm0, %v1623_v63 }
 0x28b   : > { %v5234_v49 = vpop.permute.xlu1 %3865  ;;  %3379 = vmatmul.mubr.msk.bf16.vlgmr.msra.gmra.mrb[0].mxu1 %vm1261_vm0, %v1624_v17  ;;  %v3853_v51 = vunpack.i.h.bf16 %v3851_v11  ;;  %v3852_v5 = vunpack.i.l.bf16 %v3851_v11  ;;  %v1919_v11 = vsel %vm1207_vm5, %v5095_v44, %v3807_v43 }
 0x28c   : > { %3387 = vmatpush3.bf16.msra.mxu1 %v5144_v55  ;;  %v3818_v55 = vunpack.i.h.bf16 %v5206_v19 }
 0x28d   : > { %3388 = vmatprep.subr.bf16.mxu1 %v4028_v39  ;;  %v2237_v57 = vsel %vm1207_vm5, %v5063_v16, %v3853_v51  ;;  %v2236_v42 = vsel %vm1207_vm5, %v5079_v7, %v3852_v5  ;;  %v3793_v51 = vunpack.i.h.bf16 %v5200_v46  ;;  %v3792_v5 = vunpack.i.l.bf16 %v5200_v46 }
 0x28e   : > { %v3856_v9 = vpop.permute.xlu0 %3855 }
 0x28f   : > { %v3891_v27 = vpop.permute.xlu1 %3890  ;;  %v3858_v38 = vunpack.i.h.bf16 %v3856_v9  ;;  %v3857_v8 = vunpack.i.l.bf16 %v3856_v9  ;;  %v3798_v9 = vunpack.i.h.bf16 %v5204_v28 }
 0x290   : > { %v3893_v53 = vunpack.i.h.bf16 %v3891_v27  ;;  %v3892_v2 = vunpack.i.l.bf16 %v3891_v27  ;;  %3389 = vmatpush3.bf16.msra.mxu1 %v4028_v39  ;;  %v3808_v39 = vunpack.i.h.bf16 %v5198_v21  ;;  %v3797_v27 = vunpack.i.l.bf16 %v5204_v28 }
 0x291   : > { %3410 = vmatprep.subr.bf16.mxu1 %v5241_v18  ;;  %v2244_v16 = vsel %vm1225_vm12, %v2236_v42, %v3857_v8  ;;  %v2245_v23 = vsel %vm1225_vm12, %v2237_v57, %v3858_v38  ;;  %v3843_v38 = vunpack.i.h.bf16 %v5208_v14  ;;  %v1918_v8 = vsel %vm1207_vm5, %v5091_v50, %v3838_v59 }
 0x292   : > { %v2239_v3 = vsel %vm1207_vm5, %v5118_v12, %v3893_v53  ;;  %v2238_v37 = vsel %vm1207_vm5, %v5060_v40, %v3892_v2  ;;  %v3861_v61 = vpop.permute.xlu0 %3860  ;;  %v1917_v21 = vsel %vm1207_vm5, %v5069_v60, %v3837_v47  ;;  %v3848_v53 = vunpack.i.h.bf16 %v5226_v10 }
 0x293   : > { %v2247_v6 = vsel %vm1225_vm12, %v2239_v3, %v3813_v29  ;;  %v2246_v31 = vsel %vm1225_vm12, %v2238_v37, %v3812_v13  ;;  %v3863_v19 = vunpack.i.h.bf16 %v3861_v61  ;;  %v3862_v52 = vunpack.i.l.bf16 %v3861_v61  ;;  %v5258_v32 = vpop.permute.xlu1 %3895 }
 0x294   : > { %v2254_v7 = vsel %vm1243_vm14, %v2246_v31, %v3817_v58  ;;  %v2255_v1 = vsel %vm1243_vm14, %v2247_v6, %v3818_v55  ;;  %v1926_v6 = vsel %vm1225_vm12, %v1918_v8, %v3793_v51  ;;  %v1925_v31 = vsel %vm1225_vm12, %v1917_v21, %v3792_v5 }
 0x295   : > { %v2252_v62 = vsel %vm1243_vm14, %v2244_v16, %v3862_v52  ;;  %v2253_v40 = vsel %vm1243_vm14, %v2245_v23, %v3863_v19  ;;  %v2261_v35 = vpack.c.bf16 %v2255_v1, %v2254_v7  ;;  %v3847_v23 = vunpack.i.l.bf16 %v5226_v10 }
 0x296   : > { %v2260_v26 = vpack.c.bf16 %v2253_v40, %v2252_v62  ;;  %v3871_v20 = vpop.permute.xlu0 %3870  ;;  %v1933_v10 = vsel %vm1243_vm14, %v1925_v31, %v3797_v27  ;;  %v1934_v43 = vsel %vm1243_vm14, %v1926_v6, %v3798_v9  ;;  %v1920_v59 = vsel %vm1207_vm5, %v5136_v41, %v3808_v39 }
 0x297   : > { %v3901_v36 = vpop.permute.xlu1 %3900  ;;  %v3873_v29 = vunpack.i.h.bf16 %v3871_v20  ;;  %v3872_v57 = vunpack.i.l.bf16 %v3871_v20  ;;  %v1927_v47 = vsel %vm1225_vm12, %v1919_v11, %v3842_v33  ;;  %v1928_v21 = vsel %vm1225_vm12, %v1920_v59, %v3843_v38 }
 0x298   : > { %3402 = vmatprep.mubr.msk.bf16.mxu0 %vm1261_vm0, %v2260_v26  ;;  %v3903_v13 = vunpack.i.h.bf16 %v3901_v36  ;;  %v3902_v28 = vunpack.i.l.bf16 %v3901_v36  ;;  %v1936_v9 = vsel %vm1243_vm14, %v1928_v21, %v3848_v53  ;;  %v3868_v39 = vunpack.i.h.bf16 %v5234_v49 }
 0x299   : > { %3403 = vmatmul.mubr.msk.bf16.vlgmr.msra.gmra.mrb[8].mxu0 %vm1261_vm0, %v2261_v35  ;;  %v3867_v11 = vunpack.i.l.bf16 %v5234_v49  ;;  %v1941_v33 = vpack.c.bf16 %v1934_v43, %v1933_v10 }
 0x29a   : > { %v3876_v56 = vpop.permute.xlu0 %3875  ;;  %v1606_v7 = vsel %vm1207_vm5, %v5126_v54, %v3903_v13  ;;  %v1605_v40 = vsel %vm1207_vm5, %v5129_v45, %v3902_v28  ;;  %v3898_v13 = vunpack.i.h.bf16 %v5258_v32  ;;  %v2556_v49 = vsel %vm1207_vm5, %v5095_v44, %v3868_v39 }
 0x29b   : > { %v5268_v25 = vpop.permute.xlu1 %3905  ;;  %v3878_v42 = vunpack.i.h.bf16 %v3876_v56  ;;  %v3877_v3 = vunpack.i.l.bf16 %v3876_v56  ;;  %v2555_v28 = vsel %vm1207_vm5, %v5091_v50, %v3867_v11 }
 0x29c   : > { %v3907_v38 = vunpack.i.l.bf16 %v5268_v25 }
 0x29e   : > { %v5270_v48 = vpop.permute.xlu0 %3880 }
 0x29f   : > { %v5272_v24 = vpop.permute.xlu1 %3920  ;;  %v3882_v44 = vunpack.i.l.bf16 %v5270_v48 }
 0x2a0   : > { %v3923_v50 = vunpack.i.h.bf16 %v5272_v24  ;;  %v3922_v6 = vunpack.i.l.bf16 %v5272_v24 }
 0x2a2   : > { %v5277_v63 = vpop.permute.xlu0 %3885 }
 0x2a3   : > { %v5279_v17 = vpop.permute.xlu1 %3930 }
 0x2a6   : > { %v3911_v2 = vpop.permute.xlu0 %3910 }
 0x2a7   : > { %v3913_v46 = vunpack.i.h.bf16 %v3911_v2  ;;  %v3912_v55 = vunpack.i.l.bf16 %v3911_v2  ;;  %v3936_v58 = vpop.permute.xlu1 %3935  ;;  %v1935_v2 = vsel %vm1243_vm14, %v1927_v47, %v3847_v23  ;;  %v4030_v23 = vld [vmem:[%s5865_s3 + $0x38] sm:$0xff]  }
 0x2a8   : > { %v3938_v61 = vunpack.i.h.bf16 %v3936_v58  ;;  %v3937_v60 = vunpack.i.l.bf16 %v3936_v58 }
 0x2a9   : > { %v1604_v14 = vsel %vm1207_vm5, %v5152_v22, %v3913_v46  ;;  %v1603_v37 = vsel %vm1207_vm5, %v5118_v12, %v3912_v55  ;;  %v3897_v46 = vunpack.i.l.bf16 %v5258_v32  ;;  %v3908_v55 = vunpack.i.h.bf16 %v5268_v25 }
 0x2aa   : > { %v1611_v19 = vsel %vm1225_vm12, %v1603_v37, %v3872_v57  ;;  %v1612_v52 = vsel %vm1225_vm12, %v1604_v14, %v3873_v29  ;;  %v5303_v16 = vpop.permute.xlu0 %3915  ;;  %v1613_v36 = vsel %vm1225_vm12, %v1605_v40, %v3937_v60  ;;  %v1614_v56 = vsel %vm1225_vm12, %v1606_v7, %v3938_v61 }
 0x2ab   : > { %v3941_v1 = vpop.permute.xlu1 %3940  ;;  %v1619_v12 = vsel %vm1243_vm14, %v1611_v19, %v3877_v3  ;;  %v1620_v62 = vsel %vm1243_vm14, %v1612_v52, %v3878_v42  ;;  %v1942_v57 = vpack.c.bf16 %v1936_v9, %v1935_v2  ;;  %v3918_v32 = vunpack.i.h.bf16 %v5303_v16 }
 0x2ac   : > { %v3943_v26 = vunpack.i.h.bf16 %v3941_v1  ;;  %v3942_v20 = vunpack.i.l.bf16 %v3941_v1  ;;  %v1625_v35 = vpack.c.bf16 %v1620_v62, %v1619_v12  ;;  %v2558_v25 = vsel %vm1207_vm5, %v5133_v34, %v3898_v13 }
 0x2ad   : > { %v2557_v42 = vsel %vm1207_vm5, %v5136_v41, %v3897_v46  ;;  %v1924_v3 = vsel %vm1207_vm5, %v5185_v4, %v3908_v55  ;;  %v1923_v14 = vsel %vm1207_vm5, %v5172_v30, %v3907_v38  ;;  %v3883_v37 = vunpack.i.h.bf16 %v5270_v48 }
 0x2ae   : > { %v1621_v51 = vsel %vm1243_vm14, %v1613_v36, %v3942_v20  ;;  %v1622_v5 = vsel %vm1243_vm14, %v1614_v56, %v3943_v26  ;;  %v3926_v8 = vpop.permute.xlu0 %3925  ;;  %3382 = vmatprep.mubr.msk.bf16.mxu1 %vm1261_vm0, %v1625_v35  ;;  %v3917_v61 = vunpack.i.l.bf16 %v5303_v16  ;;  %v3888_v7 = vunpack.i.h.bf16 %v5277_v63 }
 0x2af   : > { %v1626_v29 = vpack.c.bf16 %v1622_v5, %v1621_v51  ;;  %v5324_v27 = vpop.permute.xlu1 %3945  ;;  %v3927_v31 = vunpack.i.l.bf16 %v3926_v8  ;;  %v3887_v1 = vunpack.i.l.bf16 %v5277_v63  ;;  %v2564_v48 = vsel %vm1225_vm12, %v2556_v49, %v3918_v32 }
 0x2b0   : > { %v3928_v12 = vunpack.i.h.bf16 %v3926_v8  ;;  %v2563_v26 = vsel %vm1225_vm12, %v2555_v28, %v3917_v61  ;;  %v3948_v20 = vunpack.i.h.bf16 %v5324_v27  ;;  %v3947_v10 = vunpack.i.l.bf16 %v5324_v27 }
 0x2b1   : > { %3383 = vmatmul.mubr.msk.bf16.gmra.mrb[4].mxu1 %vm1261_vm0, %v1626_v29  ;;  %v2571_v56 = vsel %vm1243_vm14, %v2563_v26, %v3927_v31  ;;  %v3933_v27 = vunpack.i.h.bf16 %v5279_v17  ;;  %v3932_v9 = vunpack.i.l.bf16 %v5279_v17  ;;  %v2565_v32 = vsel %vm1225_vm12, %v2557_v42, %v3922_v6  ;;  %v2434_v26 = vld [vmem:[#allocation3 + $0x92] sm:$0xff] }
 0x2b2   : > { %v5334_v58 = vpop.permute.xlu0 %3955  ;;  %3390 = vmatprep.mubr.msk.bf16.mxu1 %vm1261_vm0, %v1941_v33  ;;  %v2572_v47 = vsel %vm1243_vm14, %v2564_v48, %v3928_v12  ;;  %v2242_v49 = vsel %vm1207_vm5, %v5126_v54, %v3947_v10 }
 0x2b3   : > { %v5337_v53 = vpop.permute.xlu1 %3950  ;;  %v2579_v13 = vpack.c.bf16 %v2572_v47, %v2571_v56  ;;  %v3957_v54 = vunpack.i.l.bf16 %v5334_v58 }
 0x2b4   : > { %v3953_v21 = vunpack.i.h.bf16 %v5337_v53 }
 0x2b6   : > { %v3961_v60 = vpop.permute.xlu0 %3960 }
 0x2b7   : > { %v3963_v19 = vunpack.i.h.bf16 %v3961_v60  ;;  %v3962_v41 = vunpack.i.l.bf16 %v3961_v60  ;;  %v3966_v52 = vpop.permute.xlu1 %3965 }
 0x2b8   : > { %v3968_v62 = vunpack.i.h.bf16 %v3966_v52  ;;  %v3967_v40 = vunpack.i.l.bf16 %v3966_v52 }
 0x2b9   : > { %v1922_v16 = vsel %vm1207_vm5, %v5167_v15, %v3963_v19  ;;  %v1921_v24 = vsel %vm1207_vm5, %v5133_v34, %v3962_v41  ;;  %3391 = vmatmul.mubr.msk.bf16.vlgmr.msra.gmra.mrb[8].mxu1 %vm1261_vm0, %v1942_v57  ;;  %v2243_v57 = vsel %vm1207_vm5, %v5179_v0, %v3948_v20  ;;  %v3958_v0 = vunpack.i.h.bf16 %v5334_v58 }
 0x2ba   : > { %v1929_v35 = vsel %vm1225_vm12, %v1921_v24, %v3882_v44  ;;  %v1930_v63 = vsel %vm1225_vm12, %v1922_v16, %v3883_v37  ;;  %3411 = vmatpush3.bf16.msra.mxu1 %v5241_v18  ;;  %v3986_v36 = vpop.permute.xlu0 %3985  ;;  %v3952_v18 = vunpack.i.l.bf16 %v5337_v53  ;;  %v1931_v2 = vsel %vm1225_vm12, %v1923_v14, %v3967_v40 }
 0x2bb   : > { %v3971_v34 = vpop.permute.xlu1 %3970  ;;  %v1937_v43 = vsel %vm1243_vm14, %v1929_v35, %v3887_v1  ;;  %v1938_v59 = vsel %vm1243_vm14, %v1930_v63, %v3888_v7  ;;  %3412 = vmatprep.subr.bf16.mxu1 %v4030_v23  ;;  %v1932_v29 = vsel %vm1225_vm12, %v1924_v3, %v3968_v62  ;;  %v3988_v46 = vunpack.i.h.bf16 %v3986_v36 }
 0x2bc   : > { %v3973_v51 = vunpack.i.h.bf16 %v3971_v34  ;;  %v3972_v5 = vunpack.i.l.bf16 %v3971_v34  ;;  %v1943_v8 = vpack.c.bf16 %v1938_v59, %v1937_v43  ;;  %v3987_v55 = vunpack.i.l.bf16 %v3986_v36 }
 0x2bd   : > { %v2566_v3 = vsel %vm1225_vm12, %v2558_v25, %v3923_v50  ;;  %v2250_v14 = vsel %vm1225_vm12, %v2242_v49, %v3952_v18  ;;  %v2251_v37 = vsel %vm1225_vm12, %v2243_v57, %v3953_v21  ;;  %v2573_v44 = vsel %vm1243_vm14, %v2565_v32, %v3932_v9 }
 0x2be   : > { %v1939_v39 = vsel %vm1243_vm14, %v1931_v2, %v3972_v5  ;;  %v1940_v11 = vsel %vm1243_vm14, %v1932_v29, %v3973_v51  ;;  %v3991_v33 = vpop.permute.xlu0 %3990  ;;  %3394 = vmatprep.mubr.msk.bf16.mxu1 %vm1261_vm0, %v1943_v8  ;;  %3413 = vmatpush3.bf16.msra.mxu1 %v4030_v23  ;;  %v2574_v61 = vsel %vm1243_vm14, %v2566_v3, %v3933_v27 }
 0x2bf   : > { %v1944_v38 = vpack.c.bf16 %v1940_v11, %v1939_v39  ;;  %v3976_v53 = vpop.permute.xlu1 %3975  ;;  %v3993_v17 = vunpack.i.h.bf16 %v3991_v33  ;;  %v3992_v28 = vunpack.i.l.bf16 %v3991_v33  ;;  %v2241_v25 = vsel %vm1207_vm5, %v5129_v45, %v3988_v46 }
 0x2c0   : > { %v2240_v42 = vsel %vm1207_vm5, %v5152_v22, %v3987_v55  ;;  %v2258_v52 = vsel %vm1243_vm14, %v2250_v14, %v3957_v54  ;;  %v2259_v58 = vsel %vm1243_vm14, %v2251_v37, %v3958_v0  ;;  %v2580_v48 = vpack.c.bf16 %v2574_v61, %v2573_v44 }
 0x2c1   : > { %3395 = vmatmul.mubr.msk.bf16.gmra.mrb[12].mxu1 %vm1261_vm0, %v1944_v38  ;;  %v2248_v19 = vsel %vm1225_vm12, %v2240_v42, %v3992_v28  ;;  %v2249_v41 = vsel %vm1225_vm12, %v2241_v25, %v3993_v17  ;;  %v2263_v22 = vpack.c.bf16 %v2259_v58, %v2258_v52  ;;  %v3978_v16 = vunpack.i.h.bf16 %v3976_v53 }
 0x2c2   : > { %v3996_v60 = vpop.permute.xlu0 %3995  ;;  %3414 = vmatprep.mubr.msk.bf16.mxu1 %vm1261_vm0, %v2579_v13  ;;  %v3977_v24 = vunpack.i.l.bf16 %v3976_v53 }
 0x2c3   : > { %v3998_v50 = vunpack.i.h.bf16 %v3996_v60  ;;  %v3997_v6 = vunpack.i.l.bf16 %v3996_v60  ;;  %v3981_v31 = vpop.permute.xlu1 %3980  ;;  %v2562_v8 = vsel %vm1207_vm5, %v2434_v26, %v3978_v16 }
 0x2c4   : > { %v3983_v20 = vunpack.i.h.bf16 %v3981_v31  ;;  %v3982_v35 = vunpack.i.l.bf16 %v3981_v31  ;;  %v2561_v21 = vsel %vm1207_vm5, %v5185_v4, %v3977_v24 }
 0x2c5   : > { %v2256_v23 = vsel %vm1243_vm14, %v2248_v19, %v3997_v6  ;;  %v2257_v7 = vsel %vm1243_vm14, %v2249_v41, %v3998_v50 }
 0x2c6   : > { %v2262_v1 = vpack.c.bf16 %v2257_v7, %v2256_v23  ;;  %v4006_v45 = vpop.permute.xlu0 %4005 }
 0x2c7   : > { %v4001_v12 = vpop.permute.xlu1 %4000  ;;  %v4008_v63 = vunpack.i.h.bf16 %v4006_v45  ;;  %v4007_v36 = vunpack.i.l.bf16 %v4006_v45 }
 0x2c8   : > { %v4003_v62 = vunpack.i.h.bf16 %v4001_v12  ;;  %v4002_v40 = vunpack.i.l.bf16 %v4001_v12  ;;  %3406 = vmatprep.mubr.msk.bf16.mxu0 %vm1261_vm0, %v2262_v1 }
 0x2c9   : > { %3407 = vmatmul.mubr.msk.bf16.gmra.mrb[12].mxu0 %vm1261_vm0, %v2263_v22  ;;  %3415 = vmatmul.mubr.msk.bf16.vlgmr.msra.gmra.mrb[16].mxu1 %vm1261_vm0, %v2580_v48 }
 0x2ca   : > { %v2560_v56 = vsel %vm1207_vm5, %v5172_v30, %v4003_v62  ;;  %v2559_v10 = vsel %vm1207_vm5, %v5167_v15, %v4002_v40  ;;  %v4011_v34 = vpop.permute.xlu0 %4010  ;;  %v2569_v30 = vsel %vm1225_vm12, %v2561_v21, %v3982_v35  ;;  %v2570_v15 = vsel %vm1225_vm12, %v2562_v8, %v3983_v20 }
 0x2cb   : > { %v4013_v43 = vunpack.i.h.bf16 %v4011_v34  ;;  %v4012_v59 = vunpack.i.l.bf16 %v4011_v34  ;;  %v2567_v47 = vsel %vm1225_vm12, %v2559_v10, %v4007_v36  ;;  %v2568_v51 = vsel %vm1225_vm12, %v2560_v56, %v4008_v63  ;;  %v4016_v5 = vpop.permute.xlu1 %4015 }
 0x2cc   : > { %v4018_v18 = vunpack.i.h.bf16 %v4016_v5  ;;  %v4017_v2 = vunpack.i.l.bf16 %v4016_v5  ;;  %vm2747_vm5 = vcmask 24576  }
 0x2cd   : > { %v2575_v29 = vsel %vm1243_vm14, %v2567_v47, %v4012_v59  ;;  %v2576_v27 = vsel %vm1243_vm14, %v2568_v51, %v4013_v43 }
 0x2ce   : > { %v2581_v9 = vpack.c.bf16 %v2576_v27, %v2575_v29  ;;  %v2577_v39 = vsel %vm1243_vm14, %v2569_v30, %v4017_v2  ;;  %v2578_v11 = vsel %vm1243_vm14, %v2570_v15, %v4018_v18 }
 0x2cf   : > { %v2582_v33 = vpack.c.bf16 %v2578_v11, %v2577_v39 }
 0x2d0   : > { %3418 = vmatprep.mubr.msk.bf16.mxu1 %vm1261_vm0, %v2581_v9 }
 0x2d1   : > { %3419 = vmatmul.mubr.msk.bf16.gmra.mrb[20].mxu1 %vm1261_vm0, %v2582_v33 }
 0x35e   : > { %v3380_v4 = vpop.f32.mrb[0].mxu1 }
 0x35f   : > { %3259 = vst [vmem:[%s5432_s7 + $0x40] ss:$2 sm:$0xff] %v3380_v4  ;;  %v1689_v13 = vpop.f32.mrb[1].mxu1  ;;  %v1761_v53 = vmul.f32 %v3380_v4, %v3380_v4  ;;  %v1740_v32 = vsel %vm483_vm6, %v3380_v4, 0.0 }
 0x360   : > { %1722 = vst [vmem:[%s5432_s7] ss:$2 sm:$0xff] %v1689_v13  ;;  %v1759_v46 = vmul.f32 %v1689_v13, %v1689_v13  ;;  %v3381_v55 = vpop.f32.mrb[2].mxu1  ;;  %v1737_v57 = vsel %vm483_vm6, %v1689_v13, 0.0 }
 0x361   : > { %3260 = vst [vmem:[%s5432_s7 + $0x60] ss:$2 sm:$0xff] %v3381_v55  ;;  %v1692_v38 = vpop.f32.mrb[3].mxu1  ;;  %v1762_v14 = vmul.f32 %v3381_v55, %v3381_v55  ;;  %v1770_v0 = vsel %vm483_vm6, %v1761_v53, 0.0  ;;  %v1742_v54 = vsel %vm483_vm6, %v3381_v55, 0.0 }
 0x362   : > { %3258 = vst [vmem:[%s5432_s7 + $0x20] ss:$2 sm:$0xff] %v1692_v38  ;;  %v1738_v49 = vsel %vm483_vm6, %v1692_v38, 0.0  ;;  %v1760_v17 = vmul.f32 %v1692_v38, %v1692_v38  ;;  %v1767_v3 = vsel %vm483_vm6, %v1759_v46, 0.0 }
 0x363   : > { %v1739_v28 = vadd.f32 %v1738_v49, %v1737_v57  ;;  %v1772_v42 = vsel %vm483_vm6, %v1762_v14, 0.0 }
 0x364   : > { %v1768_v37 = vsel %vm483_vm6, %v1760_v17, 0.0 }
 0x365   : > { %v1741_v44 = vadd.f32 %v1740_v32, %v1739_v28  ;;  %v1769_v61 = vadd.f32 %v1768_v37, %v1767_v3 }
 0x367   : > { %v1771_v60 = vadd.f32 %v1770_v0, %v1769_v61  ;;  %v1743_v25 = vadd.f32 %v1742_v54, %v1741_v44 }
 0x369   : > { %v1773_v50 = vadd.f32 %v1772_v42, %v1771_v60 }
 0x36c   : > { %v3404_v6 = vpop.f32.mrb[8].mxu0 }
 0x36d   : > { %3296 = vst [vmem:[%s5432_s7 + $0x50] ss:$2 sm:$0xff] %v3404_v6  ;;  %v2327_v31 = vpop.f32.mrb[9].mxu0  ;;  %v2399_v58 = vmul.f32 %v3404_v6, %v3404_v6  ;;  %v2378_v48 = vsel %vm483_vm6, %v3404_v6, 0.0 }
 0x36e   : > { %3294 = vst [vmem:[%s5432_s7 + $0x10] ss:$2 sm:$0xff] %v2327_v31  ;;  %v2397_v19 = vmul.f32 %v2327_v31, %v2327_v31  ;;  %v3405_v41 = vpop.f32.mrb[10].mxu0  ;;  %v2375_v23 = vsel %vm483_vm6, %v2327_v31, 0.0 }
 0x36f   : > { %3297 = vst [vmem:[%s5432_s7 + $0x70] ss:$2 sm:$0xff] %v3405_v41  ;;  %v2330_v52 = vpop.f32.mrb[11].mxu0  ;;  %v2400_v22 = vmul.f32 %v3405_v41, %v3405_v41  ;;  %v2408_v40 = vsel %vm483_vm6, %v2399_v58, 0.0  ;;  %v2380_v26 = vsel %vm483_vm6, %v3405_v41, 0.0 }
 0x370   : > { %3295 = vst [vmem:[%s5432_s7 + $0x30] ss:$2 sm:$0xff] %v2330_v52  ;;  %v2376_v7 = vsel %vm483_vm6, %v2330_v52, 0.0  ;;  %v2398_v1 = vmul.f32 %v2330_v52, %v2330_v52  ;;  %v2405_v12 = vsel %vm483_vm6, %v2397_v19, 0.0 }
 0x371   : > { %v2377_v45 = vadd.f32 %v2376_v7, %v2375_v23  ;;  %v2410_v63 = vsel %vm483_vm6, %v2400_v22, 0.0 }
 0x372   : > { %v2406_v16 = vsel %vm483_vm6, %v2398_v1, 0.0 }
 0x373   : > { %v2379_v24 = vadd.f32 %v2378_v48, %v2377_v45  ;;  %v2407_v62 = vadd.f32 %v2406_v16, %v2405_v12 }
 0x375   : > { %v2409_v20 = vadd.f32 %v2408_v40, %v2407_v62  ;;  %v5457_v35 = vadd.f32 %v2380_v26, %v2379_v24 }
 0x377   : > { %v5460_v36 = vadd.f32 %v2410_v63, %v2409_v20 }
 0x384   : > { %v3384_v56 = vpop.f32.mrb[4].mxu1 }
 0x385   : > { %3263 = vst [vmem:[%s5432_s7 + $0xc0] ss:$2 sm:$0xff] %v3384_v56  ;;  %v1705_v10 = vpop.f32.mrb[5].mxu1  ;;  %v1765_v5 = vmul.f32 %v3384_v56, %v3384_v56  ;;  %v1748_v15 = vsel %vm483_vm6, %v3384_v56, 0.0 }
 0x386   : > { %3261 = vst [vmem:[%s5432_s7 + $0x80] ss:$2 sm:$0xff] %v1705_v10  ;;  %v1744_v34 = vsel %vm483_vm6, %v1705_v10, 0.0  ;;  %v1763_v43 = vmul.f32 %v1705_v10, %v1705_v10  ;;  %v3385_v59 = vpop.f32.mrb[6].mxu1 }
 0x387   : > { %v1745_v47 = vadd.f32 %v1744_v34, %v1743_v25  ;;  %3264 = vst [vmem:[%s5432_s7 + $0xe0] ss:$2 sm:$0xff] %v3385_v59  ;;  %v1708_v51 = vpop.f32.mrb[7].mxu1  ;;  %v1766_v29 = vmul.f32 %v3385_v59, %v3385_v59  ;;  %v1778_v11 = vsel %vm483_vm6, %v1765_v5, 0.0  ;;  %v1750_v33 = vsel %vm483_vm6, %v3385_v59, 0.0 }
 0x388   : > { %v1774_v8 = vsel %vm483_vm6, %v1763_v43, 0.0  ;;  %3262 = vst [vmem:[%s5432_s7 + $0xa0] ss:$2 sm:$0xff] %v1708_v51  ;;  %v1746_v21 = vsel %vm483_vm6, %v1708_v51, 0.0  ;;  %v1764_v18 = vmul.f32 %v1708_v51, %v1708_v51 }
 0x389   : > { %v1775_v2 = vadd.f32 %v1774_v8, %v1773_v50  ;;  %v1747_v30 = vadd.f32 %v1746_v21, %v1745_v47  ;;  %v1780_v38 = vsel %vm483_vm6, %v1766_v29, 0.0 }
 0x38a   : > { %v1776_v27 = vsel %vm483_vm6, %v1764_v18, 0.0 }
 0x38b   : > { %v1749_v9 = vadd.f32 %v1748_v15, %v1747_v30  ;;  %v1777_v39 = vadd.f32 %v1776_v27, %v1775_v2 }
 0x38c   : > { %v3392_v4 = vpop.f32.mrb[8].mxu1 }
 0x38d   : > { %v1751_v13 = vadd.f32 %v1750_v33, %v1749_v9  ;;  %v1779_v46 = vadd.f32 %v1778_v11, %v1777_v39  ;;  %3277 = vst [vmem:[%s5432_s7 + $0x41] ss:$2 sm:$0xff] %v3392_v4  ;;  %v2008_v55 = vpop.f32.mrb[9].mxu1  ;;  %v2079_v32 = vmul.f32 %v3392_v4, %v3392_v4  ;;  %v2058_v54 = vsel %vm483_vm6, %v3392_v4, 0.0 }
 0x38e   : > { %3275 = vst [vmem:[%s5432_s7 + $0x1] ss:$2 sm:$0xff] %v2008_v55  ;;  %v2077_v53 = vmul.f32 %v2008_v55, %v2008_v55  ;;  %v3393_v57 = vpop.f32.mrb[10].mxu1  ;;  %v2055_v3 = vsel %vm483_vm6, %v2008_v55, 0.0 }
 0x38f   : > { %v1752_v49 = vrot.slane %v1751_v13, 4  ;;  %v1781_v17 = vadd.f32 %v1780_v38, %v1779_v46  ;;  %3278 = vst [vmem:[%s5432_s7 + $0x61] ss:$2 sm:$0xff] %v3393_v57  ;;  %v2011_v28 = vpop.f32.mrb[11].mxu1  ;;  %v2080_v25 = vmul.f32 %v3393_v57, %v3393_v57  ;;  %v2088_v41 = vsel %vm483_vm6, %v2079_v32, 0.0 }
 0x390   : > { %3276 = vst [vmem:[%s5432_s7 + $0x21] ss:$2 sm:$0xff] %v2011_v28  ;;  %v2056_v14 = vsel %vm483_vm6, %v2011_v28, 0.0  ;;  %v2078_v37 = vmul.f32 %v2011_v28, %v2011_v28  ;;  %v2085_v60 = vsel %vm483_vm6, %v2077_v53, 0.0  ;;  %v2060_v23 = vsel %vm483_vm6, %v3393_v57, 0.0 }
 0x391   : > { %v1753_v44 = vadd.f32 %v1752_v49, %v1751_v13  ;;  %v1782_v61 = vrot.slane %v1781_v17, 4  ;;  %v2057_v0 = vadd.f32 %v2056_v14, %v2055_v3  ;;  %v2090_v45 = vsel %vm483_vm6, %v2080_v25, 0.0 }
 0x392   : > { %v2086_v42 = vsel %vm483_vm6, %v2078_v37, 0.0 }
 0x393   : > { %v1754_v50 = vrot.slane %v1753_v44, 2  ;;  %v1783_v6 = vadd.f32 %v1782_v61, %v1781_v17  ;;  %v2059_v31 = vadd.f32 %v2058_v54, %v2057_v0  ;;  %v2087_v19 = vadd.f32 %v2086_v42, %v2085_v60 }
 0x394   : > { %v3396_v52 = vpop.f32.mrb[12].mxu1 }
 0x395   : > { %v1755_v58 = vadd.f32 %v1754_v50, %v1753_v44  ;;  %v2089_v7 = vadd.f32 %v2088_v41, %v2087_v19  ;;  %3281 = vst [vmem:[%s5432_s7 + $0xc1] ss:$2 sm:$0xff] %v3396_v52  ;;  %v2024_v1 = vpop.f32.mrb[13].mxu1  ;;  %v2061_v48 = vadd.f32 %v2060_v23, %v2059_v31  ;;  %v1784_v24 = vrot.slane %v1783_v6, 2 }
 0x396   : > { %3279 = vst [vmem:[%s5432_s7 + $0x81] ss:$2 sm:$0xff] %v2024_v1  ;;  %v2062_v12 = vsel %vm483_vm6, %v2024_v1, 0.0  ;;  %v2081_v22 = vmul.f32 %v2024_v1, %v2024_v1  ;;  %v3397_v16 = vpop.f32.mrb[14].mxu1  ;;  %v2083_v56 = vmul.f32 %v3396_v52, %v3396_v52  ;;  %v2066_v51 = vsel %vm483_vm6, %v3396_v52, 0.0 }
 0x397   : > { %v2091_v62 = vadd.f32 %v2090_v45, %v2089_v7  ;;  %3282 = vst [vmem:[%s5432_s7 + $0xe1] ss:$2 sm:$0xff] %v3397_v16  ;;  %v2027_v40 = vpop.f32.mrb[15].mxu1  ;;  %v2063_v26 = vadd.f32 %v2062_v12, %v2061_v48  ;;  %v1756_v63 = vrot.slane %v1755_v58, 1  ;;  %v5493_v47 = vadd.f32 %v1784_v24, %v1783_v6 }
 0x398   : > { %v2092_v20 = vsel %vm483_vm6, %v2081_v22, 0.0  ;;  %3280 = vst [vmem:[%s5432_s7 + $0xa1] ss:$2 sm:$0xff] %v2027_v40  ;;  %v2064_v34 = vsel %vm483_vm6, %v2027_v40, 0.0  ;;  %v2082_v59 = vmul.f32 %v2027_v40, %v2027_v40  ;;  %v2084_v5 = vmul.f32 %v3397_v16, %v3397_v16 }
 0x399   : > { %v2093_v10 = vadd.f32 %v2092_v20, %v2091_v62  ;;  %v2065_v43 = vadd.f32 %v2064_v34, %v2063_v26  ;;  %v2068_v8 = vsel %vm483_vm6, %v3397_v16, 0.0  ;;  %v5498_v15 = vadd.f32 %v1756_v63, %v1755_v58 }
 0x39a   : > { %v2094_v18 = vsel %vm483_vm6, %v2082_v59, 0.0  ;;  %v2096_v29 = vsel %vm483_vm6, %v2083_v56, 0.0  ;;  %v1786_v53 = vrot.slane %v5493_v47, 1  ;;  %v2098_v57 = vsel %vm483_vm6, %v2084_v5, 0.0 }
 0x39b   : > { %v2067_v21 = vadd.f32 %v2066_v51, %v2065_v43  ;;  %v2095_v27 = vadd.f32 %v2094_v18, %v2093_v10 }
 0x39c   : > { %v3408_v2 = vpop.f32.mrb[12].mxu0  ;;  %v3416_v30 = vpop.f32.mrb[16].mxu1 }
 0x39d   : > { %3300 = vst [vmem:[%s5432_s7 + $0xd0] ss:$2 sm:$0xff] %v3408_v2  ;;  %v2403_v9 = vmul.f32 %v3408_v2, %v3408_v2  ;;  %3314 = vst [vmem:[%s5432_s7 + $0x51] ss:$2 sm:$0xff] %v3416_v30  ;;  %v2343_v39 = vpop.f32.mrb[13].mxu0  ;;  %v2646_v11 = vpop.f32.mrb[17].mxu1  ;;  %v2069_v33 = vadd.f32 %v2068_v8, %v2067_v21  ;;  %v2717_v4 = vmul.f32 %v3416_v30, %v3416_v30 }
 0x39e   : > { %3298 = vst [vmem:[%s5432_s7 + $0x90] ss:$2 sm:$0xff] %v2343_v39  ;;  %v2382_v13 = vsel %vm483_vm6, %v2343_v39, 0.0  ;;  %v2401_v46 = vmul.f32 %v2343_v39, %v2343_v39  ;;  %3312 = vst [vmem:[%s5432_s7 + $0x11] ss:$2 sm:$0xff] %v2646_v11  ;;  %v3409_v55 = vpop.f32.mrb[14].mxu0  ;;  %v2097_v49 = vadd.f32 %v2096_v29, %v2095_v27  ;;  %v2715_v44 = vmul.f32 %v2646_v11, %v2646_v11 }
 0x39f   : > { %v3417_v38 = vpop.f32.mrb[18].mxu1  ;;  %v2383_v17 = vadd.f32 %v2382_v13, %v5457_v35  ;;  %3301 = vst [vmem:[%s5432_s7 + $0xf0] ss:$2 sm:$0xff] %v3409_v55  ;;  %v2346_v28 = vpop.f32.mrb[15].mxu0  ;;  %v2070_v3 = vrot.slane %v2069_v33, 4  ;;  %v2386_v14 = vsel %vm483_vm6, %v3408_v2, 0.0  ;;  %v2404_v31 = vmul.f32 %v3409_v55, %v3409_v55 }
 0x3a0   : > { %3315 = vst [vmem:[%s5432_s7 + $0x71] ss:$2 sm:$0xff] %v3417_v38  ;;  %v2649_v32 = vpop.f32.mrb[19].mxu1  ;;  %v2412_v37 = vsel %vm483_vm6, %v2401_v46, 0.0  ;;  %3299 = vst [vmem:[%s5432_s7 + $0xb0] ss:$2 sm:$0xff] %v2346_v28  ;;  %v2099_v61 = vadd.f32 %v2098_v57, %v2097_v49  ;;  %v2402_v41 = vmul.f32 %v2346_v28, %v2346_v28  ;;  %v2718_v63 = vmul.f32 %v3417_v38, %v3417_v38 }
 0x3a1   : > { %3313 = vst [vmem:[%s5432_s7 + $0x31] ss:$2 sm:$0xff] %v2649_v32  ;;  %v2416_v0 = vsel %vm483_vm6, %v2403_v9, 0.0  ;;  %v2696_v54 = vsel %vm483_vm6, %v3416_v30, 0.0  ;;  %v2413_v60 = vadd.f32 %v2412_v37, %v5460_v36  ;;  %v2071_v35 = vadd.f32 %v2070_v3, %v2069_v33 }
 0x3a2   : > { %v2726_v25 = vsel %vm483_vm6, %v2717_v4, 0.0  ;;  %v2693_v42 = vsel %vm483_vm6, %v2646_v11, 0.0  ;;  %v2388_v50 = vsel %vm483_vm6, %v3409_v55, 0.0  ;;  %v2100_v6 = vrot.slane %v2099_v61, 4 }
 0x3a3   : > { %v2384_v19 = vsel %vm483_vm6, %v2346_v28, 0.0  ;;  %v2072_v52 = vrot.slane %v2071_v35, 2  ;;  %v2723_v58 = vsel %vm483_vm6, %v2715_v44, 0.0  ;;  %v2694_v36 = vsel %vm483_vm6, %v2649_v32, 0.0 }
 0x3a4   : > { %v2385_v23 = vadd.f32 %v2384_v19, %v2383_v17  ;;  %v3420_v7 = vpop.f32.mrb[20].mxu1  ;;  %v2101_v1 = vadd.f32 %v2100_v6, %v2099_v61  ;;  %v2414_v45 = vsel %vm483_vm6, %v2402_v41, 0.0  ;;  %v2695_v48 = vadd.f32 %v2694_v36, %v2693_v42 }
 0x3a5   : > { %v2716_v12 = vmul.f32 %v2649_v32, %v2649_v32  ;;  %3318 = vst [vmem:[%s5432_s7 + $0xd1] ss:$2 sm:$0xff] %v3420_v7  ;;  %v2662_v22 = vpop.f32.mrb[21].mxu1  ;;  %v2073_v16 = vadd.f32 %v2072_v52, %v2071_v35  ;;  %v2698_v24 = vsel %vm483_vm6, %v3417_v38, 0.0  ;;  %v2415_v40 = vadd.f32 %v2414_v45, %v2413_v60 }
 0x3a6   : > { %v2387_v62 = vadd.f32 %v2386_v14, %v2385_v23  ;;  %3316 = vst [vmem:[%s5432_s7 + $0x91] ss:$2 sm:$0xff] %v2662_v22  ;;  %v3421_v26 = vpop.f32.mrb[22].mxu1  ;;  %v2102_v20 = vrot.slane %v2101_v1, 2  ;;  %v2697_v56 = vadd.f32 %v2696_v54, %v2695_v48  ;;  %v2418_v21 = vsel %vm483_vm6, %v2404_v31, 0.0 }
 0x3a7   : > { %v2724_v10 = vsel %vm483_vm6, %v2716_v12, 0.0  ;;  %3319 = vst [vmem:[%s5432_s7 + $0xf1] ss:$2 sm:$0xff] %v3421_v26  ;;  %v2665_v34 = vpop.f32.mrb[23].mxu1  ;;  %v2074_v43 = vrot.slane %v2073_v16, 1  ;;  %v2417_v51 = vadd.f32 %v2416_v0, %v2415_v40  ;;  %v2700_v2 = vsel %vm483_vm6, %v2662_v22, 0.0 }
 0x3a8   : > { %v2389_v59 = vadd.f32 %v2388_v50, %v2387_v62  ;;  %v2725_v5 = vadd.f32 %v2724_v10, %v2723_v58  ;;  %3317 = vst [vmem:[%s5432_s7 + $0xb1] ss:$2 sm:$0xff] %v2665_v34  ;;  %v2103_v8 = vadd.f32 %v2102_v20, %v2101_v1  ;;  %v2699_v18 = vadd.f32 %v2698_v24, %v2697_v56  ;;  %v2745_v56 = vld [vmem:[#allocation5] sm:$0x1] }
 0x3a9   : > { %v2075_v30 = vadd.f32 %v2074_v43, %v2073_v16  ;;  %v2419_v27 = vadd.f32 %v2418_v21, %v2417_v51  ;;  %v2728_v11 = vsel %vm483_vm6, %v2718_v63, 0.0  ;;  %v2719_v4 = vmul.f32 %v2662_v22, %v2662_v22  ;;  %v2749_v51 = vld [vmem:[#allocation5 + $0x1] sm:$0x1] }
 0x3aa   : > { %v2390_v29 = vrot.slane %v2389_v59, 4  ;;  %v2727_v9 = vadd.f32 %v2726_v25, %v2725_v5  ;;  %v2104_v39 = vrot.slane %v2103_v8, 1  ;;  %v2701_v33 = vadd.f32 %v2700_v2, %v2699_v18 }
 0x3ab   : > { %v2076_v13 = vadd.f32 %v2075_v30, %v5498_v15  ;;  %v2420_v55 = vrot.slane %v2419_v27, 4  ;;  %v1787_v57 = vadd.f32 %v1786_v53, %v5493_v47  ;;  %v2730_v17 = vsel %vm483_vm6, %v2719_v4, 0.0 }
 0x3ac   : > { %v2391_v46 = vadd.f32 %v2390_v29, %v2389_v59  ;;  %v2729_v38 = vadd.f32 %v2728_v11, %v2727_v9  ;;  %v2105_v49 = vadd.f32 %v2104_v39, %v2103_v8  ;;  %v2702_v28 = vsel %vm483_vm6, %v2665_v34, 0.0 }
 0x3ad   : > { %v2421_v3 = vadd.f32 %v2420_v55, %v2419_v27  ;;  %v2703_v37 = vadd.f32 %v2702_v28, %v2701_v33  ;;  %v2704_v61 = vsel %vm483_vm6, %v3420_v7, 0.0  ;;  %v2721_v15 = vmul.f32 %v3420_v7, %v3420_v7 }
 0x3ae   : > { %v2392_v32 = vrot.slane %v2391_v46, 2  ;;  %v2731_v14 = vadd.f32 %v2730_v17, %v2729_v38  ;;  %v2106_v44 = vadd.f32 %v2105_v49, %v1787_v57  ;;  %v2720_v0 = vmul.f32 %v2665_v34, %v2665_v34 }
 0x3af   : > { %v2422_v60 = vrot.slane %v2421_v3, 2  ;;  %v2705_v35 = vadd.f32 %v2704_v61, %v2703_v37  ;;  %v2706_v25 = vsel %vm483_vm6, %v3421_v26, 0.0  ;;  %v2722_v47 = vmul.f32 %v3421_v26, %v3421_v26 }
 0x3b0   : > { %v2393_v54 = vadd.f32 %v2392_v32, %v2391_v46  ;;  %v2732_v53 = vsel %vm483_vm6, %v2720_v0, 0.0  ;;  %v2734_v19 = vsel %vm483_vm6, %v2721_v15, 0.0 }
 0x3b1   : > { %v2423_v50 = vadd.f32 %v2422_v60, %v2421_v3  ;;  %v2707_v6 = vadd.f32 %v2706_v25, %v2705_v35  ;;  %v2733_v31 = vadd.f32 %v2732_v53, %v2731_v14  ;;  %v2736_v36 = vsel %vm483_vm6, %v2722_v47, 0.0 }
 0x3b2   : > { %v2394_v42 = vrot.slane %v2393_v54, 1 }
 0x3b3   : > { %v2424_v52 = vrot.slane %v2423_v50, 1  ;;  %v2708_v58 = vrot.slane %v2707_v6, 4  ;;  %v2735_v23 = vadd.f32 %v2734_v19, %v2733_v31 }
 0x3b4   : > { %v2395_v41 = vadd.f32 %v2394_v42, %v2393_v54 }
 0x3b5   : > { %v2425_v1 = vadd.f32 %v2424_v52, %v2423_v50  ;;  %v2709_v45 = vadd.f32 %v2708_v58, %v2707_v6  ;;  %v2737_v48 = vadd.f32 %v2736_v36, %v2735_v23 }
 0x3b6   : > { %v2396_v7 = vadd.f32 %v2395_v41, %v2076_v13 }
 0x3b7   : > { %v2426_v12 = vadd.f32 %v2425_v1, %v2106_v44  ;;  %v2710_v22 = vrot.slane %v2709_v45, 2  ;;  %v2738_v16 = vrot.slane %v2737_v48, 4 }
 0x3b9   : > { %v2711_v24 = vadd.f32 %v2710_v22, %v2709_v45  ;;  %v2739_v62 = vadd.f32 %v2738_v16, %v2737_v48 }
 0x3bb   : > { %v2712_v40 = vrot.slane %v2711_v24, 1  ;;  %v2740_v26 = vrot.slane %v2739_v62, 2 }
 0x3bd   : > { %v2713_v20 = vadd.f32 %v2712_v40, %v2711_v24  ;;  %v2741_v63 = vadd.f32 %v2740_v26, %v2739_v62 }
 0x3bf   : > { %v2714_v10 = vadd.f32 %v2713_v20, %v2396_v7  ;;  %v2742_v34 = vrot.slane %v2741_v63, 1 }
 0x3c1   : > { %v2743_v43 = vadd.f32 %v2742_v34, %v2741_v63  ;;  %v2746_v59 = vadd.f32 %v2745_v56, %v2714_v10 }
 0x3c3   : > { %v2744_v5 = vadd.f32 %v2743_v43, %v2426_v12  ;;  %2748 = vst.msk [vmem:[#allocation5] sm:$0x1] %vm2747_vm5, %v2746_v59 }
 0x3c5   : > { %v2750_v8 = vadd.f32 %v2749_v51, %v2744_v5 }
 0x3c7   : > { %2751 = vst.msk [vmem:[#allocation5 + $0x1] sm:$0x1] %vm2747_vm5, %v2750_v8 }
 0x3c8 PF: > { %p3320_p11 = scmp.ne.s32.totalorder %s4060_s22, 1 }
 0x3c9   : > { %v2758_v21 = vld [vmem:[%s4169_s9 + $0x10] sm:$0xff] (!%p3320_p11)  ;;  %v2756_v18 = vld [vmem:[%s4169_s9] sm:$0xff] (!%p3320_p11)  ;;  %s4090_s8 = smov (!%p3320_p11), 4   ;;  %v2759_v2 = vld [vmem:[%s4169_s9 + $0x18] sm:$0xff] (!%p3320_p11)  ;;  %v2997_v52 = vlaneseq (!%p3320_p11)  ;;  %vm2916_vm6 = vcmask (!%p3320_p11), 64544   ;;  %vm3072_vm11 = vcmask (!%p3320_p11), 31744  }
 0x3ca   : > { %2755 = sbr.rel (%p3320_p11) target bundleno = 1147 (0x47b), region = 56  ;;  %2824 = vrot.lane.b32.xlu1 (!%p3320_p11), %v2758_v21, %s4090_s8  ;;  %2820 = vrot.lane.b32.xlu0 (!%p3320_p11), %v2756_v18, %s4090_s8  ;;  %v2757_v30 = vld [vmem:[%s4169_s9 + $0x8] sm:$0xff] (!%p3320_p11)  ;;  %v2760_v27 = vld [vmem:[%s4169_s9 + $0x20] sm:$0xff] (!%p3320_p11)  ;;  %v2949_v53 = vld [vmem:[#allocation5] sm:$0x1] (!%p3320_p11) }
 0x3cb   : > { %v2761_v29 = vld [vmem:[%s4169_s9 + $0x28] sm:$0xff] (!%p3320_p11)  ;;  %v2763_v9 = vld [vmem:[%s4169_s9 + $0x38] sm:$0xff] (!%p3320_p11)  ;;  %v2762_v39 = vld [vmem:[%s4169_s9 + $0x30] sm:$0xff] (!%p3320_p11)  ;;  %v2950_v42 = vmul.f32 (!%p3320_p11), 0.001953125, %v2949_v53  ;;  %v2998_v7 = vshrl.u32 (!%p3320_p11), %v2997_v52, 7 }
 0x3cc   : > { %v2765_v11 = vld [vmem:[%s4169_s9 + $0x48] sm:$0xff] (!%p3320_p11)  ;;  %v2764_v33 = vld [vmem:[%s4169_s9 + $0x40] sm:$0xff] (!%p3320_p11)  ;;  %v2767_v4 = vld [vmem:[%s4169_s9 + $0x58] sm:$0xff] (!%p3320_p11) }
 0x3cd   : > { %v2766_v13 = vld [vmem:[%s4169_s9 + $0x50] sm:$0xff] (!%p3320_p11)  ;;  %v2769_v46 = vld [vmem:[%s4169_s9 + $0x68] sm:$0xff] (!%p3320_p11)  ;;  %v2768_v55 = vld [vmem:[%s4169_s9 + $0x60] sm:$0xff] (!%p3320_p11)  ;;  %v2953_v31 = vmul.f32 (!%p3320_p11), %v2950_v42, %v2950_v42  ;;  %v2999_v45 = vsub.s32 (!%p3320_p11), 0, %v2998_v7 }
 0x3ce   : > { %2826 = vrot.lane.b32.xlu1 (!%p3320_p11), %v2759_v2, %s4090_s8  ;;  %2822 = vrot.lane.b32.xlu0 (!%p3320_p11), %v2757_v30, %s4090_s8  ;;  %v2771_v38 = vld [vmem:[%s4169_s9 + $0x78] sm:$0xff] (!%p3320_p11)  ;;  %v2770_v57 = vld [vmem:[%s4169_s9 + $0x70] sm:$0xff] (!%p3320_p11) }
 0x3cf   : > { %v2773_v49 = vld [vmem:[%s4169_s9 + $0x88] sm:$0xff] (!%p3320_p11)  ;;  %v2772_v17 = vld [vmem:[%s4169_s9 + $0x80] sm:$0xff] (!%p3320_p11)  ;;  %v2775_v28 = vld [vmem:[%s4169_s9 + $0x98] sm:$0xff] (!%p3320_p11) }
 0x3d0   : > { %v2774_v32 = vld [vmem:[%s4169_s9 + $0x90] sm:$0xff] (!%p3320_p11)  ;;  %v2777_v3 = vld [vmem:[%s4169_s9 + $0xa8] sm:$0xff] (!%p3320_p11)  ;;  %v2776_v14 = vld [vmem:[%s4169_s9 + $0xa0] sm:$0xff] (!%p3320_p11) }
 0x3d1   : > { %v2779_v37 = vld [vmem:[%s4169_s9 + $0xb8] sm:$0xff]  ;;  %v2778_v44 = vld [vmem:[%s4169_s9 + $0xb0] sm:$0xff]  ;;  %v2781_v61 = vld [vmem:[%s4169_s9 + $0xc8] sm:$0xff] }
 0x3d2   : > { %2830 = vrot.lane.b32.xlu1 %v2761_v29, %s4090_s8  ;;  %2828 = vrot.lane.b32.xlu0 %v2760_v27, %s4090_s8  ;;  %v2780_v15 = vld [vmem:[%s4169_s9 + $0xc0] sm:$0xff]  ;;  %v2783_v0 = vld [vmem:[%s4169_s9 + $0xd8] sm:$0xff]  ;;  %v2951_v50 = vld [vmem:[#allocation5 + $0x1] sm:$0x1] }
 0x3d3   : > { %v2782_v54 = vld [vmem:[%s4169_s9 + $0xd0] sm:$0xff]  ;;  %v2785_v60 = vld [vmem:[%s4169_s9 + $0xe8] sm:$0xff]  ;;  %v2784_v35 = vld [vmem:[%s4169_s9 + $0xe0] sm:$0xff]  ;;  %v2952_v6 = vmul.f32 0.001953125, %v2951_v50 }
 0x3d4   : > { %v2787_v25 = vld [vmem:[%s4169_s9 + $0xf8] sm:$0xff]  ;;  %v2786_v47 = vld [vmem:[%s4169_s9 + $0xf0] sm:$0xff]  ;;  %v2955_v23 = vld [vmem:[%s5866_s4] sm:$0x1]  ;;  %s3321_s9 = sshll.u32 %s4056_s21, 8 }
 0x3d5   : > { %v2954_v19 = vsub.f32 %v2952_v6, %v2953_v31  ;;  %v2959_v48 = vld [vmem:[%s5867_s5] sm:$0x1]  ;;  %s5619_s15 = scalar_lea.vmem [#allocation4], %s3321_s9 }
 0x3d6   : > { %2834 = vrot.lane.b32.xlu1 %v2763_v9, %s4090_s8  ;;  %2832 = vrot.lane.b32.xlu0 %v2762_v39, %s4090_s8  ;;  %v2966_v16 = vld [vmem:[%s5619_s15 + $0x10] sm:$0xff]  ;;  %v2964_v24 = vld [vmem:[%s5619_s15] sm:$0xff] }
 0x3d7   : > { %v2956_v41 = vadd.f32 1e-05, %v2954_v19  ;;  %v2967_v20 = vld [vmem:[%s5619_s15 + $0x18] sm:$0xff]  ;;  %v2965_v63 = vld [vmem:[%s5619_s15 + $0x8] sm:$0xff]  ;;  %v2968_v51 = vld [vmem:[%s5619_s15 + $0x20] sm:$0xff] }
 0x3d8   : > { %v2969_v59 = vld [vmem:[%s5619_s15 + $0x28] sm:$0xff]  ;;  %v2971_v29 = vld [vmem:[%s5619_s15 + $0x38] sm:$0xff]  ;;  %v2970_v27 = vld [vmem:[%s5619_s15 + $0x30] sm:$0xff] }
 0x3d9   : > { %4032 = vrsqrt.f32 %v2956_v41  ;;  %v2979_v31 = vld [vmem:[%s5619_s15 + $0x78] sm:$0xff]  ;;  %v2978_v19 = vld [vmem:[%s5619_s15 + $0x70] sm:$0xff] }
 0x3da   : > { %2838 = vrot.lane.b32.xlu1 %v2765_v11, %s4090_s8  ;;  %2836 = vrot.lane.b32.xlu0 %v2764_v33, %s4090_s8 }
 0x3de   : > { %2842 = vrot.lane.b32.xlu1 %v2767_v4, %s4090_s8  ;;  %2840 = vrot.lane.b32.xlu0 %v2766_v13, %s4090_s8 }
 0x3e2   : > { %2846 = vrot.lane.b32.xlu1 %v2769_v46, %s4090_s8  ;;  %2844 = vrot.lane.b32.xlu0 %v2768_v55, %s4090_s8  ;;  %v2973_v46 = vld [vmem:[%s5619_s15 + $0x48] sm:$0xff]  ;;  %v2972_v55 = vld [vmem:[%s5619_s15 + $0x40] sm:$0xff] }
 0x3e3   : > { %v4033_v58 = vpop.eup %4032 }
 0x3e4   : > { %v2958_v36 = vmul.f32 %v4033_v58, %v2955_v23 }
 0x3e6   : > { %2850 = vrot.lane.b32.xlu1 %v2771_v38, %s4090_s8  ;;  %2848 = vrot.lane.b32.xlu0 %v2770_v57, %s4090_s8  ;;  %v2960_v1 = vmul.f32 %v2958_v36, %v2950_v42  ;;  %v5617_v22 = vrot.slane %v2958_v36, %v2999_v45 }
 0x3e8   : > { %v2961_v12 = vsub.f32 %v2959_v48, %v2960_v1  ;;  %v3004_v62 = vmul.f32 %v5617_v22, %v2966_v16  ;;  %v3002_v26 = vmul.f32 %v5617_v22, %v2964_v24  ;;  %v3005_v34 = vmul.f32 %v5617_v22, %v2967_v20  ;;  %v2981_v1 = vld [vmem:[%s5619_s15 + $0x88] sm:$0xff]  ;;  %v2983_v20 = vld [vmem:[%s5619_s15 + $0x98] sm:$0xff] }
 0x3e9   : > { %v3003_v43 = vmul.f32 %v5617_v22, %v2965_v63  ;;  %v3007_v2 = vmul.f32 %v5617_v22, %v2969_v59  ;;  %v3006_v30 = vmul.f32 %v5617_v22, %v2968_v51  ;;  %v3009_v4 = vmul.f32 %v5617_v22, %v2971_v29  ;;  %v2982_v63 = vld [vmem:[%s5619_s15 + $0x90] sm:$0xff] }
 0x3ea   : > { %2854 = vrot.lane.b32.xlu1 %v2773_v49, %s4090_s8  ;;  %2852 = vrot.lane.b32.xlu0 %v2772_v17, %s4090_s8  ;;  %v5624_v40 = vrot.slane %v2961_v12, %v2999_v45  ;;  %v3008_v13 = vmul.f32 %v5617_v22, %v2970_v27  ;;  %v3017_v36 = vmul.f32 %v5617_v22, %v2979_v31  ;;  %v2980_v45 = vld [vmem:[%s5619_s15 + $0x80] sm:$0xff] }
 0x3eb   : > { %v3016_v7 = vmul.f32 %v5617_v22, %v2978_v19  ;;  %v3021_v59 = vmul.f32 %v5617_v22, %v2983_v20  ;;  %v3020_v51 = vmul.f32 %v5617_v22, %v2982_v63 }
 0x3ec   : > { %v3042_v56 = vadd.f32 %v5624_v40, %v3004_v62  ;;  %v3040_v10 = vadd.f32 %v5624_v40, %v3002_v26  ;;  %v3043_v21 = vadd.f32 %v5624_v40, %v3005_v34  ;;  %v3041_v18 = vadd.f32 %v5624_v40, %v3003_v43 }
 0x3ed   : > { %v3045_v11 = vadd.f32 %v5624_v40, %v3007_v2  ;;  %v3044_v33 = vadd.f32 %v5624_v40, %v3006_v30  ;;  %v3047_v49 = vadd.f32 %v5624_v40, %v3009_v4  ;;  %v3046_v17 = vadd.f32 %v5624_v40, %v3008_v13 }
 0x3ee   : > { %2858 = vrot.lane.b32.xlu1 %v2775_v28, %s4090_s8  ;;  %2856 = vrot.lane.b32.xlu0 %v2774_v32, %s4090_s8  ;;  %v3011_v28 = vmul.f32 %v5617_v22, %v2973_v46  ;;  %v3010_v32 = vmul.f32 %v5617_v22, %v2972_v55  ;;  %v3055_v16 = vadd.f32 %v5624_v40, %v3017_v36 }
 0x3ef   : > { %v3054_v24 = vadd.f32 %v5624_v40, %v3016_v7  ;;  %v3019_v62 = vmul.f32 %v5617_v22, %v2981_v1  ;;  %v3018_v26 = vmul.f32 %v5617_v22, %v2980_v45  ;;  %v3059_v2 = vadd.f32 %v5624_v40, %v3021_v59 }
 0x3f0   : > { %v3058_v30 = vadd.f32 %v5624_v40, %v3020_v51 }
 0x3f1   : > { %v3057_v34 = vadd.f32 %v5624_v40, %v3019_v62  ;;  %v3056_v43 = vadd.f32 %v5624_v40, %v3018_v26 }
 0x3f2   : > { %2862 = vrot.lane.b32.xlu1 %v2777_v3, %s4090_s8  ;;  %2860 = vrot.lane.b32.xlu0 %v2776_v14, %s4090_s8  ;;  %v2975_v3 = vld [vmem:[%s5619_s15 + $0x58] sm:$0xff]  ;;  %v2974_v14 = vld [vmem:[%s5619_s15 + $0x50] sm:$0xff] }
 0x3f6   : > { %2866 = vrot.lane.b32.xlu1 %v2779_v37, %s4090_s8  ;;  %2864 = vrot.lane.b32.xlu0 %v2778_v44, %s4090_s8 }
 0x3fa   : > { %2870 = vrot.lane.b32.xlu1 %v2781_v61, %s4090_s8  ;;  %2868 = vrot.lane.b32.xlu0 %v2780_v15, %s4090_s8  ;;  %v3049_v61 = vadd.f32 %v5624_v40, %v3011_v28  ;;  %v3048_v15 = vadd.f32 %v5624_v40, %v3010_v32 }
 0x3fe   : > { %2874 = vrot.lane.b32.xlu1 %v2783_v0, %s4090_s8  ;;  %2872 = vrot.lane.b32.xlu0 %v2782_v54, %s4090_s8  ;;  %v3013_v0 = vmul.f32 %v5617_v22, %v2975_v3  ;;  %v3012_v54 = vmul.f32 %v5617_v22, %v2974_v14 }
 0x400   : > { %v3051_v53 = vadd.f32 %v5624_v40, %v3013_v0  ;;  %v3050_v42 = vadd.f32 %v5624_v40, %v3012_v54 }
 0x402   : > { %2878 = vrot.lane.b32.xlu1 %v2785_v60, %s4090_s8  ;;  %2876 = vrot.lane.b32.xlu0 %v2784_v35, %s4090_s8  ;;  %v2977_v60 = vld [vmem:[%s5619_s15 + $0x68] sm:$0xff]  ;;  %v2976_v35 = vld [vmem:[%s5619_s15 + $0x60] sm:$0xff] }
 0x403   : > { %v3015_v50 = vmul.f32 %v5617_v22, %v2977_v60  ;;  %v3014_v6 = vmul.f32 %v5617_v22, %v2976_v35 }
 0x405   : > { %v3053_v58 = vadd.f32 %v5624_v40, %v3015_v50  ;;  %v3052_v23 = vadd.f32 %v5624_v40, %v3014_v6 }
 0x406   : > { %2882 = vrot.lane.b32.xlu1 %v2787_v25, %s4090_s8  ;;  %2880 = vrot.lane.b32.xlu0 %v2786_v47, %s4090_s8 }
 0x43c   : > { %v2825_v5 = vpop.permute.xlu1 %2824  ;;  %v2821_v8 = vpop.permute.xlu0 %2820 }
 0x43d   : > { %2919 = vst.msk [vmem:[%s4174_s13 + $0x10] sm:$0xff] %vm2916_vm6, %v2825_v5  ;;  %2917 = vst.msk [vmem:[%s4174_s13] sm:$0xff] %vm2916_vm6, %v2821_v8  ;;  %v2985_v5 = vld [vmem:[%s5619_s15 + $0xa8] sm:$0xff]  ;;  %v2984_v8 = vld [vmem:[%s5619_s15 + $0xa0] sm:$0xff] }
 0x43e   : > { %3075 = vst.msk [vmem:[%s4174_s13 + $0x10] sm:$0xff] %vm3072_vm11, %v3042_v56  ;;  %3073 = vst.msk [vmem:[%s4174_s13] sm:$0xff] %vm3072_vm11, %v3040_v10  ;;  %v3023_v29 = vmul.f32 %v5617_v22, %v2985_v5  ;;  %v3022_v27 = vmul.f32 %v5617_v22, %v2984_v8 }
 0x440   : > { %v2827_v9 = vpop.permute.xlu1 %2826  ;;  %v2823_v39 = vpop.permute.xlu0 %2822  ;;  %v3061_v4 = vadd.f32 %v5624_v40, %v3023_v29  ;;  %v3060_v13 = vadd.f32 %v5624_v40, %v3022_v27 }
 0x441   : > { %2920 = vst.msk [vmem:[%s4174_s13 + $0x18] sm:$0xff] %vm2916_vm6, %v2827_v9  ;;  %2918 = vst.msk [vmem:[%s4174_s13 + $0x8] sm:$0xff] %vm2916_vm6, %v2823_v39  ;;  %v2987_v9 = vld [vmem:[%s5619_s15 + $0xb8] sm:$0xff]  ;;  %v2986_v39 = vld [vmem:[%s5619_s15 + $0xb0] sm:$0xff] }
 0x442   : > { %3076 = vst.msk [vmem:[%s4174_s13 + $0x18] sm:$0xff] %vm3072_vm11, %v3043_v21  ;;  %3074 = vst.msk [vmem:[%s4174_s13 + $0x8] sm:$0xff] %vm3072_vm11, %v3041_v18  ;;  %v3025_v46 = vmul.f32 %v5617_v22, %v2987_v9  ;;  %v3024_v55 = vmul.f32 %v5617_v22, %v2986_v39 }
 0x444   : > { %v2831_v38 = vpop.permute.xlu1 %2830  ;;  %v2829_v57 = vpop.permute.xlu0 %2828  ;;  %v3063_v28 = vadd.f32 %v5624_v40, %v3025_v46  ;;  %v3062_v32 = vadd.f32 %v5624_v40, %v3024_v55 }
 0x445   : > { %2922 = vst.msk [vmem:[%s4174_s13 + $0x28] sm:$0xff] %vm2916_vm6, %v2831_v38  ;;  %2921 = vst.msk [vmem:[%s4174_s13 + $0x20] sm:$0xff] %vm2916_vm6, %v2829_v57  ;;  %v2989_v38 = vld [vmem:[%s5619_s15 + $0xc8] sm:$0xff]  ;;  %v2988_v57 = vld [vmem:[%s5619_s15 + $0xc0] sm:$0xff] }
 0x446   : > { %3078 = vst.msk [vmem:[%s4174_s13 + $0x28] sm:$0xff] %vm3072_vm11, %v3045_v11  ;;  %3077 = vst.msk [vmem:[%s4174_s13 + $0x20] sm:$0xff] %vm3072_vm11, %v3044_v33  ;;  %v3027_v3 = vmul.f32 %v5617_v22, %v2989_v38  ;;  %v3026_v14 = vmul.f32 %v5617_v22, %v2988_v57 }
 0x448   : > { %v2835_v37 = vpop.permute.xlu1 %2834  ;;  %v2833_v44 = vpop.permute.xlu0 %2832  ;;  %v3065_v0 = vadd.f32 %v5624_v40, %v3027_v3  ;;  %v3064_v54 = vadd.f32 %v5624_v40, %v3026_v14 }
 0x449   : > { %2924 = vst.msk [vmem:[%s4174_s13 + $0x38] sm:$0xff] %vm2916_vm6, %v2835_v37  ;;  %2923 = vst.msk [vmem:[%s4174_s13 + $0x30] sm:$0xff] %vm2916_vm6, %v2833_v44  ;;  %v2991_v37 = vld [vmem:[%s5619_s15 + $0xd8] sm:$0xff]  ;;  %v2990_v44 = vld [vmem:[%s5619_s15 + $0xd0] sm:$0xff] }
 0x44a   : > { %3080 = vst.msk [vmem:[%s4174_s13 + $0x38] sm:$0xff] %vm3072_vm11, %v3047_v49  ;;  %3079 = vst.msk [vmem:[%s4174_s13 + $0x30] sm:$0xff] %vm3072_vm11, %v3046_v17  ;;  %v3029_v60 = vmul.f32 %v5617_v22, %v2991_v37  ;;  %v3028_v35 = vmul.f32 %v5617_v22, %v2990_v44 }
 0x44c   : > { %v2839_v25 = vpop.permute.xlu1 %2838  ;;  %v2837_v47 = vpop.permute.xlu0 %2836  ;;  %v3067_v50 = vadd.f32 %v5624_v40, %v3029_v60  ;;  %v3066_v6 = vadd.f32 %v5624_v40, %v3028_v35 }
 0x44d   : > { %2926 = vst.msk [vmem:[%s4174_s13 + $0x48] sm:$0xff] %vm2916_vm6, %v2839_v25  ;;  %2925 = vst.msk [vmem:[%s4174_s13 + $0x40] sm:$0xff] %vm2916_vm6, %v2837_v47  ;;  %v2993_v25 = vld [vmem:[%s5619_s15 + $0xe8] sm:$0xff]  ;;  %v2992_v47 = vld [vmem:[%s5619_s15 + $0xe0] sm:$0xff] }
 0x44e   : > { %3082 = vst.msk [vmem:[%s4174_s13 + $0x48] sm:$0xff] %vm3072_vm11, %v3049_v61  ;;  %3081 = vst.msk [vmem:[%s4174_s13 + $0x40] sm:$0xff] %vm3072_vm11, %v3048_v15  ;;  %v3031_v31 = vmul.f32 %v5617_v22, %v2993_v25  ;;  %v3030_v19 = vmul.f32 %v5617_v22, %v2992_v47 }
 0x450   : > { %v2843_v41 = vpop.permute.xlu1 %2842  ;;  %v2841_v52 = vpop.permute.xlu0 %2840  ;;  %v3069_v36 = vadd.f32 %v5624_v40, %v3031_v31  ;;  %v3068_v7 = vadd.f32 %v5624_v40, %v3030_v19 }
 0x451   : > { %2928 = vst.msk [vmem:[%s4174_s13 + $0x58] sm:$0xff] %vm2916_vm6, %v2843_v41  ;;  %2927 = vst.msk [vmem:[%s4174_s13 + $0x50] sm:$0xff] %vm2916_vm6, %v2841_v52  ;;  %v2995_v41 = vld [vmem:[%s5619_s15 + $0xf8] sm:$0xff]  ;;  %v2994_v52 = vld [vmem:[%s5619_s15 + $0xf0] sm:$0xff] }
 0x452   : > { %3084 = vst.msk [vmem:[%s4174_s13 + $0x58] sm:$0xff] %vm3072_vm11, %v3051_v53  ;;  %3083 = vst.msk [vmem:[%s4174_s13 + $0x50] sm:$0xff] %vm3072_vm11, %v3050_v42  ;;  %v3033_v1 = vmul.f32 %v5617_v22, %v2995_v41  ;;  %v3032_v45 = vmul.f32 %v5617_v22, %v2994_v52 }
 0x454   : > { %v2847_v48 = vpop.permute.xlu1 %2846  ;;  %v2845_v12 = vpop.permute.xlu0 %2844 }
 0x455   : > { %2930 = vst.msk [vmem:[%s4174_s13 + $0x68] sm:$0xff] %vm2916_vm6, %v2847_v48  ;;  %2929 = vst.msk [vmem:[%s4174_s13 + $0x60] sm:$0xff] %vm2916_vm6, %v2845_v12 }
 0x456   : > { %3086 = vst.msk [vmem:[%s4174_s13 + $0x68] sm:$0xff] %vm3072_vm11, %v3053_v58  ;;  %3085 = vst.msk [vmem:[%s4174_s13 + $0x60] sm:$0xff] %vm3072_vm11, %v3052_v23 }
 0x458   : > { %v2851_v56 = vpop.permute.xlu1 %2850  ;;  %v2849_v10 = vpop.permute.xlu0 %2848 }
 0x459   : > { %2932 = vst.msk [vmem:[%s4174_s13 + $0x78] sm:$0xff] %vm2916_vm6, %v2851_v56  ;;  %2931 = vst.msk [vmem:[%s4174_s13 + $0x70] sm:$0xff] %vm2916_vm6, %v2849_v10 }
 0x45a   : > { %3088 = vst.msk [vmem:[%s4174_s13 + $0x78] sm:$0xff] %vm3072_vm11, %v3055_v16  ;;  %3087 = vst.msk [vmem:[%s4174_s13 + $0x70] sm:$0xff] %vm3072_vm11, %v3054_v24  ;;  %v3071_v16 = vadd.f32 %v5624_v40, %v3033_v1  ;;  %v3070_v24 = vadd.f32 %v5624_v40, %v3032_v45 }
 0x45c   : > { %v2855_v21 = vpop.permute.xlu1 %2854  ;;  %v2853_v18 = vpop.permute.xlu0 %2852 }
 0x45d   : > { %2934 = vst.msk [vmem:[%s4174_s13 + $0x88] sm:$0xff] %vm2916_vm6, %v2855_v21  ;;  %2933 = vst.msk [vmem:[%s4174_s13 + $0x80] sm:$0xff] %vm2916_vm6, %v2853_v18 }
 0x45e   : > { %3090 = vst.msk [vmem:[%s4174_s13 + $0x88] sm:$0xff] %vm3072_vm11, %v3057_v34  ;;  %3089 = vst.msk [vmem:[%s4174_s13 + $0x80] sm:$0xff] %vm3072_vm11, %v3056_v43 }
 0x460   : > { %v2859_v11 = vpop.permute.xlu1 %2858  ;;  %v2857_v33 = vpop.permute.xlu0 %2856 }
 0x461   : > { %2936 = vst.msk [vmem:[%s4174_s13 + $0x98] sm:$0xff] %vm2916_vm6, %v2859_v11  ;;  %2935 = vst.msk [vmem:[%s4174_s13 + $0x90] sm:$0xff] %vm2916_vm6, %v2857_v33 }
 0x462   : > { %3092 = vst.msk [vmem:[%s4174_s13 + $0x98] sm:$0xff] %vm3072_vm11, %v3059_v2  ;;  %3091 = vst.msk [vmem:[%s4174_s13 + $0x90] sm:$0xff] %vm3072_vm11, %v3058_v30 }
 0x464   : > { %v2863_v49 = vpop.permute.xlu1 %2862  ;;  %v2861_v17 = vpop.permute.xlu0 %2860 }
 0x465   : > { %2938 = vst.msk [vmem:[%s4174_s13 + $0xa8] sm:$0xff] %vm2916_vm6, %v2863_v49  ;;  %2937 = vst.msk [vmem:[%s4174_s13 + $0xa0] sm:$0xff] %vm2916_vm6, %v2861_v17 }
 0x466   : > { %3094 = vst.msk [vmem:[%s4174_s13 + $0xa8] sm:$0xff] %vm3072_vm11, %v3061_v4  ;;  %3093 = vst.msk [vmem:[%s4174_s13 + $0xa0] sm:$0xff] %vm3072_vm11, %v3060_v13 }
 0x468   : > { %v2867_v61 = vpop.permute.xlu1 %2866  ;;  %v2865_v15 = vpop.permute.xlu0 %2864 }
 0x469   : > { %2940 = vst.msk [vmem:[%s4174_s13 + $0xb8] sm:$0xff] %vm2916_vm6, %v2867_v61  ;;  %2939 = vst.msk [vmem:[%s4174_s13 + $0xb0] sm:$0xff] %vm2916_vm6, %v2865_v15 }
 0x46a   : > { %3096 = vst.msk [vmem:[%s4174_s13 + $0xb8] sm:$0xff] %vm3072_vm11, %v3063_v28  ;;  %3095 = vst.msk [vmem:[%s4174_s13 + $0xb0] sm:$0xff] %vm3072_vm11, %v3062_v32 }
 0x46c   : > { %v2871_v53 = vpop.permute.xlu1 %2870  ;;  %v2869_v42 = vpop.permute.xlu0 %2868 }
 0x46d   : > { %2942 = vst.msk [vmem:[%s4174_s13 + $0xc8] sm:$0xff] %vm2916_vm6, %v2871_v53  ;;  %2941 = vst.msk [vmem:[%s4174_s13 + $0xc0] sm:$0xff] %vm2916_vm6, %v2869_v42 }
 0x46e   : > { %3098 = vst.msk [vmem:[%s4174_s13 + $0xc8] sm:$0xff] %vm3072_vm11, %v3065_v0  ;;  %3097 = vst.msk [vmem:[%s4174_s13 + $0xc0] sm:$0xff] %vm3072_vm11, %v3064_v54 }
 0x470   : > { %v2875_v58 = vpop.permute.xlu1 %2874  ;;  %v2873_v23 = vpop.permute.xlu0 %2872 }
 0x471   : > { %2944 = vst.msk [vmem:[%s4174_s13 + $0xd8] sm:$0xff] %vm2916_vm6, %v2875_v58  ;;  %2943 = vst.msk [vmem:[%s4174_s13 + $0xd0] sm:$0xff] %vm2916_vm6, %v2873_v23 }
 0x472   : > { %3100 = vst.msk [vmem:[%s4174_s13 + $0xd8] sm:$0xff] %vm3072_vm11, %v3067_v50  ;;  %3099 = vst.msk [vmem:[%s4174_s13 + $0xd0] sm:$0xff] %vm3072_vm11, %v3066_v6 }
 0x474   : > { %v2879_v48 = vpop.permute.xlu1 %2878  ;;  %v2877_v12 = vpop.permute.xlu0 %2876 }
 0x475   : > { %2946 = vst.msk [vmem:[%s4174_s13 + $0xe8] sm:$0xff] %vm2916_vm6, %v2879_v48  ;;  %2945 = vst.msk [vmem:[%s4174_s13 + $0xe0] sm:$0xff] %vm2916_vm6, %v2877_v12 }
 0x476   : > { %3102 = vst.msk [vmem:[%s4174_s13 + $0xe8] sm:$0xff] %vm3072_vm11, %v3069_v36  ;;  %3101 = vst.msk [vmem:[%s4174_s13 + $0xe0] sm:$0xff] %vm3072_vm11, %v3068_v7 }
 0x478   : > { %v2883_v62 = vpop.permute.xlu1 %2882  ;;  %v2881_v26 = vpop.permute.xlu0 %2880 }
 0x479   : > { %2948 = vst.msk [vmem:[%s4174_s13 + $0xf8] sm:$0xff] %vm2916_vm6, %v2883_v62  ;;  %2947 = vst.msk [vmem:[%s4174_s13 + $0xf0] sm:$0xff] %vm2916_vm6, %v2881_v26 }
 0x47a   : > { %3104 = vst.msk [vmem:[%s4174_s13 + $0xf8] sm:$0xff] %vm3072_vm11, %v3071_v16  ;;  %3103 = vst.msk [vmem:[%s4174_s13 + $0xf0] sm:$0xff] %vm3072_vm11, %v3070_v24 }
 0x47b PF: > { %s16_s25 = sadd.s32 1, %s4072_s25   ;;  %s5869_s21 = smov %s4064_s23 }
 0x47c   : > { %p13_p12 = scmp.ge.s32.totalorder %s16_s25, 6   ;;  %s5870_s22 = smov %s4068_s24 }
 0x47d   : > { %s5871_s23 = smov %s5874_s26  ;;  %s5872_s24 = smov %s5878_s27 }
 0x47e   :  { %15 = sbr.rel (!%p13_p12) target bundleno = 3 (0x3), region = 197 }

</bundles_post_ra>
